<compile_context>
chip_gen: v7x
topology: tpu7x:2x2x1
jax: 0.10.0
libtpu: 0.0.40
codegen_flags: <defaults>
</compile_context>

<pallas_src>
import functools
import math

import jax
import jax.numpy as jnp
from jax.experimental import pallas as pl
from jax.experimental.pallas import tpu as pltpu

EPS = 1e-5  # torch.nn.LayerNorm default eps

WEIGHT_NAMES = ("sa_g", "sa_b", "sa_wqkv", "sa_wo", "sa_bo",
                "ca_g", "ca_b", "ca_wq", "ca_wkv", "ca_wo", "ca_bo",
                "ff_g", "ff_b", "ff_w1", "ff_b1", "ff_w2", "ff_b2")


# ---------------------------------------------------------------- helpers ----
def _layernorm(x, g, b):
    x = x.astype(jnp.float32)
    mu = jnp.mean(x, axis=-1, keepdims=True)
    var = jnp.mean((x - mu) ** 2, axis=-1, keepdims=True)
    return (x - mu) * jax.lax.rsqrt(var + EPS) * g + b


def _erf(x):
    # Abramowitz & Stegun 7.1.26 (|err| < 1.5e-7), built only from ops with
    # guaranteed Mosaic lowerings (exp / mul / add / select).
    a1, a2, a3, a4, a5 = 0.254829592, -0.284496736, 1.421413741, -1.453152027, 1.061405429
    p = 0.3275911
    ax = jnp.abs(x)
    t = 1.0 / (1.0 + p * ax)
    poly = ((((a5 * t + a4) * t + a3) * t + a2) * t + a1) * t
    y = 1.0 - poly * jnp.exp(-(ax * ax))
    return jnp.where(x < 0.0, -y, y)


def _gelu(x, use_tanh):
    if use_tanh:
        # tanh approx: EUP slot on v6e/v7x, cheaper than the erf polynomial on
        # v5e's VALU (slightly different numerics than torch.nn.GELU()).
        c = math.sqrt(2.0 / math.pi)
        return 0.5 * x * (1.0 + jnp.tanh(c * (x + 0.044715 * x * x * x)))
    return 0.5 * x * (1.0 + _erf(x * (1.0 / math.sqrt(2.0))))


def _mha(q, k, v, bias, nb, nq, nk, num_heads):
    """Multi-head attention on row-flattened activations.

    q: (nb*nq, D) f32 (attention scale already folded into the q projection),
    k, v: (nb*nk, D) f32, bias: (H, nq, nk) f32.  Returns (nb*nq, D) f32.
    Uses only 2-D dot_general + lane-aligned slices + concatenate (no transposes).
    """
    d = q.shape[-1]
    dh = d // num_heads
    dn_qkT = (((1,), (1,)), ((), ()))   # q @ k^T (contract last dims)
    dn_av = (((1,), (0,)), ((), ()))    # attn @ v
    outs = []
    for b in range(nb):                 # static, unrolled (nb <= 2)
        qb = q[b * nq:(b + 1) * nq]
        kb = k[b * nk:(b + 1) * nk]
        vb = v[b * nk:(b + 1) * nk]
        heads = []
        for h in range(num_heads):      # static, unrolled
            sl = slice(h * dh, (h + 1) * dh)
            s = jax.lax.dot_general(qb[:, sl].astype(jnp.bfloat16),
                                    kb[:, sl].astype(jnp.bfloat16),
                                    dn_qkT, preferred_element_type=jnp.float32)
            s = s + bias[h]
            s = s - jnp.max(s, axis=-1, keepdims=True)
            p = jnp.exp(s)
            p = p / jnp.sum(p, axis=-1, keepdims=True)   # exact divide (parity w/ torch)
            heads.append(jax.lax.dot_general(p.astype(jnp.bfloat16),
                                             vb[:, sl].astype(jnp.bfloat16),
                                             dn_av, preferred_element_type=jnp.float32))
        outs.append(jnp.concatenate(heads, axis=-1))      # (nq, D)
    return jnp.concatenate(outs, axis=0)                  # (nb*nq, D)


# --------------------------------------------------- fused transformer kernel
def transformer_kernel(x_ref, ctx_ref, bias_ref,
                       sa_g_ref, sa_b_ref, sa_wqkv_ref, sa_wo_ref, sa_bo_ref,
                       ca_g_ref, ca_b_ref, ca_wq_ref, ca_wkv_ref, ca_wo_ref, ca_bo_ref,
                       ff_g_ref, ff_b_ref, ff_w1_ref, ff_b1_ref, ff_w2_ref, ff_b2_ref,
                       fn_g_ref, fn_b_ref,
                       out_ref, *, num_heads, use_tanh_gelu):
    li = pl.program_id(1)               # depth index ("arbitrary" axis)

    # Layer 0: seed the VMEM-resident residual stream from the input block.
    @pl.when(li == 0)
    def _():
        out_ref[...] = x_ref[...].astype(out_ref.dtype)

    Bb, n, d = out_ref.shape
    m = ctx_ref.shape[1]

    x = out_ref[...].astype(jnp.float32).reshape(Bb * n, d)       # residual stream
    ctx = ctx_ref[...].astype(jnp.float32).reshape(Bb * m, d)
    bias = bias_ref[...]                                          # (H, N, M) f32

    # ----- self attention (+ residual) -----
    xn = _layernorm(x, sa_g_ref[0], sa_b_ref[0])
    qkv = jnp.dot(xn.astype(jnp.bfloat16), sa_wqkv_ref[0],
                  preferred_element_type=jnp.float32)             # (Bb*N, 3D)
    o = _mha(qkv[:, :d], qkv[:, d:2 * d], qkv[:, 2 * d:], bias,
             Bb, n, n, num_heads)
    y = jnp.dot(o.astype(jnp.bfloat16), sa_wo_ref[0],
                preferred_element_type=jnp.float32) + sa_bo_ref[0]
    x = x + y

    # ----- cross attention (+ residual); same input_norm for x and context ---
    xn = _layernorm(x, ca_g_ref[0], ca_b_ref[0])
    cn = _layernorm(ctx, ca_g_ref[0], ca_b_ref[0])
    q = jnp.dot(xn.astype(jnp.bfloat16), ca_wq_ref[0],
                preferred_element_type=jnp.float32)               # scale folded in
    kv = jnp.dot(cn.astype(jnp.bfloat16), ca_wkv_ref[0],
                 preferred_element_type=jnp.float32)              # (Bb*M, 2D)
    o = _mha(q, kv[:, :d], kv[:, d:], bias, Bb, n, m, num_heads)
    y = jnp.dot(o.astype(jnp.bfloat16), ca_wo_ref[0],
                preferred_element_type=jnp.float32) + ca_bo_ref[0]
    x = x + y

    # ----- FFN (+ residual) -----
    xn = _layernorm(x, ff_g_ref[0], ff_b_ref[0])
    hdn = jnp.dot(xn.astype(jnp.bfloat16), ff_w1_ref[0],
                  preferred_element_type=jnp.float32) + ff_b1_ref[0]
    hdn = _gelu(hdn, use_tanh_gelu)
    y = jnp.dot(hdn.astype(jnp.bfloat16), ff_w2_ref[0],
                preferred_element_type=jnp.float32) + ff_b2_ref[0]
    x = x + y

    # Write residual stream back to the resident output block; on the last
    # layer fold in the final norm_out before the (single) HBM writeback.
    out_ref[...] = x.reshape(Bb, n, d).astype(out_ref.dtype)

    @pl.when(li == pl.num_programs(1) - 1)
    def _():
        xo = _layernorm(x, fn_g_ref[...], fn_b_ref[...])
        out_ref[...] = xo.reshape(Bb, n, d).astype(out_ref.dtype)


def layernorm_kernel(x_ref, g_ref, b_ref, out_ref):   # depth == 0 fallback only
    Bb, n, d = x_ref.shape
    xr = x_ref[...].astype(jnp.float32).reshape(Bb * n, d)
    out_ref[...] = _layernorm(xr, g_ref[...], b_ref[...]).reshape(Bb, n, d).astype(out_ref.dtype)


# ------------------------------------------------------------- pallas_call ---
def layernorm_block(x, g, b):
    B, N, D = x.shape
    return pl.pallas_call(
        layernorm_kernel,
        out_shape=jax.ShapeDtypeStruct((B, N, D), jnp.float32),
        grid=(1,),
        in_specs=[pl.BlockSpec((B, N, D), lambda i: (0, 0, 0)),
                  pl.BlockSpec(g.shape, lambda i: (0, 0)),
                  pl.BlockSpec(b.shape, lambda i: (0, 0))],
        out_specs=pl.BlockSpec((B, N, D), lambda i: (0, 0, 0)),
    )(x, g, b)


def base_transformer_cross_attn(x, context, rel_pos_bias, params, num_heads,
                                use_tanh_gelu=False):
    # TODO(synk): nn.Dropout is a no-op at dropout=0.0 / eval; not implemented.
    B, N, D = x.shape
    M = context.shape[1]
    stacked = params["stacked"]
    depth = stacked["sa_wqkv"].shape[0]
    if depth == 0:
        return layernorm_block(x, params["norm_g"], params["norm_b"])

    # >=2 parallel grid steps so both v7x TensorCores get work; each block still
    # folds Bb batch elements into the matmul rows.
    nb = 2 if (B >= 2 and B % 2 == 0) else 1
    Bb = B // nb

    weights = tuple(stacked[name] for name in WEIGHT_NAMES)
    args = (x, context, rel_pos_bias) + weights + (params["norm_g"], params["norm_b"])

    def _depth_spec(a):        # stream layer li's weights each grid step
        nd = a.ndim
        return pl.BlockSpec((1,) + a.shape[1:],
                            lambda b, li, _nd=nd: (li,) + (0,) * (_nd - 1))

    def _const_spec(a):        # resident across the whole grid
        nd = a.ndim
        return pl.BlockSpec(a.shape, lambda b, li, _nd=nd: (0,) * _nd)

    in_specs = [pl.BlockSpec((Bb, N, D), lambda b, li: (b, 0, 0)),   # x
                pl.BlockSpec((Bb, M, D), lambda b, li: (b, 0, 0)),   # context
                _const_spec(rel_pos_bias)]
    in_specs += [_depth_spec(w) for w in weights]
    in_specs += [_const_spec(params["norm_g"]), _const_spec(params["norm_b"])]

    kern = functools.partial(transformer_kernel, num_heads=num_heads,
                             use_tanh_gelu=use_tanh_gelu)

    return pl.pallas_call(
        kern,
        out_shape=jax.ShapeDtypeStruct((B, N, D), jnp.float32),
        grid=(nb, depth),
        in_specs=in_specs,
        out_specs=pl.BlockSpec((Bb, N, D), lambda b, li: (b, 0, 0)),
        compiler_params=pltpu.CompilerParams(
            dimension_semantics=("parallel", "arbitrary"),
            # 48 MiB leaves headroom under v7x's 64 MiB physical VMEM while
            # allowing double-buffered per-layer weights at larger D.
            vmem_limit_bytes=48 * 1024 * 1024),
    )(*args)


# ------------------------------------------------------------ model wrapper --
def init_params(key, dim, depth, num_heads, ff_mult):
    f = ff_mult * dim
    scale = (dim // num_heads) ** -0.5

    def nrm(k, shape, std=0.02):
        return std * jax.random.normal(k, shape, jnp.float32)

    ks = jax.random.split(key, 11)
    # Fold the attention scale into the q columns once, host-side, at init
    # (to_qkv / to_q have bias=False, so this is exact).
    wqkv = nrm(ks[0], (depth, dim, 3 * dim))
    wqkv = wqkv.at[:, :, :dim].multiply(scale)
    wq = nrm(ks[3], (depth, dim, dim)) * scale

    stacked = dict(
        sa_g=jnp.ones((depth, 1, dim), jnp.float32),
        sa_b=jnp.zeros((depth, 1, dim), jnp.float32),
        sa_wqkv=wqkv.astype(jnp.bfloat16),
        sa_wo=nrm(ks[1], (depth, dim, dim)).astype(jnp.bfloat16),
        sa_bo=nrm(ks[2], (depth, 1, dim)),
        ca_g=jnp.ones((depth, 1, dim), jnp.float32),
        ca_b=jnp.zeros((depth, 1, dim), jnp.float32),
        ca_wq=wq.astype(jnp.bfloat16),
        ca_wkv=nrm(ks[4], (depth, dim, 2 * dim)).astype(jnp.bfloat16),  # to_k | to_v fused
        ca_wo=nrm(ks[5], (depth, dim, dim)).astype(jnp.bfloat16),
        ca_bo=nrm(ks[6], (depth, 1, dim)),
        ff_g=jnp.ones((depth, 1, dim), jnp.float32),
        ff_b=jnp.zeros((depth, 1, dim), jnp.float32),
        ff_w1=nrm(ks[7], (depth, dim, f)).astype(jnp.bfloat16),
        ff_b1=nrm(ks[8], (depth, 1, f)),
        ff_w2=nrm(ks[9], (depth, f, dim)).astype(jnp.bfloat16),
        ff_b2=nrm(ks[10], (depth, 1, dim)),
    )
    return dict(stacked=stacked,
                norm_g=jnp.ones((1, dim), jnp.float32),
                norm_b=jnp.zeros((1, dim), jnp.float32))


# ------------------------------------------------------------------- main ----
if __name__ == "__main__":
    # D = 128 keeps the feature axis lane-dense; B = 4 gives 2 parallel grid
    # blocks (v7x megacore) with 2*N = 32 matmul rows each.
    B, N, D = 4, 16, 128
    num_heads, depth, ff_mult = 4, 2, 4

    key = jax.random.PRNGKey(0)
    kx, kc, kb, kp = jax.random.split(key, 4)
    x = jax.random.normal(kx, (B, N, D), jnp.float32)
    context = jax.random.normal(kc, (B, N, D), jnp.float32)
    rel_pos_bias = 0.1 * jax.random.normal(kb, (num_heads, N, N), jnp.float32)

    params = init_params(kp, D, depth, num_heads, ff_mult)

    fwd = jax.jit(functools.partial(base_transformer_cross_attn,
                                    num_heads=num_heads))
    out = fwd(x, context, rel_pos_bias, params)
    out = jax.block_until_ready(out)
    assert out.shape == (B, N, D) and bool(jnp.all(jnp.isfinite(out)))
    print("KERNEL_OK")
</pallas_src>

<mosaic_0001>
module attributes {stable_mosaic.version = 11 : i64} {
  func.func @transformer_kernel(%arg0: i32, %arg1: i32, %arg2: memref<2x16x128xf32, #tpu.memory_space<vmem>>, %arg3: memref<2x16x128xf32, #tpu.memory_space<vmem>>, %arg4: memref<4x16x16xf32, #tpu.memory_space<vmem>>, %arg5: memref<1x1x128xf32, #tpu.memory_space<vmem>>, %arg6: memref<1x1x128xf32, #tpu.memory_space<vmem>>, %arg7: memref<1x128x384xbf16, #tpu.memory_space<vmem>>, %arg8: memref<1x128x128xbf16, #tpu.memory_space<vmem>>, %arg9: memref<1x1x128xf32, #tpu.memory_space<vmem>>, %arg10: memref<1x1x128xf32, #tpu.memory_space<vmem>>, %arg11: memref<1x1x128xf32, #tpu.memory_space<vmem>>, %arg12: memref<1x128x128xbf16, #tpu.memory_space<vmem>>, %arg13: memref<1x128x256xbf16, #tpu.memory_space<vmem>>, %arg14: memref<1x128x128xbf16, #tpu.memory_space<vmem>>, %arg15: memref<1x1x128xf32, #tpu.memory_space<vmem>>, %arg16: memref<1x1x128xf32, #tpu.memory_space<vmem>>, %arg17: memref<1x1x128xf32, #tpu.memory_space<vmem>>, %arg18: memref<1x128x512xbf16, #tpu.memory_space<vmem>>, %arg19: memref<1x1x512xf32, #tpu.memory_space<vmem>>, %arg20: memref<1x512x128xbf16, #tpu.memory_space<vmem>>, %arg21: memref<1x1x128xf32, #tpu.memory_space<vmem>>, %arg22: memref<1x128xf32, #tpu.memory_space<vmem>>, %arg23: memref<1x128xf32, #tpu.memory_space<vmem>>, %arg24: memref<2x16x128xf32, #tpu.memory_space<vmem>>) attributes {dimension_semantics = [#tpu.dimension_semantics<parallel>, #tpu.dimension_semantics<arbitrary>], iteration_bounds = array<i64: 2, 2>, scalar_prefetch = 0 : i64, scratch_operands = 0 : i64, tpu.core_type = #tpu.core_type<tc>, window_params = [{transform_indices = @transform_0, window_bounds = array<i64: 2, 16, 128>}, {transform_indices = @transform_1, window_bounds = array<i64: 2, 16, 128>}, {pipeline_mode = #tpu.pipeline_mode<synchronous>, transform_indices = @transform_2, window_bounds = array<i64: 4, 16, 16>}, {transform_indices = @transform_3, window_bounds = array<i64: 1, 1, 128>}, {transform_indices = @transform_4, window_bounds = array<i64: 1, 1, 128>}, {transform_indices = @transform_5, window_bounds = array<i64: 1, 128, 384>}, {transform_indices = @transform_6, window_bounds = array<i64: 1, 128, 128>}, {transform_indices = @transform_7, window_bounds = array<i64: 1, 1, 128>}, {transform_indices = @transform_8, window_bounds = array<i64: 1, 1, 128>}, {transform_indices = @transform_9, window_bounds = array<i64: 1, 1, 128>}, {transform_indices = @transform_10, window_bounds = array<i64: 1, 128, 128>}, {transform_indices = @transform_11, window_bounds = array<i64: 1, 128, 256>}, {transform_indices = @transform_12, window_bounds = array<i64: 1, 128, 128>}, {transform_indices = @transform_13, window_bounds = array<i64: 1, 1, 128>}, {transform_indices = @transform_14, window_bounds = array<i64: 1, 1, 128>}, {transform_indices = @transform_15, window_bounds = array<i64: 1, 1, 128>}, {transform_indices = @transform_16, window_bounds = array<i64: 1, 128, 512>}, {transform_indices = @transform_17, window_bounds = array<i64: 1, 1, 512>}, {transform_indices = @transform_18, window_bounds = array<i64: 1, 512, 128>}, {transform_indices = @transform_19, window_bounds = array<i64: 1, 1, 128>}, {pipeline_mode = #tpu.pipeline_mode<synchronous>, transform_indices = @transform_20, window_bounds = array<i64: 1, 128>}, {pipeline_mode = #tpu.pipeline_mode<synchronous>, transform_indices = @transform_21, window_bounds = array<i64: 1, 128>}, {transform_indices = @transform_22, window_bounds = array<i64: 2, 16, 128>}]} {
    %c0_i32 = arith.constant 0 : i32
    %0 = arith.cmpi eq, %arg1, %c0_i32 : i32
    %1 = arith.extui %0 : i1 to i32
    %c0_i32_0 = arith.constant 0 : i32
    %2 = arith.cmpi ne, %1, %c0_i32_0 : i32
    scf.if %2 {
      %c0_175 = arith.constant 0 : index
      %c0_176 = arith.constant 0 : index
      %c0_177 = arith.constant 0 : index
      %563 = vector.load %arg2[%c0_175, %c0_176, %c0_177] : memref<2x16x128xf32, #tpu.memory_space<vmem>>, vector<2x16x128xf32>
      %c0_178 = arith.constant 0 : index
      %c0_179 = arith.constant 0 : index
      %c0_180 = arith.constant 0 : index
      %564 = vector.load %arg24[%c0_178, %c0_179, %c0_180] : memref<2x16x128xf32, #tpu.memory_space<vmem>>, vector<2x16x128xf32>
      tpu.vector_store %arg24[%c0_178, %c0_179, %c0_180], %563 {strides = array<i32>} : memref<2x16x128xf32, #tpu.memory_space<vmem>>, vector<2x16x128xf32>,
    } else {
    }
    %c0 = arith.constant 0 : index
    %c0_1 = arith.constant 0 : index
    %c0_2 = arith.constant 0 : index
    %3 = vector.load %arg24[%c0, %c0_1, %c0_2] : memref<2x16x128xf32, #tpu.memory_space<vmem>>, vector<2x16x128xf32>
    %4 = vector.shape_cast %3 : vector<2x16x128xf32> to vector<32x128xf32>
    %c0_3 = arith.constant 0 : index
    %c0_4 = arith.constant 0 : index
    %c0_5 = arith.constant 0 : index
    %5 = vector.load %arg3[%c0_3, %c0_4, %c0_5] : memref<2x16x128xf32, #tpu.memory_space<vmem>>, vector<2x16x128xf32>
    %6 = vector.shape_cast %5 : vector<2x16x128xf32> to vector<32x128xf32>
    %c0_6 = arith.constant 0 : index
    %c0_7 = arith.constant 0 : index
    %c0_8 = arith.constant 0 : index
    %7 = vector.load %arg4[%c0_6, %c0_7, %c0_8] : memref<4x16x16xf32, #tpu.memory_space<vmem>>, vector<4x16x16xf32>
    %c0_9 = arith.constant 0 : index
    %c0_10 = arith.constant 0 : index
    %c0_11 = arith.constant 0 : index
    %8 = vector.load %arg5[%c0_9, %c0_10, %c0_11] : memref<1x1x128xf32, #tpu.memory_space<vmem>>, vector<1x1x128xf32>
    %9 = vector.shape_cast %8 : vector<1x1x128xf32> to vector<1x128xf32>
    %c0_12 = arith.constant 0 : index
    %c0_13 = arith.constant 0 : index
    %c0_14 = arith.constant 0 : index
    %10 = vector.load %arg6[%c0_12, %c0_13, %c0_14] : memref<1x1x128xf32, #tpu.memory_space<vmem>>, vector<1x1x128xf32>
    %11 = vector.shape_cast %10 : vector<1x1x128xf32> to vector<1x128xf32>
    %cst = arith.constant dense<0.000000e+00> : vector<32xf32>
    %12 = vector.multi_reduction <add>, %4, %cst [1] : vector<32x128xf32> to vector<32xf32>
    %13 = vector.shape_cast %12 : vector<32xf32> to vector<32x1xf32>
    %cst_15 = arith.constant 1.280000e+02 : f32
    %14 = vector.broadcast %cst_15 : f32 to vector<32x1xf32>
    %15 = arith.divf %13, %14 : vector<32x1xf32>
    %16 = vector.broadcast %15 : vector<32x1xf32> to vector<32x128xf32>
    %17 = arith.subf %4, %16 : vector<32x128xf32>
    %18 = arith.mulf %17, %17 : vector<32x128xf32>
    %cst_16 = arith.constant dense<0.000000e+00> : vector<32xf32>
    %19 = vector.multi_reduction <add>, %18, %cst_16 [1] : vector<32x128xf32> to vector<32xf32>
    %20 = vector.shape_cast %19 : vector<32xf32> to vector<32x1xf32>
    %cst_17 = arith.constant 1.280000e+02 : f32
    %21 = vector.broadcast %cst_17 : f32 to vector<32x1xf32>
    %22 = arith.divf %20, %21 : vector<32x1xf32>
    %23 = vector.broadcast %15 : vector<32x1xf32> to vector<32x128xf32>
    %24 = arith.subf %4, %23 : vector<32x128xf32>
    %cst_18 = arith.constant 9.99999974E-6 : f32
    %25 = vector.broadcast %cst_18 : f32 to vector<32x1xf32>
    %26 = arith.addf %22, %25 : vector<32x1xf32>
    %27 = math.rsqrt %26 : vector<32x1xf32>
    %28 = vector.broadcast %27 : vector<32x1xf32> to vector<32x128xf32>
    %29 = arith.mulf %24, %28 : vector<32x128xf32>
    %30 = vector.broadcast %9 : vector<1x128xf32> to vector<32x128xf32>
    %31 = arith.mulf %29, %30 : vector<32x128xf32>
    %32 = vector.broadcast %11 : vector<1x128xf32> to vector<32x128xf32>
    %33 = arith.addf %31, %32 : vector<32x128xf32>
    %34 = arith.truncf %33 : vector<32x128xf32> to vector<32x128xbf16>
    %c0_19 = arith.constant 0 : index
    %c0_20 = arith.constant 0 : index
    %c0_21 = arith.constant 0 : index
    %35 = vector.load %arg7[%c0_19, %c0_20, %c0_21] : memref<1x128x384xbf16, #tpu.memory_space<vmem>>, vector<1x128x384xbf16>
    %36 = vector.shape_cast %35 : vector<1x128x384xbf16> to vector<128x384xbf16>
    %cst_22 = arith.constant dense<0.000000e+00> : vector<32x384xf32>
    %37 = tpu.matmul %34, %36, %cst_22 {dimension_numbers = #tpu.dot_dimension_numbers<[1], [0], [0], [1], [0, 0, 1, 1], [], []>} : vector<32x128xbf16>, vector<128x384xbf16>, vector<32x384xf32> -> vector<32x384xf32>
    %38 = vector.extract_strided_slice %37 {offsets = [0, 0], sizes = [32, 128], strides = [1, 1]} : vector<32x384xf32> to vector<32x128xf32>
    %39 = vector.extract_strided_slice %37 {offsets = [0, 128], sizes = [32, 128], strides = [1, 1]} : vector<32x384xf32> to vector<32x128xf32>
    %40 = vector.extract_strided_slice %37 {offsets = [0, 256], sizes = [32, 128], strides = [1, 1]} : vector<32x384xf32> to vector<32x128xf32>
    %41 = vector.extract_strided_slice %38 {offsets = [0, 0], sizes = [16, 128], strides = [1, 1]} : vector<32x128xf32> to vector<16x128xf32>
    %42 = vector.extract_strided_slice %39 {offsets = [0, 0], sizes = [16, 128], strides = [1, 1]} : vector<32x128xf32> to vector<16x128xf32>
    %43 = vector.extract_strided_slice %40 {offsets = [0, 0], sizes = [16, 128], strides = [1, 1]} : vector<32x128xf32> to vector<16x128xf32>
    %44 = vector.extract_strided_slice %41 {offsets = [0, 0], sizes = [16, 32], strides = [1, 1]} : vector<16x128xf32> to vector<16x32xf32>
    %45 = arith.truncf %44 : vector<16x32xf32> to vector<16x32xbf16>
    %46 = vector.extract_strided_slice %42 {offsets = [0, 0], sizes = [16, 32], strides = [1, 1]} : vector<16x128xf32> to vector<16x32xf32>
    %47 = arith.truncf %46 : vector<16x32xf32> to vector<16x32xbf16>
    %cst_23 = arith.constant dense<0.000000e+00> : vector<16x16xf32>
    %48 = tpu.matmul %45, %47, %cst_23 {dimension_numbers = #tpu.dot_dimension_numbers<[1], [1], [0], [0], [0, 0, 1, 0], [], []>} : vector<16x32xbf16>, vector<16x32xbf16>, vector<16x16xf32> -> vector<16x16xf32>
    %49 = vector.extract_strided_slice %7 {offsets = [0, 0, 0], sizes = [1, 16, 16], strides = [1, 1, 1]} : vector<4x16x16xf32> to vector<1x16x16xf32>
    %50 = vector.shape_cast %49 : vector<1x16x16xf32> to vector<16x16xf32>
    %51 = arith.addf %48, %50 : vector<16x16xf32>
    %cst_24 = arith.constant dense<0xFF800000> : vector<16xf32>
    %52 = vector.multi_reduction <maximumf>, %51, %cst_24 [1] : vector<16x16xf32> to vector<16xf32>
    %53 = vector.shape_cast %52 : vector<16xf32> to vector<16x1xf32>
    %54 = vector.broadcast %53 : vector<16x1xf32> to vector<16x16xf32>
    %55 = arith.subf %51, %54 : vector<16x16xf32>
    %56 = math.exp %55 : vector<16x16xf32>
    %cst_25 = arith.constant dense<0.000000e+00> : vector<16xf32>
    %57 = vector.multi_reduction <add>, %56, %cst_25 [1] : vector<16x16xf32> to vector<16xf32>
    %58 = vector.shape_cast %57 : vector<16xf32> to vector<16x1xf32>
    %59 = vector.broadcast %58 : vector<16x1xf32> to vector<16x16xf32>
    %60 = arith.divf %56, %59 : vector<16x16xf32>
    %61 = arith.truncf %60 : vector<16x16xf32> to vector<16x16xbf16>
    %62 = vector.extract_strided_slice %43 {offsets = [0, 0], sizes = [16, 32], strides = [1, 1]} : vector<16x128xf32> to vector<16x32xf32>
    %63 = arith.truncf %62 : vector<16x32xf32> to vector<16x32xbf16>
    %cst_26 = arith.constant dense<0.000000e+00> : vector<16x32xf32>
    %64 = tpu.matmul %61, %63, %cst_26 {dimension_numbers = #tpu.dot_dimension_numbers<[1], [0], [0], [1], [0, 0, 1, 1], [], []>} : vector<16x16xbf16>, vector<16x32xbf16>, vector<16x32xf32> -> vector<16x32xf32>
    %65 = vector.extract_strided_slice %41 {offsets = [0, 32], sizes = [16, 32], strides = [1, 1]} : vector<16x128xf32> to vector<16x32xf32>
    %66 = arith.truncf %65 : vector<16x32xf32> to vector<16x32xbf16>
    %67 = vector.extract_strided_slice %42 {offsets = [0, 32], sizes = [16, 32], strides = [1, 1]} : vector<16x128xf32> to vector<16x32xf32>
    %68 = arith.truncf %67 : vector<16x32xf32> to vector<16x32xbf16>
    %cst_27 = arith.constant dense<0.000000e+00> : vector<16x16xf32>
    %69 = tpu.matmul %66, %68, %cst_27 {dimension_numbers = #tpu.dot_dimension_numbers<[1], [1], [0], [0], [0, 0, 1, 0], [], []>} : vector<16x32xbf16>, vector<16x32xbf16>, vector<16x16xf32> -> vector<16x16xf32>
    %70 = vector.extract_strided_slice %7 {offsets = [1, 0, 0], sizes = [1, 16, 16], strides = [1, 1, 1]} : vector<4x16x16xf32> to vector<1x16x16xf32>
    %71 = vector.shape_cast %70 : vector<1x16x16xf32> to vector<16x16xf32>
    %72 = arith.addf %69, %71 : vector<16x16xf32>
    %cst_28 = arith.constant dense<0xFF800000> : vector<16xf32>
    %73 = vector.multi_reduction <maximumf>, %72, %cst_28 [1] : vector<16x16xf32> to vector<16xf32>
    %74 = vector.shape_cast %73 : vector<16xf32> to vector<16x1xf32>
    %75 = vector.broadcast %74 : vector<16x1xf32> to vector<16x16xf32>
    %76 = arith.subf %72, %75 : vector<16x16xf32>
    %77 = math.exp %76 : vector<16x16xf32>
    %cst_29 = arith.constant dense<0.000000e+00> : vector<16xf32>
    %78 = vector.multi_reduction <add>, %77, %cst_29 [1] : vector<16x16xf32> to vector<16xf32>
    %79 = vector.shape_cast %78 : vector<16xf32> to vector<16x1xf32>
    %80 = vector.broadcast %79 : vector<16x1xf32> to vector<16x16xf32>
    %81 = arith.divf %77, %80 : vector<16x16xf32>
    %82 = arith.truncf %81 : vector<16x16xf32> to vector<16x16xbf16>
    %83 = vector.extract_strided_slice %43 {offsets = [0, 32], sizes = [16, 32], strides = [1, 1]} : vector<16x128xf32> to vector<16x32xf32>
    %84 = arith.truncf %83 : vector<16x32xf32> to vector<16x32xbf16>
    %cst_30 = arith.constant dense<0.000000e+00> : vector<16x32xf32>
    %85 = tpu.matmul %82, %84, %cst_30 {dimension_numbers = #tpu.dot_dimension_numbers<[1], [0], [0], [1], [0, 0, 1, 1], [], []>} : vector<16x16xbf16>, vector<16x32xbf16>, vector<16x32xf32> -> vector<16x32xf32>
    %86 = vector.extract_strided_slice %41 {offsets = [0, 64], sizes = [16, 32], strides = [1, 1]} : vector<16x128xf32> to vector<16x32xf32>
    %87 = arith.truncf %86 : vector<16x32xf32> to vector<16x32xbf16>
    %88 = vector.extract_strided_slice %42 {offsets = [0, 64], sizes = [16, 32], strides = [1, 1]} : vector<16x128xf32> to vector<16x32xf32>
    %89 = arith.truncf %88 : vector<16x32xf32> to vector<16x32xbf16>
    %cst_31 = arith.constant dense<0.000000e+00> : vector<16x16xf32>
    %90 = tpu.matmul %87, %89, %cst_31 {dimension_numbers = #tpu.dot_dimension_numbers<[1], [1], [0], [0], [0, 0, 1, 0], [], []>} : vector<16x32xbf16>, vector<16x32xbf16>, vector<16x16xf32> -> vector<16x16xf32>
    %91 = vector.extract_strided_slice %7 {offsets = [2, 0, 0], sizes = [1, 16, 16], strides = [1, 1, 1]} : vector<4x16x16xf32> to vector<1x16x16xf32>
    %92 = vector.shape_cast %91 : vector<1x16x16xf32> to vector<16x16xf32>
    %93 = arith.addf %90, %92 : vector<16x16xf32>
    %cst_32 = arith.constant dense<0xFF800000> : vector<16xf32>
    %94 = vector.multi_reduction <maximumf>, %93, %cst_32 [1] : vector<16x16xf32> to vector<16xf32>
    %95 = vector.shape_cast %94 : vector<16xf32> to vector<16x1xf32>
    %96 = vector.broadcast %95 : vector<16x1xf32> to vector<16x16xf32>
    %97 = arith.subf %93, %96 : vector<16x16xf32>
    %98 = math.exp %97 : vector<16x16xf32>
    %cst_33 = arith.constant dense<0.000000e+00> : vector<16xf32>
    %99 = vector.multi_reduction <add>, %98, %cst_33 [1] : vector<16x16xf32> to vector<16xf32>
    %100 = vector.shape_cast %99 : vector<16xf32> to vector<16x1xf32>
    %101 = vector.broadcast %100 : vector<16x1xf32> to vector<16x16xf32>
    %102 = arith.divf %98, %101 : vector<16x16xf32>
    %103 = arith.truncf %102 : vector<16x16xf32> to vector<16x16xbf16>
    %104 = vector.extract_strided_slice %43 {offsets = [0, 64], sizes = [16, 32], strides = [1, 1]} : vector<16x128xf32> to vector<16x32xf32>
    %105 = arith.truncf %104 : vector<16x32xf32> to vector<16x32xbf16>
    %cst_34 = arith.constant dense<0.000000e+00> : vector<16x32xf32>
    %106 = tpu.matmul %103, %105, %cst_34 {dimension_numbers = #tpu.dot_dimension_numbers<[1], [0], [0], [1], [0, 0, 1, 1], [], []>} : vector<16x16xbf16>, vector<16x32xbf16>, vector<16x32xf32> -> vector<16x32xf32>
    %107 = vector.extract_strided_slice %41 {offsets = [0, 96], sizes = [16, 32], strides = [1, 1]} : vector<16x128xf32> to vector<16x32xf32>
    %108 = arith.truncf %107 : vector<16x32xf32> to vector<16x32xbf16>
    %109 = vector.extract_strided_slice %42 {offsets = [0, 96], sizes = [16, 32], strides = [1, 1]} : vector<16x128xf32> to vector<16x32xf32>
    %110 = arith.truncf %109 : vector<16x32xf32> to vector<16x32xbf16>
    %cst_35 = arith.constant dense<0.000000e+00> : vector<16x16xf32>
    %111 = tpu.matmul %108, %110, %cst_35 {dimension_numbers = #tpu.dot_dimension_numbers<[1], [1], [0], [0], [0, 0, 1, 0], [], []>} : vector<16x32xbf16>, vector<16x32xbf16>, vector<16x16xf32> -> vector<16x16xf32>
    %112 = vector.extract_strided_slice %7 {offsets = [3, 0, 0], sizes = [1, 16, 16], strides = [1, 1, 1]} : vector<4x16x16xf32> to vector<1x16x16xf32>
    %113 = vector.shape_cast %112 : vector<1x16x16xf32> to vector<16x16xf32>
    %114 = arith.addf %111, %113 : vector<16x16xf32>
    %cst_36 = arith.constant dense<0xFF800000> : vector<16xf32>
    %115 = vector.multi_reduction <maximumf>, %114, %cst_36 [1] : vector<16x16xf32> to vector<16xf32>
    %116 = vector.shape_cast %115 : vector<16xf32> to vector<16x1xf32>
    %117 = vector.broadcast %116 : vector<16x1xf32> to vector<16x16xf32>
    %118 = arith.subf %114, %117 : vector<16x16xf32>
    %119 = math.exp %118 : vector<16x16xf32>
    %cst_37 = arith.constant dense<0.000000e+00> : vector<16xf32>
    %120 = vector.multi_reduction <add>, %119, %cst_37 [1] : vector<16x16xf32> to vector<16xf32>
    %121 = vector.shape_cast %120 : vector<16xf32> to vector<16x1xf32>
    %122 = vector.broadcast %121 : vector<16x1xf32> to vector<16x16xf32>
    %123 = arith.divf %119, %122 : vector<16x16xf32>
    %124 = arith.truncf %123 : vector<16x16xf32> to vector<16x16xbf16>
    %125 = vector.extract_strided_slice %43 {offsets = [0, 96], sizes = [16, 32], strides = [1, 1]} : vector<16x128xf32> to vector<16x32xf32>
    %126 = arith.truncf %125 : vector<16x32xf32> to vector<16x32xbf16>
    %cst_38 = arith.constant dense<0.000000e+00> : vector<16x32xf32>
    %127 = tpu.matmul %124, %126, %cst_38 {dimension_numbers = #tpu.dot_dimension_numbers<[1], [0], [0], [1], [0, 0, 1, 1], [], []>} : vector<16x16xbf16>, vector<16x32xbf16>, vector<16x32xf32> -> vector<16x32xf32>
    %128 = tpu.concatenate %64, %85, %106, %127 in 1 : vector<16x32xf32>, vector<16x32xf32>, vector<16x32xf32>, vector<16x32xf32> -> vector<16x128xf32>
    %129 = vector.extract_strided_slice %38 {offsets = [16, 0], sizes = [16, 128], strides = [1, 1]} : vector<32x128xf32> to vector<16x128xf32>
    %130 = vector.extract_strided_slice %39 {offsets = [16, 0], sizes = [16, 128], strides = [1, 1]} : vector<32x128xf32> to vector<16x128xf32>
    %131 = vector.extract_strided_slice %40 {offsets = [16, 0], sizes = [16, 128], strides = [1, 1]} : vector<32x128xf32> to vector<16x128xf32>
    %132 = vector.extract_strided_slice %129 {offsets = [0, 0], sizes = [16, 32], strides = [1, 1]} : vector<16x128xf32> to vector<16x32xf32>
    %133 = arith.truncf %132 : vector<16x32xf32> to vector<16x32xbf16>
    %134 = vector.extract_strided_slice %130 {offsets = [0, 0], sizes = [16, 32], strides = [1, 1]} : vector<16x128xf32> to vector<16x32xf32>
    %135 = arith.truncf %134 : vector<16x32xf32> to vector<16x32xbf16>
    %cst_39 = arith.constant dense<0.000000e+00> : vector<16x16xf32>
    %136 = tpu.matmul %133, %135, %cst_39 {dimension_numbers = #tpu.dot_dimension_numbers<[1], [1], [0], [0], [0, 0, 1, 0], [], []>} : vector<16x32xbf16>, vector<16x32xbf16>, vector<16x16xf32> -> vector<16x16xf32>
    %137 = vector.extract_strided_slice %7 {offsets = [0, 0, 0], sizes = [1, 16, 16], strides = [1, 1, 1]} : vector<4x16x16xf32> to vector<1x16x16xf32>
    %138 = vector.shape_cast %137 : vector<1x16x16xf32> to vector<16x16xf32>
    %139 = arith.addf %136, %138 : vector<16x16xf32>
    %cst_40 = arith.constant dense<0xFF800000> : vector<16xf32>
    %140 = vector.multi_reduction <maximumf>, %139, %cst_40 [1] : vector<16x16xf32> to vector<16xf32>
    %141 = vector.shape_cast %140 : vector<16xf32> to vector<16x1xf32>
    %142 = vector.broadcast %141 : vector<16x1xf32> to vector<16x16xf32>
    %143 = arith.subf %139, %142 : vector<16x16xf32>
    %144 = math.exp %143 : vector<16x16xf32>
    %cst_41 = arith.constant dense<0.000000e+00> : vector<16xf32>
    %145 = vector.multi_reduction <add>, %144, %cst_41 [1] : vector<16x16xf32> to vector<16xf32>
    %146 = vector.shape_cast %145 : vector<16xf32> to vector<16x1xf32>
    %147 = vector.broadcast %146 : vector<16x1xf32> to vector<16x16xf32>
    %148 = arith.divf %144, %147 : vector<16x16xf32>
    %149 = arith.truncf %148 : vector<16x16xf32> to vector<16x16xbf16>
    %150 = vector.extract_strided_slice %131 {offsets = [0, 0], sizes = [16, 32], strides = [1, 1]} : vector<16x128xf32> to vector<16x32xf32>
    %151 = arith.truncf %150 : vector<16x32xf32> to vector<16x32xbf16>
    %cst_42 = arith.constant dense<0.000000e+00> : vector<16x32xf32>
    %152 = tpu.matmul %149, %151, %cst_42 {dimension_numbers = #tpu.dot_dimension_numbers<[1], [0], [0], [1], [0, 0, 1, 1], [], []>} : vector<16x16xbf16>, vector<16x32xbf16>, vector<16x32xf32> -> vector<16x32xf32>
    %153 = vector.extract_strided_slice %129 {offsets = [0, 32], sizes = [16, 32], strides = [1, 1]} : vector<16x128xf32> to vector<16x32xf32>
    %154 = arith.truncf %153 : vector<16x32xf32> to vector<16x32xbf16>
    %155 = vector.extract_strided_slice %130 {offsets = [0, 32], sizes = [16, 32], strides = [1, 1]} : vector<16x128xf32> to vector<16x32xf32>
    %156 = arith.truncf %155 : vector<16x32xf32> to vector<16x32xbf16>
    %cst_43 = arith.constant dense<0.000000e+00> : vector<16x16xf32>
    %157 = tpu.matmul %154, %156, %cst_43 {dimension_numbers = #tpu.dot_dimension_numbers<[1], [1], [0], [0], [0, 0, 1, 0], [], []>} : vector<16x32xbf16>, vector<16x32xbf16>, vector<16x16xf32> -> vector<16x16xf32>
    %158 = vector.extract_strided_slice %7 {offsets = [1, 0, 0], sizes = [1, 16, 16], strides = [1, 1, 1]} : vector<4x16x16xf32> to vector<1x16x16xf32>
    %159 = vector.shape_cast %158 : vector<1x16x16xf32> to vector<16x16xf32>
    %160 = arith.addf %157, %159 : vector<16x16xf32>
    %cst_44 = arith.constant dense<0xFF800000> : vector<16xf32>
    %161 = vector.multi_reduction <maximumf>, %160, %cst_44 [1] : vector<16x16xf32> to vector<16xf32>
    %162 = vector.shape_cast %161 : vector<16xf32> to vector<16x1xf32>
    %163 = vector.broadcast %162 : vector<16x1xf32> to vector<16x16xf32>
    %164 = arith.subf %160, %163 : vector<16x16xf32>
    %165 = math.exp %164 : vector<16x16xf32>
    %cst_45 = arith.constant dense<0.000000e+00> : vector<16xf32>
    %166 = vector.multi_reduction <add>, %165, %cst_45 [1] : vector<16x16xf32> to vector<16xf32>
    %167 = vector.shape_cast %166 : vector<16xf32> to vector<16x1xf32>
    %168 = vector.broadcast %167 : vector<16x1xf32> to vector<16x16xf32>
    %169 = arith.divf %165, %168 : vector<16x16xf32>
    %170 = arith.truncf %169 : vector<16x16xf32> to vector<16x16xbf16>
    %171 = vector.extract_strided_slice %131 {offsets = [0, 32], sizes = [16, 32], strides = [1, 1]} : vector<16x128xf32> to vector<16x32xf32>
    %172 = arith.truncf %171 : vector<16x32xf32> to vector<16x32xbf16>
    %cst_46 = arith.constant dense<0.000000e+00> : vector<16x32xf32>
    %173 = tpu.matmul %170, %172, %cst_46 {dimension_numbers = #tpu.dot_dimension_numbers<[1], [0], [0], [1], [0, 0, 1, 1], [], []>} : vector<16x16xbf16>, vector<16x32xbf16>, vector<16x32xf32> -> vector<16x32xf32>
    %174 = vector.extract_strided_slice %129 {offsets = [0, 64], sizes = [16, 32], strides = [1, 1]} : vector<16x128xf32> to vector<16x32xf32>
    %175 = arith.truncf %174 : vector<16x32xf32> to vector<16x32xbf16>
    %176 = vector.extract_strided_slice %130 {offsets = [0, 64], sizes = [16, 32], strides = [1, 1]} : vector<16x128xf32> to vector<16x32xf32>
    %177 = arith.truncf %176 : vector<16x32xf32> to vector<16x32xbf16>
    %cst_47 = arith.constant dense<0.000000e+00> : vector<16x16xf32>
    %178 = tpu.matmul %175, %177, %cst_47 {dimension_numbers = #tpu.dot_dimension_numbers<[1], [1], [0], [0], [0, 0, 1, 0], [], []>} : vector<16x32xbf16>, vector<16x32xbf16>, vector<16x16xf32> -> vector<16x16xf32>
    %179 = vector.extract_strided_slice %7 {offsets = [2, 0, 0], sizes = [1, 16, 16], strides = [1, 1, 1]} : vector<4x16x16xf32> to vector<1x16x16xf32>
    %180 = vector.shape_cast %179 : vector<1x16x16xf32> to vector<16x16xf32>
    %181 = arith.addf %178, %180 : vector<16x16xf32>
    %cst_48 = arith.constant dense<0xFF800000> : vector<16xf32>
    %182 = vector.multi_reduction <maximumf>, %181, %cst_48 [1] : vector<16x16xf32> to vector<16xf32>
    %183 = vector.shape_cast %182 : vector<16xf32> to vector<16x1xf32>
    %184 = vector.broadcast %183 : vector<16x1xf32> to vector<16x16xf32>
    %185 = arith.subf %181, %184 : vector<16x16xf32>
    %186 = math.exp %185 : vector<16x16xf32>
    %cst_49 = arith.constant dense<0.000000e+00> : vector<16xf32>
    %187 = vector.multi_reduction <add>, %186, %cst_49 [1] : vector<16x16xf32> to vector<16xf32>
    %188 = vector.shape_cast %187 : vector<16xf32> to vector<16x1xf32>
    %189 = vector.broadcast %188 : vector<16x1xf32> to vector<16x16xf32>
    %190 = arith.divf %186, %189 : vector<16x16xf32>
    %191 = arith.truncf %190 : vector<16x16xf32> to vector<16x16xbf16>
    %192 = vector.extract_strided_slice %131 {offsets = [0, 64], sizes = [16, 32], strides = [1, 1]} : vector<16x128xf32> to vector<16x32xf32>
    %193 = arith.truncf %192 : vector<16x32xf32> to vector<16x32xbf16>
    %cst_50 = arith.constant dense<0.000000e+00> : vector<16x32xf32>
    %194 = tpu.matmul %191, %193, %cst_50 {dimension_numbers = #tpu.dot_dimension_numbers<[1], [0], [0], [1], [0, 0, 1, 1], [], []>} : vector<16x16xbf16>, vector<16x32xbf16>, vector<16x32xf32> -> vector<16x32xf32>
    %195 = vector.extract_strided_slice %129 {offsets = [0, 96], sizes = [16, 32], strides = [1, 1]} : vector<16x128xf32> to vector<16x32xf32>
    %196 = arith.truncf %195 : vector<16x32xf32> to vector<16x32xbf16>
    %197 = vector.extract_strided_slice %130 {offsets = [0, 96], sizes = [16, 32], strides = [1, 1]} : vector<16x128xf32> to vector<16x32xf32>
    %198 = arith.truncf %197 : vector<16x32xf32> to vector<16x32xbf16>
    %cst_51 = arith.constant dense<0.000000e+00> : vector<16x16xf32>
    %199 = tpu.matmul %196, %198, %cst_51 {dimension_numbers = #tpu.dot_dimension_numbers<[1], [1], [0], [0], [0, 0, 1, 0], [], []>} : vector<16x32xbf16>, vector<16x32xbf16>, vector<16x16xf32> -> vector<16x16xf32>
    %200 = vector.extract_strided_slice %7 {offsets = [3, 0, 0], sizes = [1, 16, 16], strides = [1, 1, 1]} : vector<4x16x16xf32> to vector<1x16x16xf32>
    %201 = vector.shape_cast %200 : vector<1x16x16xf32> to vector<16x16xf32>
    %202 = arith.addf %199, %201 : vector<16x16xf32>
    %cst_52 = arith.constant dense<0xFF800000> : vector<16xf32>
    %203 = vector.multi_reduction <maximumf>, %202, %cst_52 [1] : vector<16x16xf32> to vector<16xf32>
    %204 = vector.shape_cast %203 : vector<16xf32> to vector<16x1xf32>
    %205 = vector.broadcast %204 : vector<16x1xf32> to vector<16x16xf32>
    %206 = arith.subf %202, %205 : vector<16x16xf32>
    %207 = math.exp %206 : vector<16x16xf32>
    %cst_53 = arith.constant dense<0.000000e+00> : vector<16xf32>
    %208 = vector.multi_reduction <add>, %207, %cst_53 [1] : vector<16x16xf32> to vector<16xf32>
    %209 = vector.shape_cast %208 : vector<16xf32> to vector<16x1xf32>
    %210 = vector.broadcast %209 : vector<16x1xf32> to vector<16x16xf32>
    %211 = arith.divf %207, %210 : vector<16x16xf32>
    %212 = arith.truncf %211 : vector<16x16xf32> to vector<16x16xbf16>
    %213 = vector.extract_strided_slice %131 {offsets = [0, 96], sizes = [16, 32], strides = [1, 1]} : vector<16x128xf32> to vector<16x32xf32>
    %214 = arith.truncf %213 : vector<16x32xf32> to vector<16x32xbf16>
    %cst_54 = arith.constant dense<0.000000e+00> : vector<16x32xf32>
    %215 = tpu.matmul %212, %214, %cst_54 {dimension_numbers = #tpu.dot_dimension_numbers<[1], [0], [0], [1], [0, 0, 1, 1], [], []>} : vector<16x16xbf16>, vector<16x32xbf16>, vector<16x32xf32> -> vector<16x32xf32>
    %216 = tpu.concatenate %152, %173, %194, %215 in 1 : vector<16x32xf32>, vector<16x32xf32>, vector<16x32xf32>, vector<16x32xf32> -> vector<16x128xf32>
    %217 = tpu.concatenate %128, %216 in 0 : vector<16x128xf32>, vector<16x128xf32> -> vector<32x128xf32>
    %218 = arith.truncf %217 : vector<32x128xf32> to vector<32x128xbf16>
    %c0_55 = arith.constant 0 : index
    %c0_56 = arith.constant 0 : index
    %c0_57 = arith.constant 0 : index
    %219 = vector.load %arg8[%c0_55, %c0_56, %c0_57] : memref<1x128x128xbf16, #tpu.memory_space<vmem>>, vector<1x128x128xbf16>
    %220 = vector.shape_cast %219 : vector<1x128x128xbf16> to vector<128x128xbf16>
    %cst_58 = arith.constant dense<0.000000e+00> : vector<32x128xf32>
    %221 = tpu.matmul %218, %220, %cst_58 {dimension_numbers = #tpu.dot_dimension_numbers<[1], [0], [0], [1], [0, 0, 1, 1], [], []>} : vector<32x128xbf16>, vector<128x128xbf16>, vector<32x128xf32> -> vector<32x128xf32>
    %c0_59 = arith.constant 0 : index
    %c0_60 = arith.constant 0 : index
    %c0_61 = arith.constant 0 : index
    %222 = vector.load %arg9[%c0_59, %c0_60, %c0_61] : memref<1x1x128xf32, #tpu.memory_space<vmem>>, vector<1x1x128xf32>
    %223 = vector.shape_cast %222 : vector<1x1x128xf32> to vector<1x128xf32>
    %224 = vector.broadcast %223 : vector<1x128xf32> to vector<32x128xf32>
    %225 = arith.addf %221, %224 : vector<32x128xf32>
    %226 = arith.addf %4, %225 : vector<32x128xf32>
    %c0_62 = arith.constant 0 : index
    %c0_63 = arith.constant 0 : index
    %c0_64 = arith.constant 0 : index
    %227 = vector.load %arg10[%c0_62, %c0_63, %c0_64] : memref<1x1x128xf32, #tpu.memory_space<vmem>>, vector<1x1x128xf32>
    %228 = vector.shape_cast %227 : vector<1x1x128xf32> to vector<1x128xf32>
    %c0_65 = arith.constant 0 : index
    %c0_66 = arith.constant 0 : index
    %c0_67 = arith.constant 0 : index
    %229 = vector.load %arg11[%c0_65, %c0_66, %c0_67] : memref<1x1x128xf32, #tpu.memory_space<vmem>>, vector<1x1x128xf32>
    %230 = vector.shape_cast %229 : vector<1x1x128xf32> to vector<1x128xf32>
    %cst_68 = arith.constant dense<0.000000e+00> : vector<32xf32>
    %231 = vector.multi_reduction <add>, %226, %cst_68 [1] : vector<32x128xf32> to vector<32xf32>
    %232 = vector.shape_cast %231 : vector<32xf32> to vector<32x1xf32>
    %cst_69 = arith.constant 1.280000e+02 : f32
    %233 = vector.broadcast %cst_69 : f32 to vector<32x1xf32>
    %234 = arith.divf %232, %233 : vector<32x1xf32>
    %235 = vector.broadcast %234 : vector<32x1xf32> to vector<32x128xf32>
    %236 = arith.subf %226, %235 : vector<32x128xf32>
    %237 = arith.mulf %236, %236 : vector<32x128xf32>
    %cst_70 = arith.constant dense<0.000000e+00> : vector<32xf32>
    %238 = vector.multi_reduction <add>, %237, %cst_70 [1] : vector<32x128xf32> to vector<32xf32>
    %239 = vector.shape_cast %238 : vector<32xf32> to vector<32x1xf32>
    %cst_71 = arith.constant 1.280000e+02 : f32
    %240 = vector.broadcast %cst_71 : f32 to vector<32x1xf32>
    %241 = arith.divf %239, %240 : vector<32x1xf32>
    %242 = vector.broadcast %234 : vector<32x1xf32> to vector<32x128xf32>
    %243 = arith.subf %226, %242 : vector<32x128xf32>
    %cst_72 = arith.constant 9.99999974E-6 : f32
    %244 = vector.broadcast %cst_72 : f32 to vector<32x1xf32>
    %245 = arith.addf %241, %244 : vector<32x1xf32>
    %246 = math.rsqrt %245 : vector<32x1xf32>
    %247 = vector.broadcast %246 : vector<32x1xf32> to vector<32x128xf32>
    %248 = arith.mulf %243, %247 : vector<32x128xf32>
    %249 = vector.broadcast %228 : vector<1x128xf32> to vector<32x128xf32>
    %250 = arith.mulf %248, %249 : vector<32x128xf32>
    %251 = vector.broadcast %230 : vector<1x128xf32> to vector<32x128xf32>
    %252 = arith.addf %250, %251 : vector<32x128xf32>
    %c0_73 = arith.constant 0 : index
    %c0_74 = arith.constant 0 : index
    %c0_75 = arith.constant 0 : index
    %253 = vector.load %arg10[%c0_73, %c0_74, %c0_75] : memref<1x1x128xf32, #tpu.memory_space<vmem>>, vector<1x1x128xf32>
    %254 = vector.shape_cast %253 : vector<1x1x128xf32> to vector<1x128xf32>
    %c0_76 = arith.constant 0 : index
    %c0_77 = arith.constant 0 : index
    %c0_78 = arith.constant 0 : index
    %255 = vector.load %arg11[%c0_76, %c0_77, %c0_78] : memref<1x1x128xf32, #tpu.memory_space<vmem>>, vector<1x1x128xf32>
    %256 = vector.shape_cast %255 : vector<1x1x128xf32> to vector<1x128xf32>
    %cst_79 = arith.constant dense<0.000000e+00> : vector<32xf32>
    %257 = vector.multi_reduction <add>, %6, %cst_79 [1] : vector<32x128xf32> to vector<32xf32>
    %258 = vector.shape_cast %257 : vector<32xf32> to vector<32x1xf32>
    %cst_80 = arith.constant 1.280000e+02 : f32
    %259 = vector.broadcast %cst_80 : f32 to vector<32x1xf32>
    %260 = arith.divf %258, %259 : vector<32x1xf32>
    %261 = vector.broadcast %260 : vector<32x1xf32> to vector<32x128xf32>
    %262 = arith.subf %6, %261 : vector<32x128xf32>
    %263 = arith.mulf %262, %262 : vector<32x128xf32>
    %cst_81 = arith.constant dense<0.000000e+00> : vector<32xf32>
    %264 = vector.multi_reduction <add>, %263, %cst_81 [1] : vector<32x128xf32> to vector<32xf32>
    %265 = vector.shape_cast %264 : vector<32xf32> to vector<32x1xf32>
    %cst_82 = arith.constant 1.280000e+02 : f32
    %266 = vector.broadcast %cst_82 : f32 to vector<32x1xf32>
    %267 = arith.divf %265, %266 : vector<32x1xf32>
    %268 = vector.broadcast %260 : vector<32x1xf32> to vector<32x128xf32>
    %269 = arith.subf %6, %268 : vector<32x128xf32>
    %cst_83 = arith.constant 9.99999974E-6 : f32
    %270 = vector.broadcast %cst_83 : f32 to vector<32x1xf32>
    %271 = arith.addf %267, %270 : vector<32x1xf32>
    %272 = math.rsqrt %271 : vector<32x1xf32>
    %273 = vector.broadcast %272 : vector<32x1xf32> to vector<32x128xf32>
    %274 = arith.mulf %269, %273 : vector<32x128xf32>
    %275 = vector.broadcast %254 : vector<1x128xf32> to vector<32x128xf32>
    %276 = arith.mulf %274, %275 : vector<32x128xf32>
    %277 = vector.broadcast %256 : vector<1x128xf32> to vector<32x128xf32>
    %278 = arith.addf %276, %277 : vector<32x128xf32>
    %279 = arith.truncf %252 : vector<32x128xf32> to vector<32x128xbf16>
    %c0_84 = arith.constant 0 : index
    %c0_85 = arith.constant 0 : index
    %c0_86 = arith.constant 0 : index
    %280 = vector.load %arg12[%c0_84, %c0_85, %c0_86] : memref<1x128x128xbf16, #tpu.memory_space<vmem>>, vector<1x128x128xbf16>
    %281 = vector.shape_cast %280 : vector<1x128x128xbf16> to vector<128x128xbf16>
    %cst_87 = arith.constant dense<0.000000e+00> : vector<32x128xf32>
    %282 = tpu.matmul %279, %281, %cst_87 {dimension_numbers = #tpu.dot_dimension_numbers<[1], [0], [0], [1], [0, 0, 1, 1], [], []>} : vector<32x128xbf16>, vector<128x128xbf16>, vector<32x128xf32> -> vector<32x128xf32>
    %283 = arith.truncf %278 : vector<32x128xf32> to vector<32x128xbf16>
    %c0_88 = arith.constant 0 : index
    %c0_89 = arith.constant 0 : index
    %c0_90 = arith.constant 0 : index
    %284 = vector.load %arg13[%c0_88, %c0_89, %c0_90] : memref<1x128x256xbf16, #tpu.memory_space<vmem>>, vector<1x128x256xbf16>
    %285 = vector.shape_cast %284 : vector<1x128x256xbf16> to vector<128x256xbf16>
    %cst_91 = arith.constant dense<0.000000e+00> : vector<32x256xf32>
    %286 = tpu.matmul %283, %285, %cst_91 {dimension_numbers = #tpu.dot_dimension_numbers<[1], [0], [0], [1], [0, 0, 1, 1], [], []>} : vector<32x128xbf16>, vector<128x256xbf16>, vector<32x256xf32> -> vector<32x256xf32>
    %287 = vector.extract_strided_slice %286 {offsets = [0, 0], sizes = [32, 128], strides = [1, 1]} : vector<32x256xf32> to vector<32x128xf32>
    %288 = vector.extract_strided_slice %286 {offsets = [0, 128], sizes = [32, 128], strides = [1, 1]} : vector<32x256xf32> to vector<32x128xf32>
    %289 = vector.extract_strided_slice %282 {offsets = [0, 0], sizes = [16, 128], strides = [1, 1]} : vector<32x128xf32> to vector<16x128xf32>
    %290 = vector.extract_strided_slice %287 {offsets = [0, 0], sizes = [16, 128], strides = [1, 1]} : vector<32x128xf32> to vector<16x128xf32>
    %291 = vector.extract_strided_slice %288 {offsets = [0, 0], sizes = [16, 128], strides = [1, 1]} : vector<32x128xf32> to vector<16x128xf32>
    %292 = vector.extract_strided_slice %289 {offsets = [0, 0], sizes = [16, 32], strides = [1, 1]} : vector<16x128xf32> to vector<16x32xf32>
    %293 = arith.truncf %292 : vector<16x32xf32> to vector<16x32xbf16>
    %294 = vector.extract_strided_slice %290 {offsets = [0, 0], sizes = [16, 32], strides = [1, 1]} : vector<16x128xf32> to vector<16x32xf32>
    %295 = arith.truncf %294 : vector<16x32xf32> to vector<16x32xbf16>
    %cst_92 = arith.constant dense<0.000000e+00> : vector<16x16xf32>
    %296 = tpu.matmul %293, %295, %cst_92 {dimension_numbers = #tpu.dot_dimension_numbers<[1], [1], [0], [0], [0, 0, 1, 0], [], []>} : vector<16x32xbf16>, vector<16x32xbf16>, vector<16x16xf32> -> vector<16x16xf32>
    %297 = vector.extract_strided_slice %7 {offsets = [0, 0, 0], sizes = [1, 16, 16], strides = [1, 1, 1]} : vector<4x16x16xf32> to vector<1x16x16xf32>
    %298 = vector.shape_cast %297 : vector<1x16x16xf32> to vector<16x16xf32>
    %299 = arith.addf %296, %298 : vector<16x16xf32>
    %cst_93 = arith.constant dense<0xFF800000> : vector<16xf32>
    %300 = vector.multi_reduction <maximumf>, %299, %cst_93 [1] : vector<16x16xf32> to vector<16xf32>
    %301 = vector.shape_cast %300 : vector<16xf32> to vector<16x1xf32>
    %302 = vector.broadcast %301 : vector<16x1xf32> to vector<16x16xf32>
    %303 = arith.subf %299, %302 : vector<16x16xf32>
    %304 = math.exp %303 : vector<16x16xf32>
    %cst_94 = arith.constant dense<0.000000e+00> : vector<16xf32>
    %305 = vector.multi_reduction <add>, %304, %cst_94 [1] : vector<16x16xf32> to vector<16xf32>
    %306 = vector.shape_cast %305 : vector<16xf32> to vector<16x1xf32>
    %307 = vector.broadcast %306 : vector<16x1xf32> to vector<16x16xf32>
    %308 = arith.divf %304, %307 : vector<16x16xf32>
    %309 = arith.truncf %308 : vector<16x16xf32> to vector<16x16xbf16>
    %310 = vector.extract_strided_slice %291 {offsets = [0, 0], sizes = [16, 32], strides = [1, 1]} : vector<16x128xf32> to vector<16x32xf32>
    %311 = arith.truncf %310 : vector<16x32xf32> to vector<16x32xbf16>
    %cst_95 = arith.constant dense<0.000000e+00> : vector<16x32xf32>
    %312 = tpu.matmul %309, %311, %cst_95 {dimension_numbers = #tpu.dot_dimension_numbers<[1], [0], [0], [1], [0, 0, 1, 1], [], []>} : vector<16x16xbf16>, vector<16x32xbf16>, vector<16x32xf32> -> vector<16x32xf32>
    %313 = vector.extract_strided_slice %289 {offsets = [0, 32], sizes = [16, 32], strides = [1, 1]} : vector<16x128xf32> to vector<16x32xf32>
    %314 = arith.truncf %313 : vector<16x32xf32> to vector<16x32xbf16>
    %315 = vector.extract_strided_slice %290 {offsets = [0, 32], sizes = [16, 32], strides = [1, 1]} : vector<16x128xf32> to vector<16x32xf32>
    %316 = arith.truncf %315 : vector<16x32xf32> to vector<16x32xbf16>
    %cst_96 = arith.constant dense<0.000000e+00> : vector<16x16xf32>
    %317 = tpu.matmul %314, %316, %cst_96 {dimension_numbers = #tpu.dot_dimension_numbers<[1], [1], [0], [0], [0, 0, 1, 0], [], []>} : vector<16x32xbf16>, vector<16x32xbf16>, vector<16x16xf32> -> vector<16x16xf32>
    %318 = vector.extract_strided_slice %7 {offsets = [1, 0, 0], sizes = [1, 16, 16], strides = [1, 1, 1]} : vector<4x16x16xf32> to vector<1x16x16xf32>
    %319 = vector.shape_cast %318 : vector<1x16x16xf32> to vector<16x16xf32>
    %320 = arith.addf %317, %319 : vector<16x16xf32>
    %cst_97 = arith.constant dense<0xFF800000> : vector<16xf32>
    %321 = vector.multi_reduction <maximumf>, %320, %cst_97 [1] : vector<16x16xf32> to vector<16xf32>
    %322 = vector.shape_cast %321 : vector<16xf32> to vector<16x1xf32>
    %323 = vector.broadcast %322 : vector<16x1xf32> to vector<16x16xf32>
    %324 = arith.subf %320, %323 : vector<16x16xf32>
    %325 = math.exp %324 : vector<16x16xf32>
    %cst_98 = arith.constant dense<0.000000e+00> : vector<16xf32>
    %326 = vector.multi_reduction <add>, %325, %cst_98 [1] : vector<16x16xf32> to vector<16xf32>
    %327 = vector.shape_cast %326 : vector<16xf32> to vector<16x1xf32>
    %328 = vector.broadcast %327 : vector<16x1xf32> to vector<16x16xf32>
    %329 = arith.divf %325, %328 : vector<16x16xf32>
    %330 = arith.truncf %329 : vector<16x16xf32> to vector<16x16xbf16>
    %331 = vector.extract_strided_slice %291 {offsets = [0, 32], sizes = [16, 32], strides = [1, 1]} : vector<16x128xf32> to vector<16x32xf32>
    %332 = arith.truncf %331 : vector<16x32xf32> to vector<16x32xbf16>
    %cst_99 = arith.constant dense<0.000000e+00> : vector<16x32xf32>
    %333 = tpu.matmul %330, %332, %cst_99 {dimension_numbers = #tpu.dot_dimension_numbers<[1], [0], [0], [1], [0, 0, 1, 1], [], []>} : vector<16x16xbf16>, vector<16x32xbf16>, vector<16x32xf32> -> vector<16x32xf32>
    %334 = vector.extract_strided_slice %289 {offsets = [0, 64], sizes = [16, 32], strides = [1, 1]} : vector<16x128xf32> to vector<16x32xf32>
    %335 = arith.truncf %334 : vector<16x32xf32> to vector<16x32xbf16>
    %336 = vector.extract_strided_slice %290 {offsets = [0, 64], sizes = [16, 32], strides = [1, 1]} : vector<16x128xf32> to vector<16x32xf32>
    %337 = arith.truncf %336 : vector<16x32xf32> to vector<16x32xbf16>
    %cst_100 = arith.constant dense<0.000000e+00> : vector<16x16xf32>
    %338 = tpu.matmul %335, %337, %cst_100 {dimension_numbers = #tpu.dot_dimension_numbers<[1], [1], [0], [0], [0, 0, 1, 0], [], []>} : vector<16x32xbf16>, vector<16x32xbf16>, vector<16x16xf32> -> vector<16x16xf32>
    %339 = vector.extract_strided_slice %7 {offsets = [2, 0, 0], sizes = [1, 16, 16], strides = [1, 1, 1]} : vector<4x16x16xf32> to vector<1x16x16xf32>
    %340 = vector.shape_cast %339 : vector<1x16x16xf32> to vector<16x16xf32>
    %341 = arith.addf %338, %340 : vector<16x16xf32>
    %cst_101 = arith.constant dense<0xFF800000> : vector<16xf32>
    %342 = vector.multi_reduction <maximumf>, %341, %cst_101 [1] : vector<16x16xf32> to vector<16xf32>
    %343 = vector.shape_cast %342 : vector<16xf32> to vector<16x1xf32>
    %344 = vector.broadcast %343 : vector<16x1xf32> to vector<16x16xf32>
    %345 = arith.subf %341, %344 : vector<16x16xf32>
    %346 = math.exp %345 : vector<16x16xf32>
    %cst_102 = arith.constant dense<0.000000e+00> : vector<16xf32>
    %347 = vector.multi_reduction <add>, %346, %cst_102 [1] : vector<16x16xf32> to vector<16xf32>
    %348 = vector.shape_cast %347 : vector<16xf32> to vector<16x1xf32>
    %349 = vector.broadcast %348 : vector<16x1xf32> to vector<16x16xf32>
    %350 = arith.divf %346, %349 : vector<16x16xf32>
    %351 = arith.truncf %350 : vector<16x16xf32> to vector<16x16xbf16>
    %352 = vector.extract_strided_slice %291 {offsets = [0, 64], sizes = [16, 32], strides = [1, 1]} : vector<16x128xf32> to vector<16x32xf32>
    %353 = arith.truncf %352 : vector<16x32xf32> to vector<16x32xbf16>
    %cst_103 = arith.constant dense<0.000000e+00> : vector<16x32xf32>
    %354 = tpu.matmul %351, %353, %cst_103 {dimension_numbers = #tpu.dot_dimension_numbers<[1], [0], [0], [1], [0, 0, 1, 1], [], []>} : vector<16x16xbf16>, vector<16x32xbf16>, vector<16x32xf32> -> vector<16x32xf32>
    %355 = vector.extract_strided_slice %289 {offsets = [0, 96], sizes = [16, 32], strides = [1, 1]} : vector<16x128xf32> to vector<16x32xf32>
    %356 = arith.truncf %355 : vector<16x32xf32> to vector<16x32xbf16>
    %357 = vector.extract_strided_slice %290 {offsets = [0, 96], sizes = [16, 32], strides = [1, 1]} : vector<16x128xf32> to vector<16x32xf32>
    %358 = arith.truncf %357 : vector<16x32xf32> to vector<16x32xbf16>
    %cst_104 = arith.constant dense<0.000000e+00> : vector<16x16xf32>
    %359 = tpu.matmul %356, %358, %cst_104 {dimension_numbers = #tpu.dot_dimension_numbers<[1], [1], [0], [0], [0, 0, 1, 0], [], []>} : vector<16x32xbf16>, vector<16x32xbf16>, vector<16x16xf32> -> vector<16x16xf32>
    %360 = vector.extract_strided_slice %7 {offsets = [3, 0, 0], sizes = [1, 16, 16], strides = [1, 1, 1]} : vector<4x16x16xf32> to vector<1x16x16xf32>
    %361 = vector.shape_cast %360 : vector<1x16x16xf32> to vector<16x16xf32>
    %362 = arith.addf %359, %361 : vector<16x16xf32>
    %cst_105 = arith.constant dense<0xFF800000> : vector<16xf32>
    %363 = vector.multi_reduction <maximumf>, %362, %cst_105 [1] : vector<16x16xf32> to vector<16xf32>
    %364 = vector.shape_cast %363 : vector<16xf32> to vector<16x1xf32>
    %365 = vector.broadcast %364 : vector<16x1xf32> to vector<16x16xf32>
    %366 = arith.subf %362, %365 : vector<16x16xf32>
    %367 = math.exp %366 : vector<16x16xf32>
    %cst_106 = arith.constant dense<0.000000e+00> : vector<16xf32>
    %368 = vector.multi_reduction <add>, %367, %cst_106 [1] : vector<16x16xf32> to vector<16xf32>
    %369 = vector.shape_cast %368 : vector<16xf32> to vector<16x1xf32>
    %370 = vector.broadcast %369 : vector<16x1xf32> to vector<16x16xf32>
    %371 = arith.divf %367, %370 : vector<16x16xf32>
    %372 = arith.truncf %371 : vector<16x16xf32> to vector<16x16xbf16>
    %373 = vector.extract_strided_slice %291 {offsets = [0, 96], sizes = [16, 32], strides = [1, 1]} : vector<16x128xf32> to vector<16x32xf32>
    %374 = arith.truncf %373 : vector<16x32xf32> to vector<16x32xbf16>
    %cst_107 = arith.constant dense<0.000000e+00> : vector<16x32xf32>
    %375 = tpu.matmul %372, %374, %cst_107 {dimension_numbers = #tpu.dot_dimension_numbers<[1], [0], [0], [1], [0, 0, 1, 1], [], []>} : vector<16x16xbf16>, vector<16x32xbf16>, vector<16x32xf32> -> vector<16x32xf32>
    %376 = tpu.concatenate %312, %333, %354, %375 in 1 : vector<16x32xf32>, vector<16x32xf32>, vector<16x32xf32>, vector<16x32xf32> -> vector<16x128xf32>
    %377 = vector.extract_strided_slice %282 {offsets = [16, 0], sizes = [16, 128], strides = [1, 1]} : vector<32x128xf32> to vector<16x128xf32>
    %378 = vector.extract_strided_slice %287 {offsets = [16, 0], sizes = [16, 128], strides = [1, 1]} : vector<32x128xf32> to vector<16x128xf32>
    %379 = vector.extract_strided_slice %288 {offsets = [16, 0], sizes = [16, 128], strides = [1, 1]} : vector<32x128xf32> to vector<16x128xf32>
    %380 = vector.extract_strided_slice %377 {offsets = [0, 0], sizes = [16, 32], strides = [1, 1]} : vector<16x128xf32> to vector<16x32xf32>
    %381 = arith.truncf %380 : vector<16x32xf32> to vector<16x32xbf16>
    %382 = vector.extract_strided_slice %378 {offsets = [0, 0], sizes = [16, 32], strides = [1, 1]} : vector<16x128xf32> to vector<16x32xf32>
    %383 = arith.truncf %382 : vector<16x32xf32> to vector<16x32xbf16>
    %cst_108 = arith.constant dense<0.000000e+00> : vector<16x16xf32>
    %384 = tpu.matmul %381, %383, %cst_108 {dimension_numbers = #tpu.dot_dimension_numbers<[1], [1], [0], [0], [0, 0, 1, 0], [], []>} : vector<16x32xbf16>, vector<16x32xbf16>, vector<16x16xf32> -> vector<16x16xf32>
    %385 = vector.extract_strided_slice %7 {offsets = [0, 0, 0], sizes = [1, 16, 16], strides = [1, 1, 1]} : vector<4x16x16xf32> to vector<1x16x16xf32>
    %386 = vector.shape_cast %385 : vector<1x16x16xf32> to vector<16x16xf32>
    %387 = arith.addf %384, %386 : vector<16x16xf32>
    %cst_109 = arith.constant dense<0xFF800000> : vector<16xf32>
    %388 = vector.multi_reduction <maximumf>, %387, %cst_109 [1] : vector<16x16xf32> to vector<16xf32>
    %389 = vector.shape_cast %388 : vector<16xf32> to vector<16x1xf32>
    %390 = vector.broadcast %389 : vector<16x1xf32> to vector<16x16xf32>
    %391 = arith.subf %387, %390 : vector<16x16xf32>
    %392 = math.exp %391 : vector<16x16xf32>
    %cst_110 = arith.constant dense<0.000000e+00> : vector<16xf32>
    %393 = vector.multi_reduction <add>, %392, %cst_110 [1] : vector<16x16xf32> to vector<16xf32>
    %394 = vector.shape_cast %393 : vector<16xf32> to vector<16x1xf32>
    %395 = vector.broadcast %394 : vector<16x1xf32> to vector<16x16xf32>
    %396 = arith.divf %392, %395 : vector<16x16xf32>
    %397 = arith.truncf %396 : vector<16x16xf32> to vector<16x16xbf16>
    %398 = vector.extract_strided_slice %379 {offsets = [0, 0], sizes = [16, 32], strides = [1, 1]} : vector<16x128xf32> to vector<16x32xf32>
    %399 = arith.truncf %398 : vector<16x32xf32> to vector<16x32xbf16>
    %cst_111 = arith.constant dense<0.000000e+00> : vector<16x32xf32>
    %400 = tpu.matmul %397, %399, %cst_111 {dimension_numbers = #tpu.dot_dimension_numbers<[1], [0], [0], [1], [0, 0, 1, 1], [], []>} : vector<16x16xbf16>, vector<16x32xbf16>, vector<16x32xf32> -> vector<16x32xf32>
    %401 = vector.extract_strided_slice %377 {offsets = [0, 32], sizes = [16, 32], strides = [1, 1]} : vector<16x128xf32> to vector<16x32xf32>
    %402 = arith.truncf %401 : vector<16x32xf32> to vector<16x32xbf16>
    %403 = vector.extract_strided_slice %378 {offsets = [0, 32], sizes = [16, 32], strides = [1, 1]} : vector<16x128xf32> to vector<16x32xf32>
    %404 = arith.truncf %403 : vector<16x32xf32> to vector<16x32xbf16>
    %cst_112 = arith.constant dense<0.000000e+00> : vector<16x16xf32>
    %405 = tpu.matmul %402, %404, %cst_112 {dimension_numbers = #tpu.dot_dimension_numbers<[1], [1], [0], [0], [0, 0, 1, 0], [], []>} : vector<16x32xbf16>, vector<16x32xbf16>, vector<16x16xf32> -> vector<16x16xf32>
    %406 = vector.extract_strided_slice %7 {offsets = [1, 0, 0], sizes = [1, 16, 16], strides = [1, 1, 1]} : vector<4x16x16xf32> to vector<1x16x16xf32>
    %407 = vector.shape_cast %406 : vector<1x16x16xf32> to vector<16x16xf32>
    %408 = arith.addf %405, %407 : vector<16x16xf32>
    %cst_113 = arith.constant dense<0xFF800000> : vector<16xf32>
    %409 = vector.multi_reduction <maximumf>, %408, %cst_113 [1] : vector<16x16xf32> to vector<16xf32>
    %410 = vector.shape_cast %409 : vector<16xf32> to vector<16x1xf32>
    %411 = vector.broadcast %410 : vector<16x1xf32> to vector<16x16xf32>
    %412 = arith.subf %408, %411 : vector<16x16xf32>
    %413 = math.exp %412 : vector<16x16xf32>
    %cst_114 = arith.constant dense<0.000000e+00> : vector<16xf32>
    %414 = vector.multi_reduction <add>, %413, %cst_114 [1] : vector<16x16xf32> to vector<16xf32>
    %415 = vector.shape_cast %414 : vector<16xf32> to vector<16x1xf32>
    %416 = vector.broadcast %415 : vector<16x1xf32> to vector<16x16xf32>
    %417 = arith.divf %413, %416 : vector<16x16xf32>
    %418 = arith.truncf %417 : vector<16x16xf32> to vector<16x16xbf16>
    %419 = vector.extract_strided_slice %379 {offsets = [0, 32], sizes = [16, 32], strides = [1, 1]} : vector<16x128xf32> to vector<16x32xf32>
    %420 = arith.truncf %419 : vector<16x32xf32> to vector<16x32xbf16>
    %cst_115 = arith.constant dense<0.000000e+00> : vector<16x32xf32>
    %421 = tpu.matmul %418, %420, %cst_115 {dimension_numbers = #tpu.dot_dimension_numbers<[1], [0], [0], [1], [0, 0, 1, 1], [], []>} : vector<16x16xbf16>, vector<16x32xbf16>, vector<16x32xf32> -> vector<16x32xf32>
    %422 = vector.extract_strided_slice %377 {offsets = [0, 64], sizes = [16, 32], strides = [1, 1]} : vector<16x128xf32> to vector<16x32xf32>
    %423 = arith.truncf %422 : vector<16x32xf32> to vector<16x32xbf16>
    %424 = vector.extract_strided_slice %378 {offsets = [0, 64], sizes = [16, 32], strides = [1, 1]} : vector<16x128xf32> to vector<16x32xf32>
    %425 = arith.truncf %424 : vector<16x32xf32> to vector<16x32xbf16>
    %cst_116 = arith.constant dense<0.000000e+00> : vector<16x16xf32>
    %426 = tpu.matmul %423, %425, %cst_116 {dimension_numbers = #tpu.dot_dimension_numbers<[1], [1], [0], [0], [0, 0, 1, 0], [], []>} : vector<16x32xbf16>, vector<16x32xbf16>, vector<16x16xf32> -> vector<16x16xf32>
    %427 = vector.extract_strided_slice %7 {offsets = [2, 0, 0], sizes = [1, 16, 16], strides = [1, 1, 1]} : vector<4x16x16xf32> to vector<1x16x16xf32>
    %428 = vector.shape_cast %427 : vector<1x16x16xf32> to vector<16x16xf32>
    %429 = arith.addf %426, %428 : vector<16x16xf32>
    %cst_117 = arith.constant dense<0xFF800000> : vector<16xf32>
    %430 = vector.multi_reduction <maximumf>, %429, %cst_117 [1] : vector<16x16xf32> to vector<16xf32>
    %431 = vector.shape_cast %430 : vector<16xf32> to vector<16x1xf32>
    %432 = vector.broadcast %431 : vector<16x1xf32> to vector<16x16xf32>
    %433 = arith.subf %429, %432 : vector<16x16xf32>
    %434 = math.exp %433 : vector<16x16xf32>
    %cst_118 = arith.constant dense<0.000000e+00> : vector<16xf32>
    %435 = vector.multi_reduction <add>, %434, %cst_118 [1] : vector<16x16xf32> to vector<16xf32>
    %436 = vector.shape_cast %435 : vector<16xf32> to vector<16x1xf32>
    %437 = vector.broadcast %436 : vector<16x1xf32> to vector<16x16xf32>
    %438 = arith.divf %434, %437 : vector<16x16xf32>
    %439 = arith.truncf %438 : vector<16x16xf32> to vector<16x16xbf16>
    %440 = vector.extract_strided_slice %379 {offsets = [0, 64], sizes = [16, 32], strides = [1, 1]} : vector<16x128xf32> to vector<16x32xf32>
    %441 = arith.truncf %440 : vector<16x32xf32> to vector<16x32xbf16>
    %cst_119 = arith.constant dense<0.000000e+00> : vector<16x32xf32>
    %442 = tpu.matmul %439, %441, %cst_119 {dimension_numbers = #tpu.dot_dimension_numbers<[1], [0], [0], [1], [0, 0, 1, 1], [], []>} : vector<16x16xbf16>, vector<16x32xbf16>, vector<16x32xf32> -> vector<16x32xf32>
    %443 = vector.extract_strided_slice %377 {offsets = [0, 96], sizes = [16, 32], strides = [1, 1]} : vector<16x128xf32> to vector<16x32xf32>
    %444 = arith.truncf %443 : vector<16x32xf32> to vector<16x32xbf16>
    %445 = vector.extract_strided_slice %378 {offsets = [0, 96], sizes = [16, 32], strides = [1, 1]} : vector<16x128xf32> to vector<16x32xf32>
    %446 = arith.truncf %445 : vector<16x32xf32> to vector<16x32xbf16>
    %cst_120 = arith.constant dense<0.000000e+00> : vector<16x16xf32>
    %447 = tpu.matmul %444, %446, %cst_120 {dimension_numbers = #tpu.dot_dimension_numbers<[1], [1], [0], [0], [0, 0, 1, 0], [], []>} : vector<16x32xbf16>, vector<16x32xbf16>, vector<16x16xf32> -> vector<16x16xf32>
    %448 = vector.extract_strided_slice %7 {offsets = [3, 0, 0], sizes = [1, 16, 16], strides = [1, 1, 1]} : vector<4x16x16xf32> to vector<1x16x16xf32>
    %449 = vector.shape_cast %448 : vector<1x16x16xf32> to vector<16x16xf32>
    %450 = arith.addf %447, %449 : vector<16x16xf32>
    %cst_121 = arith.constant dense<0xFF800000> : vector<16xf32>
    %451 = vector.multi_reduction <maximumf>, %450, %cst_121 [1] : vector<16x16xf32> to vector<16xf32>
    %452 = vector.shape_cast %451 : vector<16xf32> to vector<16x1xf32>
    %453 = vector.broadcast %452 : vector<16x1xf32> to vector<16x16xf32>
    %454 = arith.subf %450, %453 : vector<16x16xf32>
    %455 = math.exp %454 : vector<16x16xf32>
    %cst_122 = arith.constant dense<0.000000e+00> : vector<16xf32>
    %456 = vector.multi_reduction <add>, %455, %cst_122 [1] : vector<16x16xf32> to vector<16xf32>
    %457 = vector.shape_cast %456 : vector<16xf32> to vector<16x1xf32>
    %458 = vector.broadcast %457 : vector<16x1xf32> to vector<16x16xf32>
    %459 = arith.divf %455, %458 : vector<16x16xf32>
    %460 = arith.truncf %459 : vector<16x16xf32> to vector<16x16xbf16>
    %461 = vector.extract_strided_slice %379 {offsets = [0, 96], sizes = [16, 32], strides = [1, 1]} : vector<16x128xf32> to vector<16x32xf32>
    %462 = arith.truncf %461 : vector<16x32xf32> to vector<16x32xbf16>
    %cst_123 = arith.constant dense<0.000000e+00> : vector<16x32xf32>
    %463 = tpu.matmul %460, %462, %cst_123 {dimension_numbers = #tpu.dot_dimension_numbers<[1], [0], [0], [1], [0, 0, 1, 1], [], []>} : vector<16x16xbf16>, vector<16x32xbf16>, vector<16x32xf32> -> vector<16x32xf32>
    %464 = tpu.concatenate %400, %421, %442, %463 in 1 : vector<16x32xf32>, vector<16x32xf32>, vector<16x32xf32>, vector<16x32xf32> -> vector<16x128xf32>
    %465 = tpu.concatenate %376, %464 in 0 : vector<16x128xf32>, vector<16x128xf32> -> vector<32x128xf32>
    %466 = arith.truncf %465 : vector<32x128xf32> to vector<32x128xbf16>
    %c0_124 = arith.constant 0 : index
    %c0_125 = arith.constant 0 : index
    %c0_126 = arith.constant 0 : index
    %467 = vector.load %arg14[%c0_124, %c0_125, %c0_126] : memref<1x128x128xbf16, #tpu.memory_space<vmem>>, vector<1x128x128xbf16>
    %468 = vector.shape_cast %467 : vector<1x128x128xbf16> to vector<128x128xbf16>
    %cst_127 = arith.constant dense<0.000000e+00> : vector<32x128xf32>
    %469 = tpu.matmul %466, %468, %cst_127 {dimension_numbers = #tpu.dot_dimension_numbers<[1], [0], [0], [1], [0, 0, 1, 1], [], []>} : vector<32x128xbf16>, vector<128x128xbf16>, vector<32x128xf32> -> vector<32x128xf32>
    %c0_128 = arith.constant 0 : index
    %c0_129 = arith.constant 0 : index
    %c0_130 = arith.constant 0 : index
    %470 = vector.load %arg15[%c0_128, %c0_129, %c0_130] : memref<1x1x128xf32, #tpu.memory_space<vmem>>, vector<1x1x128xf32>
    %471 = vector.shape_cast %470 : vector<1x1x128xf32> to vector<1x128xf32>
    %472 = vector.broadcast %471 : vector<1x128xf32> to vector<32x128xf32>
    %473 = arith.addf %469, %472 : vector<32x128xf32>
    %474 = arith.addf %226, %473 : vector<32x128xf32>
    %c0_131 = arith.constant 0 : index
    %c0_132 = arith.constant 0 : index
    %c0_133 = arith.constant 0 : index
    %475 = vector.load %arg16[%c0_131, %c0_132, %c0_133] : memref<1x1x128xf32, #tpu.memory_space<vmem>>, vector<1x1x128xf32>
    %476 = vector.shape_cast %475 : vector<1x1x128xf32> to vector<1x128xf32>
    %c0_134 = arith.constant 0 : index
    %c0_135 = arith.constant 0 : index
    %c0_136 = arith.constant 0 : index
    %477 = vector.load %arg17[%c0_134, %c0_135, %c0_136] : memref<1x1x128xf32, #tpu.memory_space<vmem>>, vector<1x1x128xf32>
    %478 = vector.shape_cast %477 : vector<1x1x128xf32> to vector<1x128xf32>
    %cst_137 = arith.constant dense<0.000000e+00> : vector<32xf32>
    %479 = vector.multi_reduction <add>, %474, %cst_137 [1] : vector<32x128xf32> to vector<32xf32>
    %480 = vector.shape_cast %479 : vector<32xf32> to vector<32x1xf32>
    %cst_138 = arith.constant 1.280000e+02 : f32
    %481 = vector.broadcast %cst_138 : f32 to vector<32x1xf32>
    %482 = arith.divf %480, %481 : vector<32x1xf32>
    %483 = vector.broadcast %482 : vector<32x1xf32> to vector<32x128xf32>
    %484 = arith.subf %474, %483 : vector<32x128xf32>
    %485 = arith.mulf %484, %484 : vector<32x128xf32>
    %cst_139 = arith.constant dense<0.000000e+00> : vector<32xf32>
    %486 = vector.multi_reduction <add>, %485, %cst_139 [1] : vector<32x128xf32> to vector<32xf32>
    %487 = vector.shape_cast %486 : vector<32xf32> to vector<32x1xf32>
    %cst_140 = arith.constant 1.280000e+02 : f32
    %488 = vector.broadcast %cst_140 : f32 to vector<32x1xf32>
    %489 = arith.divf %487, %488 : vector<32x1xf32>
    %490 = vector.broadcast %482 : vector<32x1xf32> to vector<32x128xf32>
    %491 = arith.subf %474, %490 : vector<32x128xf32>
    %cst_141 = arith.constant 9.99999974E-6 : f32
    %492 = vector.broadcast %cst_141 : f32 to vector<32x1xf32>
    %493 = arith.addf %489, %492 : vector<32x1xf32>
    %494 = math.rsqrt %493 : vector<32x1xf32>
    %495 = vector.broadcast %494 : vector<32x1xf32> to vector<32x128xf32>
    %496 = arith.mulf %491, %495 : vector<32x128xf32>
    %497 = vector.broadcast %476 : vector<1x128xf32> to vector<32x128xf32>
    %498 = arith.mulf %496, %497 : vector<32x128xf32>
    %499 = vector.broadcast %478 : vector<1x128xf32> to vector<32x128xf32>
    %500 = arith.addf %498, %499 : vector<32x128xf32>
    %501 = arith.truncf %500 : vector<32x128xf32> to vector<32x128xbf16>
    %c0_142 = arith.constant 0 : index
    %c0_143 = arith.constant 0 : index
    %c0_144 = arith.constant 0 : index
    %502 = vector.load %arg18[%c0_142, %c0_143, %c0_144] : memref<1x128x512xbf16, #tpu.memory_space<vmem>>, vector<1x128x512xbf16>
    %503 = vector.shape_cast %502 : vector<1x128x512xbf16> to vector<128x512xbf16>
    %cst_145 = arith.constant dense<0.000000e+00> : vector<32x512xf32>
    %504 = tpu.matmul %501, %503, %cst_145 {dimension_numbers = #tpu.dot_dimension_numbers<[1], [0], [0], [1], [0, 0, 1, 1], [], []>} : vector<32x128xbf16>, vector<128x512xbf16>, vector<32x512xf32> -> vector<32x512xf32>
    %c0_146 = arith.constant 0 : index
    %c0_147 = arith.constant 0 : index
    %c0_148 = arith.constant 0 : index
    %505 = vector.load %arg19[%c0_146, %c0_147, %c0_148] : memref<1x1x512xf32, #tpu.memory_space<vmem>>, vector<1x1x512xf32>
    %506 = vector.shape_cast %505 : vector<1x1x512xf32> to vector<1x512xf32>
    %507 = vector.broadcast %506 : vector<1x512xf32> to vector<32x512xf32>
    %508 = arith.addf %504, %507 : vector<32x512xf32>
    %cst_149 = arith.constant 5.000000e-01 : f32
    %509 = vector.broadcast %cst_149 : f32 to vector<32x512xf32>
    %510 = arith.mulf %509, %508 : vector<32x512xf32>
    %cst_150 = arith.constant 0.707106769 : f32
    %511 = vector.broadcast %cst_150 : f32 to vector<32x512xf32>
    %512 = arith.mulf %508, %511 : vector<32x512xf32>
    %513 = math.absf %512 : vector<32x512xf32>
    %cst_151 = arith.constant 0.327591091 : f32
    %514 = vector.broadcast %cst_151 : f32 to vector<32x512xf32>
    %515 = arith.mulf %514, %513 : vector<32x512xf32>
    %cst_152 = arith.constant 1.000000e+00 : f32
    %516 = vector.broadcast %cst_152 : f32 to vector<32x512xf32>
    %517 = arith.addf %516, %515 : vector<32x512xf32>
    %cst_153 = arith.constant 1.000000e+00 : f32
    %518 = vector.broadcast %cst_153 : f32 to vector<32x512xf32>
    %519 = arith.divf %518, %517 : vector<32x512xf32>
    %cst_154 = arith.constant 1.06140542 : f32
    %520 = vector.broadcast %cst_154 : f32 to vector<32x512xf32>
    %521 = arith.mulf %520, %519 : vector<32x512xf32>
    %cst_155 = arith.constant -1.45315206 : f32
    %522 = vector.broadcast %cst_155 : f32 to vector<32x512xf32>
    %523 = arith.addf %521, %522 : vector<32x512xf32>
    %524 = arith.mulf %523, %519 : vector<32x512xf32>
    %cst_156 = arith.constant 1.42141378 : f32
    %525 = vector.broadcast %cst_156 : f32 to vector<32x512xf32>
    %526 = arith.addf %524, %525 : vector<32x512xf32>
    %527 = arith.mulf %526, %519 : vector<32x512xf32>
    %cst_157 = arith.constant -0.284496725 : f32
    %528 = vector.broadcast %cst_157 : f32 to vector<32x512xf32>
    %529 = arith.addf %527, %528 : vector<32x512xf32>
    %530 = arith.mulf %529, %519 : vector<32x512xf32>
    %cst_158 = arith.constant 0.254829586 : f32
    %531 = vector.broadcast %cst_158 : f32 to vector<32x512xf32>
    %532 = arith.addf %530, %531 : vector<32x512xf32>
    %533 = arith.mulf %532, %519 : vector<32x512xf32>
    %534 = arith.mulf %513, %513 : vector<32x512xf32>
    %cst_159 = arith.constant 0.000000e+00 : f32
    %535 = vector.broadcast %cst_159 : f32 to vector<32x512xf32>
    %536 = arith.subf %535, %534 : vector<32x512xf32>
    %537 = math.exp %536 : vector<32x512xf32>
    %538 = arith.mulf %533, %537 : vector<32x512xf32>
    %cst_160 = arith.constant 1.000000e+00 : f32
    %539 = vector.broadcast %cst_160 : f32 to vector<32x512xf32>
    %540 = arith.subf %539, %538 : vector<32x512xf32>
    %cst_161 = arith.constant 0.000000e+00 : f32
    %541 = vector.broadcast %cst_161 : f32 to vector<32x512xf32>
    %542 = arith.cmpf olt, %512, %541 : vector<32x512xf32>
    %cst_162 = arith.constant 0.000000e+00 : f32
    %543 = vector.broadcast %cst_162 : f32 to vector<32x512xf32>
    %544 = arith.subf %543, %540 : vector<32x512xf32>
    %545 = arith.select %542, %544, %540 : vector<32x512xi1>, vector<32x512xf32>
    %cst_163 = arith.constant 1.000000e+00 : f32
    %546 = vector.broadcast %cst_163 : f32 to vector<32x512xf32>
    %547 = arith.addf %546, %545 : vector<32x512xf32>
    %548 = arith.mulf %510, %547 : vector<32x512xf32>
    %549 = arith.truncf %548 : vector<32x512xf32> to vector<32x512xbf16>
    %c0_164 = arith.constant 0 : index
    %c0_165 = arith.constant 0 : index
    %c0_166 = arith.constant 0 : index
    %550 = vector.load %arg20[%c0_164, %c0_165, %c0_166] : memref<1x512x128xbf16, #tpu.memory_space<vmem>>, vector<1x512x128xbf16>
    %551 = vector.shape_cast %550 : vector<1x512x128xbf16> to vector<512x128xbf16>
    %cst_167 = arith.constant dense<0.000000e+00> : vector<32x128xf32>
    %552 = tpu.matmul %549, %551, %cst_167 {dimension_numbers = #tpu.dot_dimension_numbers<[1], [0], [0], [1], [0, 0, 1, 1], [], []>} : vector<32x512xbf16>, vector<512x128xbf16>, vector<32x128xf32> -> vector<32x128xf32>
    %c0_168 = arith.constant 0 : index
    %c0_169 = arith.constant 0 : index
    %c0_170 = arith.constant 0 : index
    %553 = vector.load %arg21[%c0_168, %c0_169, %c0_170] : memref<1x1x128xf32, #tpu.memory_space<vmem>>, vector<1x1x128xf32>
    %554 = vector.shape_cast %553 : vector<1x1x128xf32> to vector<1x128xf32>
    %555 = vector.broadcast %554 : vector<1x128xf32> to vector<32x128xf32>
    %556 = arith.addf %552, %555 : vector<32x128xf32>
    %557 = arith.addf %474, %556 : vector<32x128xf32>
    %558 = vector.shape_cast %557 : vector<32x128xf32> to vector<2x16x128xf32>
    %c0_171 = arith.constant 0 : index
    %c0_172 = arith.constant 0 : index
    %c0_173 = arith.constant 0 : index
    %559 = vector.load %arg24[%c0_171, %c0_172, %c0_173] : memref<2x16x128xf32, #tpu.memory_space<vmem>>, vector<2x16x128xf32>
    tpu.vector_store %arg24[%c0_171, %c0_172, %c0_173], %558 {strides = array<i32>} : memref<2x16x128xf32, #tpu.memory_space<vmem>>, vector<2x16x128xf32>,
    %c1_i32 = arith.constant 1 : i32
    %560 = arith.cmpi eq, %arg1, %c1_i32 : i32
    %561 = arith.extui %560 : i1 to i32
    %c0_i32_174 = arith.constant 0 : i32
    %562 = arith.cmpi ne, %561, %c0_i32_174 : i32
    scf.if %562 {
      %c0_175 = arith.constant 0 : index
      %c0_176 = arith.constant 0 : index
      %563 = vector.load %arg22[%c0_175, %c0_176] : memref<1x128xf32, #tpu.memory_space<vmem>>, vector<1x128xf32>
      %c0_177 = arith.constant 0 : index
      %c0_178 = arith.constant 0 : index
      %564 = vector.load %arg23[%c0_177, %c0_178] : memref<1x128xf32, #tpu.memory_space<vmem>>, vector<1x128xf32>
      %cst_179 = arith.constant dense<0.000000e+00> : vector<32xf32>
      %565 = vector.multi_reduction <add>, %557, %cst_179 [1] : vector<32x128xf32> to vector<32xf32>
      %566 = vector.shape_cast %565 : vector<32xf32> to vector<32x1xf32>
      %cst_180 = arith.constant 1.280000e+02 : f32
      %567 = vector.broadcast %cst_180 : f32 to vector<32x1xf32>
      %568 = arith.divf %566, %567 : vector<32x1xf32>
      %569 = vector.broadcast %568 : vector<32x1xf32> to vector<32x128xf32>
      %570 = arith.subf %557, %569 : vector<32x128xf32>
      %571 = arith.mulf %570, %570 : vector<32x128xf32>
      %cst_181 = arith.constant dense<0.000000e+00> : vector<32xf32>
      %572 = vector.multi_reduction <add>, %571, %cst_181 [1] : vector<32x128xf32> to vector<32xf32>
      %573 = vector.shape_cast %572 : vector<32xf32> to vector<32x1xf32>
      %cst_182 = arith.constant 1.280000e+02 : f32
      %574 = vector.broadcast %cst_182 : f32 to vector<32x1xf32>
      %575 = arith.divf %573, %574 : vector<32x1xf32>
      %576 = vector.broadcast %568 : vector<32x1xf32> to vector<32x128xf32>
      %577 = arith.subf %557, %576 : vector<32x128xf32>
      %cst_183 = arith.constant 9.99999974E-6 : f32
      %578 = vector.broadcast %cst_183 : f32 to vector<32x1xf32>
      %579 = arith.addf %575, %578 : vector<32x1xf32>
      %580 = math.rsqrt %579 : vector<32x1xf32>
      %581 = vector.broadcast %580 : vector<32x1xf32> to vector<32x128xf32>
      %582 = arith.mulf %577, %581 : vector<32x128xf32>
      %583 = vector.broadcast %563 : vector<1x128xf32> to vector<32x128xf32>
      %584 = arith.mulf %582, %583 : vector<32x128xf32>
      %585 = vector.broadcast %564 : vector<1x128xf32> to vector<32x128xf32>
      %586 = arith.addf %584, %585 : vector<32x128xf32>
      %587 = vector.shape_cast %586 : vector<32x128xf32> to vector<2x16x128xf32>
      %c0_184 = arith.constant 0 : index
      %c0_185 = arith.constant 0 : index
      %c0_186 = arith.constant 0 : index
      %588 = vector.load %arg24[%c0_184, %c0_185, %c0_186] : memref<2x16x128xf32, #tpu.memory_space<vmem>>, vector<2x16x128xf32>
      tpu.vector_store %arg24[%c0_184, %c0_185, %c0_186], %587 {strides = array<i32>} : memref<2x16x128xf32, #tpu.memory_space<vmem>>, vector<2x16x128xf32>,
    } else {
    }
    return
  }
  func.func @transform_0(%arg0: i32, %arg1: i32) -> (i32, i32, i32) {
    %c0_i32 = arith.constant 0 : i32
    %c0_i32_0 = arith.constant 0 : i32
    %c0_i32_1 = arith.constant 0 : i32
    return %arg0, %c0_i32, %c0_i32_0 : i32, i32, i32
  }
  func.func @transform_1(%arg0: i32, %arg1: i32) -> (i32, i32, i32) {
    %c0_i32 = arith.constant 0 : i32
    %c0_i32_0 = arith.constant 0 : i32
    %c0_i32_1 = arith.constant 0 : i32
    return %arg0, %c0_i32, %c0_i32_0 : i32, i32, i32
  }
  func.func @transform_2(%arg0: i32, %arg1: i32) -> (i32, i32, i32) {
    %c0_i32 = arith.constant 0 : i32
    %c0_i32_0 = arith.constant 0 : i32
    %c0_i32_1 = arith.constant 0 : i32
    %c0_i32_2 = arith.constant 0 : i32
    return %c0_i32, %c0_i32_0, %c0_i32_1 : i32, i32, i32
  }
  func.func @transform_3(%arg0: i32, %arg1: i32) -> (i32, i32, i32) {
    %c0_i32 = arith.constant 0 : i32
    %c0_i32_0 = arith.constant 0 : i32
    %c0_i32_1 = arith.constant 0 : i32
    return %arg1, %c0_i32, %c0_i32_0 : i32, i32, i32
  }
  func.func @transform_4(%arg0: i32, %arg1: i32) -> (i32, i32, i32) {
    %c0_i32 = arith.constant 0 : i32
    %c0_i32_0 = arith.constant 0 : i32
    %c0_i32_1 = arith.constant 0 : i32
    return %arg1, %c0_i32, %c0_i32_0 : i32, i32, i32
  }
  func.func @transform_5(%arg0: i32, %arg1: i32) -> (i32, i32, i32) {
    %c0_i32 = arith.constant 0 : i32
    %c0_i32_0 = arith.constant 0 : i32
    %c0_i32_1 = arith.constant 0 : i32
    return %arg1, %c0_i32, %c0_i32_0 : i32, i32, i32
  }
  func.func @transform_6(%arg0: i32, %arg1: i32) -> (i32, i32, i32) {
    %c0_i32 = arith.constant 0 : i32
    %c0_i32_0 = arith.constant 0 : i32
    %c0_i32_1 = arith.constant 0 : i32
    return %arg1, %c0_i32, %c0_i32_0 : i32, i32, i32
  }
  func.func @transform_7(%arg0: i32, %arg1: i32) -> (i32, i32, i32) {
    %c0_i32 = arith.constant 0 : i32
    %c0_i32_0 = arith.constant 0 : i32
    %c0_i32_1 = arith.constant 0 : i32
    return %arg1, %c0_i32, %c0_i32_0 : i32, i32, i32
  }
  func.func @transform_8(%arg0: i32, %arg1: i32) -> (i32, i32, i32) {
    %c0_i32 = arith.constant 0 : i32
    %c0_i32_0 = arith.constant 0 : i32
    %c0_i32_1 = arith.constant 0 : i32
    return %arg1, %c0_i32, %c0_i32_0 : i32, i32, i32
  }
  func.func @transform_9(%arg0: i32, %arg1: i32) -> (i32, i32, i32) {
    %c0_i32 = arith.constant 0 : i32
    %c0_i32_0 = arith.constant 0 : i32
    %c0_i32_1 = arith.constant 0 : i32
    return %arg1, %c0_i32, %c0_i32_0 : i32, i32, i32
  }
  func.func @transform_10(%arg0: i32, %arg1: i32) -> (i32, i32, i32) {
    %c0_i32 = arith.constant 0 : i32
    %c0_i32_0 = arith.constant 0 : i32
    %c0_i32_1 = arith.constant 0 : i32
    return %arg1, %c0_i32, %c0_i32_0 : i32, i32, i32
  }
  func.func @transform_11(%arg0: i32, %arg1: i32) -> (i32, i32, i32) {
    %c0_i32 = arith.constant 0 : i32
    %c0_i32_0 = arith.constant 0 : i32
    %c0_i32_1 = arith.constant 0 : i32
    return %arg1, %c0_i32, %c0_i32_0 : i32, i32, i32
  }
  func.func @transform_12(%arg0: i32, %arg1: i32) -> (i32, i32, i32) {
    %c0_i32 = arith.constant 0 : i32
    %c0_i32_0 = arith.constant 0 : i32
    %c0_i32_1 = arith.constant 0 : i32
    return %arg1, %c0_i32, %c0_i32_0 : i32, i32, i32
  }
  func.func @transform_13(%arg0: i32, %arg1: i32) -> (i32, i32, i32) {
    %c0_i32 = arith.constant 0 : i32
    %c0_i32_0 = arith.constant 0 : i32
    %c0_i32_1 = arith.constant 0 : i32
    return %arg1, %c0_i32, %c0_i32_0 : i32, i32, i32
  }
  func.func @transform_14(%arg0: i32, %arg1: i32) -> (i32, i32, i32) {
    %c0_i32 = arith.constant 0 : i32
    %c0_i32_0 = arith.constant 0 : i32
    %c0_i32_1 = arith.constant 0 : i32
    return %arg1, %c0_i32, %c0_i32_0 : i32, i32, i32
  }
  func.func @transform_15(%arg0: i32, %arg1: i32) -> (i32, i32, i32) {
    %c0_i32 = arith.constant 0 : i32
    %c0_i32_0 = arith.constant 0 : i32
    %c0_i32_1 = arith.constant 0 : i32
    return %arg1, %c0_i32, %c0_i32_0 : i32, i32, i32
  }
  func.func @transform_16(%arg0: i32, %arg1: i32) -> (i32, i32, i32) {
    %c0_i32 = arith.constant 0 : i32
    %c0_i32_0 = arith.constant 0 : i32
    %c0_i32_1 = arith.constant 0 : i32
    return %arg1, %c0_i32, %c0_i32_0 : i32, i32, i32
  }
  func.func @transform_17(%arg0: i32, %arg1: i32) -> (i32, i32, i32) {
    %c0_i32 = arith.constant 0 : i32
    %c0_i32_0 = arith.constant 0 : i32
    %c0_i32_1 = arith.constant 0 : i32
    return %arg1, %c0_i32, %c0_i32_0 : i32, i32, i32
  }
  func.func @transform_18(%arg0: i32, %arg1: i32) -> (i32, i32, i32) {
    %c0_i32 = arith.constant 0 : i32
    %c0_i32_0 = arith.constant 0 : i32
    %c0_i32_1 = arith.constant 0 : i32
    return %arg1, %c0_i32, %c0_i32_0 : i32, i32, i32
  }
  func.func @transform_19(%arg0: i32, %arg1: i32) -> (i32, i32, i32) {
    %c0_i32 = arith.constant 0 : i32
    %c0_i32_0 = arith.constant 0 : i32
    %c0_i32_1 = arith.constant 0 : i32
    return %arg1, %c0_i32, %c0_i32_0 : i32, i32, i32
  }
  func.func @transform_20(%arg0: i32, %arg1: i32) -> (i32, i32) {
    %c0_i32 = arith.constant 0 : i32
    %c0_i32_0 = arith.constant 0 : i32
    %c0_i32_1 = arith.constant 0 : i32
    return %c0_i32, %c0_i32_0 : i32, i32
  }
  func.func @transform_21(%arg0: i32, %arg1: i32) -> (i32, i32) {
    %c0_i32 = arith.constant 0 : i32
    %c0_i32_0 = arith.constant 0 : i32
    %c0_i32_1 = arith.constant 0 : i32
    return %c0_i32, %c0_i32_0 : i32, i32
  }
  func.func @transform_22(%arg0: i32, %arg1: i32) -> (i32, i32, i32) {
    %c0_i32 = arith.constant 0 : i32
    %c0_i32_0 = arith.constant 0 : i32
    %c0_i32_1 = arith.constant 0 : i32
    return %arg0, %c0_i32, %c0_i32_0 : i32, i32, i32
  }
}

</mosaic_0001>

<bundles_post_ra>
// kernel: base_transformer_cross_attn.1
= control target key start
LH: loop header
LB: loop body
LE: loop exit
PB: predicated region body
PF: predicated region fallthrough
CT: control target
= control target key end

     0   :  { %s9953_s0 = inlined_call_operand.hbm [shape: f32[4,16,128], index: 0, kind: input, shape index: {}]   ;;  %s9954_s1 = inlined_call_operand.hbm [shape: f32[4,16,128], index: 1, kind: input, shape index: {}]   ;;  %s9955_s2 = inlined_call_operand.hbm [shape: f32[4,16,16], index: 2, kind: input, shape index: {}]   ;;  %s9956_s3 = inlined_call_operand.vmem [shape: f32[2,1,128], index: 3, kind: input, shape index: {}]   ;;  %s9957_s4 = inlined_call_operand.vmem [shape: f32[2,1,128], index: 4, kind: input, shape index: {}]   ;;  %s9958_s5 = inlined_call_operand.hbm [shape: bf16[2,128,384], index: 5, kind: input, shape index: {}]   ;;  %s9959_s6 = inlined_call_operand.hbm [shape: bf16[2,128,128], index: 6, kind: input, shape index: {}]   ;;  %s9960_s7 = inlined_call_operand.vmem [shape: f32[2,1,128], index: 7, kind: input, shape index: {}]   ;;  %s9961_s8 = inlined_call_operand.vmem [shape: f32[2,1,128], index: 8, kind: input, shape index: {}]   ;;  %s9962_s9 = inlined_call_operand.vmem [shape: f32[2,1,128], index: 9, kind: input, shape index: {}]   ;;  %s9963_s10 = inlined_call_operand.hbm [shape: bf16[2,128,128], index: 10, kind: input, shape index: {}]   ;;  %s9964_s11 = inlined_call_operand.hbm [shape: bf16[2,128,256], index: 11, kind: input, shape index: {}]   ;;  %s9965_s12 = inlined_call_operand.hbm [shape: bf16[2,128,128], index: 12, kind: input, shape index: {}]   ;;  %s9966_s13 = inlined_call_operand.vmem [shape: f32[2,1,128], index: 13, kind: input, shape index: {}]   ;;  %s9967_s14 = inlined_call_operand.vmem [shape: f32[2,1,128], index: 14, kind: input, shape index: {}]   ;;  %s9968_s15 = inlined_call_operand.vmem [shape: f32[2,1,128], index: 15, kind: input, shape index: {}]   ;;  %s9969_s16 = inlined_call_operand.hbm [shape: bf16[2,128,512], index: 16, kind: input, shape index: {}]   ;;  %s9970_s17 = inlined_call_operand.vmem [shape: f32[2,1,512], index: 17, kind: input, shape index: {}]   ;;  %s9971_s18 = inlined_call_operand.hbm [shape: bf16[2,512,128], index: 18, kind: input, shape index: {}]   ;;  %s9972_s19 = inlined_call_operand.vmem [shape: f32[2,1,128], index: 19, kind: input, shape index: {}]   ;;  %s9973_s20 = inlined_call_operand.hbm [shape: f32[1,128], index: 20, kind: input, shape index: {}]   ;;  %s9974_s21 = inlined_call_operand.hbm [shape: f32[1,128], index: 21, kind: input, shape index: {}]   ;;  %s9975_s22 = inlined_call_operand.hbm [shape: f32[4,16,128], index: 22, kind: output, shape index: {}]  }
   0x1   :  { %10048 = sst [smem:[#allocation62_spill]] %s9953_s0 }
   0x2   :  { %10049 = sst [smem:[#allocation63_spill]] %s9954_s1 }
   0x3   :  { %10050 = sst [smem:[#allocation64_spill]] %s9955_s2 }
   0x4   :  { %10051 = sst [smem:[#allocation65_spill]] %s9956_s3 }
   0x5   :  { %10052 = sst [smem:[#allocation66_spill]] %s9957_s4 }
   0x6   :  { %10053 = sst [smem:[#allocation67_spill]] %s9958_s5 }
   0x7   :  { %10054 = sst [smem:[#allocation68_spill]] %s9959_s6 }
   0x8   :  { %10055 = sst [smem:[#allocation69_spill]] %s9960_s7 }
   0x9   :  { %10056 = sst [smem:[#allocation70_spill]] %s9961_s8 }
   0xa   :  { %10057 = sst [smem:[#allocation71_spill]] %s9962_s9 }
   0xb   :  { %10058 = sst [smem:[#allocation72_spill]] %s9963_s10 }
   0xc   :  { %10059 = sst [smem:[#allocation73_spill]] %s9964_s11 }
   0xd   :  { %10060 = sst [smem:[#allocation74_spill]] %s9965_s12 }
   0xe   :  { %10061 = sst [smem:[#allocation75_spill]] %s9966_s13 }
   0xf   :  { %10062 = sst [smem:[#allocation76_spill]] %s9967_s14 }
  0x10   :  { %10063 = sst [smem:[#allocation77_spill]] %s9968_s15 }
  0x11   :  { %10064 = sst [smem:[#allocation78_spill]] %s9969_s16 }
  0x12   :  { %10065 = sst [smem:[#allocation79_spill]] %s9970_s17 }
  0x13   :  { %10066 = sst [smem:[#allocation80_spill]] %s9971_s18 }
  0x14   :  { %10067 = sst [smem:[#allocation81_spill]] %s9972_s19 }
  0x15   :  { %10068 = sst [smem:[#allocation82_spill]] %s9973_s20 }
  0x16   :  { %10069 = sst [smem:[#allocation83_spill]] %s9974_s21 }
  0x17   :  { %10070 = sst [smem:[#allocation84_spill]] %s9975_s22 }
  0x18   :  { %27 = vsyncpa [#allocation3], 0 }
  0x19   :  { %29 = vsyncpa [#allocation3 + $0x1], 0 }
  0x1a   :  { %30 = vsyncpa [#allocation6], 0 }
  0x1b   :  { %32 = vsyncpa [#allocation6 + $0x1], 0 }
  0x1c   :  { %33 = vsyncpa [#allocation9], 0 }
  0x1d   :  { %35 = vsyncpa [#allocation9 + $0x1], 0 }
  0x1e   :  { %36 = vsyncpa [#allocation12], 0 }
  0x1f   :  { %38 = vsyncpa [#allocation12 + $0x1], 0 }
  0x20   :  { %39 = vsyncpa [#allocation15], 0 }
  0x21   :  { %41 = vsyncpa [#allocation15 + $0x1], 0 }
  0x22   :  { %42 = vsyncpa [#allocation18], 0 }
  0x23   :  { %44 = vsyncpa [#allocation18 + $0x1], 0 }
  0x24   :  { %45 = vsyncpa [#allocation21], 0 }
  0x25   :  { %46 = vsyncpa [#allocation4], 0 }
  0x26   :  { %48 = vsyncpa [#allocation4 + $0x1], 0  ;;  %s7911_s3 = smov 0   ;;  %s7913_s28 = smov 0  }
  0x27   :  { %s7915_s29 = smov 0   ;;  %s7917_s30 = smov 0  }
  0x28   :  { %s7919_s4 = smov 0   ;;  %s7921_s0 = smov 0  }
  0x29   :  { %s7923_s23 = smov 0   ;;  %s7925_s1 = smov 0  }
  0x2a   :  { %s7927_s5 = smov 0   ;;  %s7929_s24 = smov 0  }
  0x2b   :  { %s7931_s6 = smov 0  }
  0x2c LB: > { %10071 = sst [smem:[#allocation33_spill]] %s7729_s28  ;;  %s7965_s25 = sadd.s32 4294967295, %s7765_s6   ;;  %s7765_s6 = sphi %s7931_s6, %s54_s6   ;;  %s7761_s24 = sphi %s7929_s24, %s10206_s24   ;;  %s7757_s5 = sphi %s7927_s5, %s10205_s5   ;;  %s7753_s1 = sphi %s7925_s1, %s10204_s1   ;;  %s7749_s23 = sphi %s7923_s23, %s10203_s23   ;;  %s7745_s0 = sphi %s7921_s0, %s10202_s0   ;;  %s7741_s4 = sphi %s7919_s4, %s10201_s4   ;;  %s7737_s30 = sphi %s7917_s30, %s10200_s30   ;;  %s7733_s29 = sphi %s7915_s29, %s10199_s29   ;;  %s7729_s28 = sphi %s7913_s28, %s10198_s28   ;;  %s7725_s3 = sphi %s7911_s3, %s10197_s3  }
  0x2d   : > { %10072 = sst [smem:[#allocation34_spill]] %s7733_s29  ;;  %s5931_s26 = sadd.s32 4294967294, %s7765_s6  }
  0x2e   : > { %10073 = sst [smem:[#allocation35_spill]] %s7737_s30  ;;  %p86_p0 = scmp.ne.s32.totalorder %s7741_s4, %s7737_s30 }
  0x2f   : > { %10074 = sst [smem:[#allocation36_spill]] %s7741_s4  ;;  %p9984_p1 = scmp.eq.s32.totalorder %s7965_s25, 0 }
  0x30   : > { %10075 = sst [smem:[#allocation37_spill]] %s7745_s0  ;;  %p211_p2 = scmp.ne.s32.totalorder %s7729_s28, %s7725_s3 }
  0x31   : > { %10076 = sst [smem:[#allocation38_spill]] %s7749_s23  ;;  %p7975_p4 = por %p9984_p1, %p86_p0 }
  0x32   : > { %10077 = sst [smem:[#allocation39_spill]] %s7753_s1  ;;  %p647_p5 = scmp.eq.s32.totalorder %s5931_s26, 3 }
  0x33   : > { %10078 = sst [smem:[#allocation40_spill]] %s7757_s5  ;;  %p7981_p6 = por %p211_p2, %p9984_p1 }
  0x34   : > { %10079 = sst [smem:[#allocation41_spill]] %s7761_s24  ;;  %p5932_p7 = scmp.ge.s32.totalorder %s7765_s6, 1 }
  0x35   : > { %10080 = sst [smem:[#allocation42_spill]] %s7765_s6  ;;  %p7986_p8 = por %p647_p5, %p86_p0 }
  0x36   : > { %s10081_s2 = scalar_select %p7975_p4, 1, 0 }
  0x37   : > { %s10083_s27 = scalar_select %p7981_p6, 1, 0 }
  0x38   : > { %10082 = sst [smem:[#allocation43_spill]] %s10081_s2  ;;  %p654_p9 = scmp.lt.s32.totalorder %s7765_s6, 5 }
  0x39   : > { %10084 = sst [smem:[#allocation44_spill]] %s10083_s27  ;;  %s7767_s30 = smov [#allocation7]  }
  0x3a   : > { %s10085_s22 = scalar_select %p7986_p8, 1, 0 }
  0x3b   : > { %p7991_p10 = pnand %p5932_p7, %p654_p9  ;;  %s666_s1 = sshll.u32 %s7767_s30, 4  ;;  %s667_s1 = int_to_ptr.vmem [resolvable:$true] %s666_s1 }
  0x3c   : > { %10086 = sst [smem:[#allocation45_spill]] %s10085_s22  ;;  %s7768_s17 = smov [#allocation19]  }
  0x3d   : > { %s10087_s3 = scalar_select %p7991_p10, 1, 0 }
  0x3e   : > { %p6636_p11 = pneg %p7991_p10  ;;  %s680_s19 = sshll.u32 %s7768_s17, 4  ;;  %s8003_s19 = int_to_ptr.vmem [resolvable:$true] %s680_s19 }
  0x3f   : > { %10088 = sst [smem:[#allocation46_spill]] %s10087_s3  ;;  %s10090_s14 = sld [smem:[#allocation64_spill]] }
  0x40   : > { %p7999_p12 = pnand %p6636_p11, %p9984_p1 }
  0x42   : > { %s10089_s26 = scalar_select %p7999_p12, 1, 0 }
  0x43   : > { %p8013_p0 = pneg %p7999_p12 }
  0x45   : > { %s7257_s13 = scalar_lea.hbm %s10090_s14, 1024 }
  0x46   : > { %p7258_p13 = scmp.ne.s32.totalorder %s10090_s14, %s7257_s13  ;;  %p7264_p7 = scmp.lt.u32.totalorder %s7257_s13, %s10090_s14 }
  0x47   : > { %s10091_s30 = scalar_select %p8013_p0, 1, 0 }
  0x48   : > { %p7260_p2 = pnand %p8013_p0, %p7258_p13 }
  0x4a   : > { %p7261_p5 = pneg %p7260_p2 }
  0x4c   : > { %p7266_p9 = pnand %p7264_p7, %p7261_p5 }
  0x4e   : > { %7269 = shalt.err (!%p7266_p9)
}
  0x4f   : > { %s7270_s15 = scalar_lea.vmem %s667_s1, 1024  ;;  %p7278_p8 = scmp.lt.s32.totalorder %s667_s1, %s667_s1 }
  0x50   : > { %p7271_p11 = scmp.ne.s32.totalorder %s667_s1, %s7270_s15  ;;  %p7279_p6 = scmp.lt.s32.totalorder %s7270_s15, %s7270_s15 }
  0x52   : > { %p7273_p1 = pnand %p7271_p11, %p8013_p0  ;;  %p7280_p4 = por %p7279_p6, %p7278_p8 }
  0x54   : > { %p7274_p3 = pneg %p7273_p1 }
  0x56   : > { %p7281_p10 = pnand %p7280_p4, %p7274_p3 }
  0x58   : > { %7284 = shalt.err (!%p7281_p10)
}
  0x59   : > { %s9994_s8 = smov 128   ;;  %s9996_s9 = smov 8  }
  0x5a   : > { %6639 = dma.hbm_to_vmem [thread:$0]  (!%p7999_p12), %s10090_s14, 1024, %s667_s1, [#allocation6], %s9994_s8, %s9994_s8, %s9996_s9  }
  0x5b   : > { %s10092_s20 = sld [smem:[#allocation82_spill]] }
  0x61   : > { %s7285_s23 = scalar_lea.hbm %s10092_s20, 16 }
  0x62   : > { %p7286_p1 = scmp.ne.s32.totalorder %s10092_s20, %s7285_s23  ;;  %p7292_p6 = scmp.lt.u32.totalorder %s7285_s23, %s10092_s20 }
  0x64   : > { %p7288_p3 = pnand %p7286_p1, %p8013_p0 }
  0x66   : > { %p7289_p4 = pneg %p7288_p3 }
  0x68   : > { %p7294_p8 = pnand %p7292_p6, %p7289_p4 }
  0x6a   : > { %7297 = shalt.err (!%p7294_p8)
}
  0x6b   : > { %s7298_s1 = scalar_lea.vmem %s8003_s19, 16  ;;  %s7305_s27 = scalar_lea.vmem %s8003_s19, 32 }
  0x6c   : > { %p7299_p10 = scmp.ne.s32.totalorder %s8003_s19, %s7298_s1  ;;  %p7306_p5 = scmp.lt.s32.totalorder %s8003_s19, %s8003_s19 }
  0x6d   : > { %p7307_p7 = scmp.lt.s32.totalorder %s7305_s27, %s7298_s1 }
  0x6e   : > { %p7301_p13 = pnand %p7299_p10, %p8013_p0 }
  0x6f   : > { %p7308_p9 = por %p7307_p7, %p7306_p5 }
  0x70   : > { %p7302_p2 = pneg %p7301_p13 }
  0x72   : > { %p7309_p11 = pnand %p7308_p9, %p7302_p2 }
  0x74   : > { %7312 = shalt.err (!%p7309_p11)
}
  0x75   : > { %6642 = dma.hbm_to_vmem [thread:$0]  (!%p7999_p12), %s10092_s20, 16, %s8003_s19, [#allocation18]  }
  0x76   : > { %s63_s3 = sadd.s32 1, %s7757_s5  ;;  %p10002_p1 = scmp.eq.s32.totalorder %s7765_s6, 0 }
  0x77   : > { %p8058_p3 = scmp.ge.s32.totalorder %s63_s3, 2  ;;  %s198_s13 = sadd.s32 1, %s7733_s29 }
  0x78   : > { %p205_p4 = scmp.ne.s32.totalorder %s7733_s29, %s7729_s28  ;;  %p10001_p6 = scmp.lt.s32.totalorder %s7765_s6, 4 }
  0x79   : > { %s10093_s7 = scalar_select %p8058_p3, 1, 0 }
  0x7a   : > { %s10208_s3 = smov (%p8058_p3, %s63_s3), 0  ;;  %p207_p8 = por %p205_p4, %p10002_p1 }
  0x7b   : > { %10094 = sst [smem:[#allocation47_spill]] %s10208_s3  ;;  %s8073_s22 = sand.u32 1, %s7765_s6  }
  0x7c   : > { %s195_s19 = ssub.s32 %s7757_s5, %s10208_s3  ;;  %s8078_s17 = sand.u32 1, %s7733_s29  }
  0x7d   : > { %p196_p10 = scmp.eq.s32.totalorder %s195_s19, 0  ;;  %s6601_s15 = smul.u32 192, %s8078_s17 }
  0x7e   : > { %p8083_p13 = pnand %p10001_p6, %p207_p8  ;;  %s6602_s23 = smul.u32 3072, %s7757_s5 }
  0x7f   : > { %s8088_s27 = scalar_select %p196_p10, %s7733_s29, %s198_s13  }
  0x80   : > { %s10095_s1 = scalar_select %p8083_p13, 1, 0 }
  0x81   : > { %10096 = sst [smem:[#allocation48_spill]] %s8088_s27  ;;  %s762_s2 = scalar_lea.vmem [#allocation8], %s6601_s15 }
  0x82   : > { %s769_s8 = sshll.u32 %s762_s2, 4  ;;  %s10097_s20 = sld [smem:[#allocation67_spill]]  ;;  %s8096_s8 = int_to_ptr.vmem [resolvable:$true] %s769_s8 }
  0x83   : > { %p8103_p5 = pneg %p8083_p13 }
  0x88   : > { %s8094_s3 = scalar_lea.hbm %s10097_s20, %s6602_s23  ;;  %s7318_s15 = scalar_lea.hbm %s10097_s20, 6144 }
  0x89   : > { %s7313_s28 = scalar_lea.hbm %s8094_s3, 3072  ;;  %p7319_p11 = scmp.lt.u32.totalorder %s8094_s3, %s10097_s20 }
  0x8a   : > { %p7314_p2 = scmp.ne.s32.totalorder %s8094_s3, %s7313_s28  ;;  %p7320_p4 = scmp.lt.u32.totalorder %s7318_s15, %s7313_s28 }
  0x8b   : > { %p7322_p10 = scmp.lt.u32.totalorder %s7313_s28, %s8094_s3 }
  0x8c   : > { %p7316_p7 = pnand %p8103_p5, %p7314_p2  ;;  %p7321_p8 = por %p7320_p4, %p7319_p11 }
  0x8e   : > { %p7317_p9 = pneg %p7316_p7  ;;  %p7323_p6 = por %p7322_p10, %p7321_p8 }
  0x90   : > { %p7324_p1 = pnand %p7323_p6, %p7317_p9 }
  0x92   : > { %7327 = shalt.err (!%p7324_p1)
}
  0x93   : > { %s7328_s19 = scalar_lea.vmem %s8096_s8, 3072  ;;  %s7771_s14 = smov [#allocation8]  }
  0x94   : > { %p7329_p2 = scmp.ne.s32.totalorder %s8096_s8, %s7328_s19  ;;  %s7333_s9 = sshll.u32 %s7771_s14, 4  ;;  %s7334_s9 = int_to_ptr.vmem [resolvable:$false] %s7333_s9 }
  0x95   : > { %s7335_s23 = scalar_lea.vmem %s7334_s9, 6144  ;;  %p7336_p12 = scmp.lt.s32.totalorder %s8096_s8, %s7334_s9 }
  0x96   : > { %p7331_p7 = pnand %p7329_p2, %p8103_p5  ;;  %p7337_p0 = scmp.lt.s32.totalorder %s7335_s23, %s7328_s19 }
  0x98   : > { %p7332_p3 = pneg %p7331_p7  ;;  %p7338_p11 = por %p7337_p0, %p7336_p12 }
  0x9a   : > { %p7339_p4 = pnand %p7338_p11, %p7332_p3 }
  0x9c   : > { %7342 = shalt.err (!%p7339_p4)
}
  0x9d   : > { %s7772_s28 = smov 192   ;;  %s7773_s15 = smov 12  }
  0x9e   : > { %s10099_s2 = scalar_lea.sflag [#allocation9], %s8073_s22  ;;  %s8129_s14 = sshll.u32 %s8078_s17, 6 }
  0x9f   : > { %6655 = dma.hbm_to_vmem [thread:$0]  (!%p8083_p13), %s8094_s3, 3072, %s8096_s8, %s10099_s2, %s7772_s28, %s7772_s28, %s7773_s15  }
  0xa0   : > { %s8132_s19 = sshll.u32 %s7757_s5, 10  ;;  %s10100_s10 = sld [smem:[#allocation72_spill]] }
  0xa1   : > { %s822_s27 = scalar_lea.vmem [#allocation11], %s8129_s14  ;;  %s10012_s8 = scalar_lea.sflag [#allocation12], %s8073_s22 }
  0xa2   : > { %s829_s29 = sshll.u32 %s822_s27, 4  ;;  %s8141_s29 = int_to_ptr.vmem [resolvable:$true] %s829_s29 }
  0xa6   : > { %s8138_s20 = scalar_lea.hbm %s10100_s10, %s8132_s19  ;;  %s7348_s2 = scalar_lea.hbm %s10100_s10, 2048 }
  0xa7   : > { %s7343_s3 = scalar_lea.hbm %s8138_s20, 1024  ;;  %p7349_p3 = scmp.lt.u32.totalorder %s8138_s20, %s10100_s10 }
  0xa8   : > { %p7344_p12 = scmp.ne.s32.totalorder %s8138_s20, %s7343_s3  ;;  %p7350_p6 = scmp.lt.u32.totalorder %s7348_s2, %s7343_s3 }
  0xa9   : > { %p7352_p8 = scmp.lt.u32.totalorder %s7343_s3, %s8138_s20 }
  0xaa   : > { %p7346_p0 = pnand %p7344_p12, %p8103_p5  ;;  %p7351_p9 = por %p7350_p6, %p7349_p3 }
  0xac   : > { %p7347_p1 = pneg %p7346_p0  ;;  %p7353_p10 = por %p7352_p8, %p7351_p9 }
  0xae   : > { %p7354_p2 = pnand %p7353_p10, %p7347_p1 }
  0xb0   : > { %7357 = shalt.err (!%p7354_p2)
}
  0xb1   : > { %s7358_s27 = scalar_lea.vmem %s8141_s29, 1024  ;;  %s7774_s28 = smov [#allocation11]  }
  0xb2   : > { %p7359_p7 = scmp.ne.s32.totalorder %s8141_s29, %s7358_s27  ;;  %s7363_s15 = sshll.u32 %s7774_s28, 4  ;;  %s7364_s15 = int_to_ptr.vmem [resolvable:$false] %s7363_s15 }
  0xb3   : > { %s7365_s9 = scalar_lea.vmem %s7364_s15, 2048  ;;  %p7366_p12 = scmp.lt.s32.totalorder %s8141_s29, %s7364_s15 }
  0xb4   : > { %p7361_p11 = pnand %p7359_p7, %p8103_p5  ;;  %p7367_p0 = scmp.lt.s32.totalorder %s7365_s9, %s7358_s27 }
  0xb6   : > { %p7362_p4 = pneg %p7361_p11  ;;  %p7368_p3 = por %p7367_p0, %p7366_p12 }
  0xb8   : > { %p7369_p6 = pnand %p7368_p3, %p7362_p4 }
  0xba   : > { %7372 = shalt.err (!%p7369_p6)
}
  0xbb   : > { %s10016_s3 = smov 64   ;;  %s10018_s2 = smov 4  }
  0xbc   : > { %6661 = dma.hbm_to_vmem [thread:$0]  (!%p8083_p13), %s8138_s20, 1024, %s8141_s29, %s10012_s8, %s10016_s3, %s10016_s3, %s10018_s2  }
  0xbd   : > { %s10101_s12 = sld [smem:[#allocation74_spill]]  ;;  %s864_s15 = scalar_lea.vmem [#allocation14], %s8129_s14 }
  0xbe   : > { %s871_s9 = sshll.u32 %s864_s15, 4  ;;  %s7777_s10 = smov [#allocation20]   ;;  %s8177_s9 = int_to_ptr.vmem [resolvable:$true] %s871_s9 }
  0xbf   : > { %s8179_s18 = sshll.u32 %s7777_s10, 4  ;;  %s10015_s16 = scalar_lea.sflag [#allocation15], %s8073_s22  ;;  %s692_s18 = int_to_ptr.vmem [resolvable:$true] %s8179_s18 }
  0xc3   : > { %s8174_s28 = scalar_lea.hbm %s10101_s12, %s8132_s19  ;;  %s7378_s23 = scalar_lea.hbm %s10101_s12, 2048 }
  0xc4   : > { %s7373_s11 = scalar_lea.hbm %s8174_s28, 1024  ;;  %p7379_p10 = scmp.lt.u32.totalorder %s8174_s28, %s10101_s12 }
  0xc5   : > { %p7374_p1 = scmp.ne.s32.totalorder %s8174_s28, %s7373_s11  ;;  %p7380_p2 = scmp.lt.u32.totalorder %s7378_s23, %s7373_s11 }
  0xc6   : > { %p7382_p11 = scmp.lt.u32.totalorder %s7373_s11, %s8174_s28 }
  0xc7   : > { %p7376_p9 = pnand %p7374_p1, %p8103_p5  ;;  %p7381_p7 = por %p7380_p2, %p7379_p10 }
  0xc9   : > { %p7377_p8 = pneg %p7376_p9  ;;  %p7383_p4 = por %p7382_p11, %p7381_p7 }
  0xcb   : > { %p7384_p12 = pnand %p7383_p4, %p7377_p8 }
  0xcd   : > { %7387 = shalt.err (!%p7384_p12)
}
  0xce   : > { %s7388_s10 = scalar_lea.vmem %s8177_s9, 1024  ;;  %s7778_s15 = smov [#allocation14]  }
  0xcf   : > { %p7389_p0 = scmp.ne.s32.totalorder %s8177_s9, %s7388_s10  ;;  %s7393_s20 = sshll.u32 %s7778_s15, 4  ;;  %s7394_s20 = int_to_ptr.vmem [resolvable:$false] %s7393_s20 }
  0xd0   : > { %s7395_s8 = scalar_lea.vmem %s7394_s20, 2048  ;;  %p7396_p1 = scmp.lt.s32.totalorder %s8177_s9, %s7394_s20 }
  0xd1   : > { %p7391_p3 = pnand %p7389_p0, %p8103_p5  ;;  %p7397_p9 = scmp.lt.s32.totalorder %s7395_s8, %s7388_s10 }
  0xd3   : > { %p7392_p6 = pneg %p7391_p3  ;;  %p7398_p10 = por %p7397_p9, %p7396_p1 }
  0xd5   : > { %p7399_p2 = pnand %p7398_p10, %p7392_p6 }
  0xd7   : > { %7402 = shalt.err (!%p7399_p2)
}
  0xd8   : > { %6667 = dma.hbm_to_vmem [thread:$0]  (!%p8083_p13), %s8174_s28, 1024, %s8177_s9, %s10015_s16, %s10016_s3, %s10016_s3, %s10018_s2  }
  0xd9   : > { %s10102_s21 = sld [smem:[#allocation83_spill]]  ;;  %p10103_p7 = scmp.ne.s32.totalorder %s10091_s30, 0 }
  0xdf   : > { %s7403_s23 = scalar_lea.hbm %s10102_s21, 16 }
  0xe0   : > { %p7404_p8 = scmp.ne.s32.totalorder %s10102_s21, %s7403_s23  ;;  %p7410_p12 = scmp.lt.u32.totalorder %s7403_s23, %s10102_s21 }
  0xe2   : > { %p7406_p11 = pnand %p7404_p8, %p10103_p7 }
  0xe4   : > { %p7407_p4 = pneg %p7406_p11 }
  0xe6   : > { %p7412_p0 = pnand %p7410_p12, %p7407_p4 }
  0xe8   : > { %7415 = shalt.err (!%p7412_p0)
}
  0xe9   : > { %s7416_s8 = scalar_lea.vmem %s692_s18, 16  ;;  %s7423_s28 = scalar_lea.vmem %s692_s18, 32 }
  0xea   : > { %p7417_p3 = scmp.ne.s32.totalorder %s692_s18, %s7416_s8  ;;  %p7424_p9 = scmp.lt.s32.totalorder %s692_s18, %s692_s18 }
  0xeb   : > { %p7425_p10 = scmp.lt.s32.totalorder %s7423_s28, %s7416_s8 }
  0xec   : > { %p7419_p6 = pnand %p7417_p3, %p10103_p7 }
  0xed   : > { %p7426_p2 = por %p7425_p10, %p7424_p9 }
  0xee   : > { %p7420_p1 = pneg %p7419_p6 }
  0xf0   : > { %p7427_p13 = pnand %p7426_p2, %p7420_p1 }
  0xf2   : > { %7430 = shalt.err (!%p7427_p13)
}
  0xf3   : > { %p10104_p8 = scmp.ne.s32.totalorder %s10089_s26, 0  ;;  %s73_s30 = sadd.s32 1, %s7745_s0 }
  0xf4   : > { %s66_s29 = sadd.s32 1, %s7761_s24  ;;  %p80_p13 = scmp.ne.s32.totalorder %s7745_s0, %s7741_s4 }
  0xf5   : > { %6645 = dma.hbm_to_vmem [thread:$0]  (!%p10104_p8), %s10102_s21, 16, %s692_s18, [#allocation21]  }
  0xf6   : > { %p10105_p7 = scmp.ne.s32.totalorder %s10093_s7, 0  ;;  %p10106_p11 = scmp.eq.s32.totalorder %s7765_s6, 0 }
  0xf7   : > { %p10108_p12 = scmp.eq.s32.totalorder %s7965_s25, 3  ;;  %s702_s18 = sand.u32 1, %s7745_s0  }
  0xf8   : > { %s10210_s29 = smov (!%p10105_p7, %s66_s29), %s7761_s24  ;;  %p8236_p4 = por %p10106_p11, %p80_p13 }
  0xf9   : > { %p8242_p0 = por %p10108_p12, %p80_p13  ;;  %p68_p3 = scmp.ge.s32.totalorder %s10210_s29, 2 }
  0xfa   : > { %s8247_s27 = sshll.u32 %s702_s18, 5  ;;  %s10020_s7 = sshll.u32 %s7761_s24, 9 }
  0xfb   : > { %s10109_s23 = scalar_select %p8242_p0, 1, 0 }
  0xfc   : > { %s10212_s29 = smov (%p68_p3, %s10210_s29), 0  ;;  %s10112_s8 = sld [smem:[#allocation62_spill]] }
  0xfd   : > { %10110 = sst [smem:[#allocation49_spill]] %s10109_s23  ;;  %s70_s10 = ssub.s32 %s7761_s24, %s10212_s29 }
  0xfe   : > { %10111 = sst [smem:[#allocation50_spill]] %s10212_s29  ;;  %p71_p6 = scmp.eq.s32.totalorder %s70_s10, 0 }
  0xff   : > { %s706_s9 = scalar_lea.vmem [#allocation2], %s8247_s27  ;;  %p10113_p1 = scmp.lt.s32.totalorder %s7765_s6, 4 }
 0x100   : > { %s714_s11 = sshll.u32 %s706_s9, 4  ;;  %s8275_s20 = scalar_lea.sflag [#allocation3], %s702_s18  ;;  %s8262_s11 = int_to_ptr.vmem [resolvable:$true] %s714_s11 }
 0x101   : > { %p8268_p9 = pnand %p10113_p1, %p8236_p4 }
 0x102   : > { %s8259_s28 = scalar_lea.hbm %s10112_s8, %s10020_s7  ;;  %s7436_s9 = scalar_lea.hbm %s10112_s8, 1024 }
 0x103   : > { %s8273_s15 = scalar_select %p71_p6, %s7745_s0, %s73_s30  }
 0x104   : > { %s7431_s3 = scalar_lea.hbm %s8259_s28, 512  ;;  %p7433_p2 = pneg %p8268_p9 }
 0x105   : > { %10115 = sst [smem:[#allocation51_spill]] %s8273_s15  ;;  %p7432_p10 = scmp.ne.s32.totalorder %s8259_s28, %s7431_s3 }
 0x106   : > { %p7437_p7 = scmp.lt.u32.totalorder %s8259_s28, %s10112_s8  ;;  %p7438_p11 = scmp.lt.u32.totalorder %s7436_s9, %s7431_s3 }
 0x107   : > { %p7434_p8 = pnand %p7433_p2, %p7432_p10  ;;  %p7440_p12 = scmp.lt.u32.totalorder %s7431_s3, %s8259_s28 }
 0x108   : > { %p7439_p4 = por %p7438_p11, %p7437_p7 }
 0x109   : > { %p7435_p13 = pneg %p7434_p8 }
 0x10a   : > { %p7441_p3 = por %p7440_p12, %p7439_p4 }
 0x10c   : > { %p7442_p6 = pnand %p7441_p3, %p7435_p13 }
 0x10e   : > { %7445 = shalt.err (!%p7442_p6)
}
 0x10f   : > { %s7446_s30 = scalar_lea.vmem %s8262_s11, 512  ;;  %s7779_s18 = smov [#allocation2]  }
 0x110   : > { %p7447_p1 = scmp.ne.s32.totalorder %s8262_s11, %s7446_s30  ;;  %s7451_s26 = sshll.u32 %s7779_s18, 4  ;;  %s7452_s26 = int_to_ptr.vmem [resolvable:$false] %s7451_s26 }
 0x111   : > { %s7453_s2 = scalar_lea.vmem %s7452_s26, 1024  ;;  %p7454_p0 = scmp.lt.s32.totalorder %s8262_s11, %s7452_s26 }
 0x112   : > { %p7449_p10 = pnand %p7447_p1, %p7433_p2  ;;  %p7455_p7 = scmp.lt.s32.totalorder %s7453_s2, %s7446_s30 }
 0x114   : > { %p7450_p8 = pneg %p7449_p10  ;;  %p7456_p11 = por %p7455_p7, %p7454_p0 }
 0x116   : > { %p7457_p4 = pnand %p7456_p11, %p7450_p8 }
 0x118   : > { %7460 = shalt.err (!%p7457_p4)
}
 0x119   : > { %s10116_s3 = smov 8   ;;  %s10117_s7 = smov 128  }
 0x11a   : > { %6649 = dma.hbm_to_vmem [thread:$0]  (!%p8268_p9), %s8259_s28, 512, %s8262_s11, %s8275_s20, %s10117_s7, %s10117_s7, %s10116_s3  }
 0x11b   : > { %s10118_s10 = sshll.u32 %s7761_s24, 9  ;;  %s10119_s30 = sld [smem:[#allocation63_spill]] }
 0x11c   : > { %s728_s8 = scalar_lea.vmem [#allocation5], %s8247_s27  ;;  %s725_s21 = scalar_lea.sflag [#allocation6], %s8073_s22 }
 0x11d   : > { %s736_s12 = sshll.u32 %s728_s8, 4  ;;  %s8314_s12 = int_to_ptr.vmem [resolvable:$true] %s736_s12 }
 0x121   : > { %s10120_s26 = smov %s10119_s30  ;;  %s8311_s2 = scalar_lea.hbm %s10119_s30, %s10118_s10 }
 0x122   : > { %s7461_s29 = scalar_lea.hbm %s8311_s2, 512  ;;  %s7466_s20 = scalar_lea.hbm %s10120_s26, 1024 }
 0x123   : > { %p7462_p0 = scmp.ne.s32.totalorder %s8311_s2, %s7461_s29  ;;  %p7467_p3 = scmp.lt.u32.totalorder %s8311_s2, %s10120_s26 }
 0x124   : > { %p7468_p6 = scmp.lt.u32.totalorder %s7466_s20, %s7461_s29  ;;  %p7470_p10 = scmp.lt.u32.totalorder %s7461_s29, %s8311_s2 }
 0x125   : > { %p7464_p13 = pnand %p7462_p0, %p7433_p2 }
 0x126   : > { %p7469_p1 = por %p7468_p6, %p7467_p3 }
 0x127   : > { %p7465_p12 = pneg %p7464_p13 }
 0x128   : > { %p7471_p8 = por %p7470_p10, %p7469_p1 }
 0x12a   : > { %p7472_p7 = pnand %p7471_p8, %p7465_p12 }
 0x12c   : > { %7475 = shalt.err (!%p7472_p7)
}
 0x12d   : > { %s7476_s27 = scalar_lea.vmem %s8314_s12, 512  ;;  %s7780_s8 = smov [#allocation5]  }
 0x12e   : > { %p7477_p11 = scmp.ne.s32.totalorder %s8314_s12, %s7476_s27  ;;  %s7481_s18 = sshll.u32 %s7780_s8, 4  ;;  %s7482_s18 = int_to_ptr.vmem [resolvable:$false] %s7481_s18 }
 0x12f   : > { %s7483_s30 = scalar_lea.vmem %s7482_s18, 1024  ;;  %p7484_p13 = scmp.lt.s32.totalorder %s8314_s12, %s7482_s18 }
 0x130   : > { %p7479_p4 = pnand %p7477_p11, %p7433_p2  ;;  %p7485_p3 = scmp.lt.s32.totalorder %s7483_s30, %s7476_s27 }
 0x132   : > { %p7480_p0 = pneg %p7479_p4  ;;  %p7486_p6 = por %p7485_p3, %p7484_p13 }
 0x134   : > { %p7487_p1 = pnand %p7486_p6, %p7480_p0 }
 0x136   : > { %7490 = shalt.err (!%p7487_p1)
}
 0x137   : > { %6652 = dma.hbm_to_vmem [thread:$0]  (!%p8268_p9), %s8311_s2, 512, %s8314_s12, %s725_s21, %s10117_s7, %s10117_s7, %s10116_s3  }
 0x138   : > { %s10121_s11 = sld [smem:[#allocation68_spill]]  ;;  %s783_s16 = scalar_lea.vmem [#allocation10], %s8129_s14 }
 0x139   : > { %s790_s10 = sshll.u32 %s783_s16, 4  ;;  %s5952_s9 = sshll.u32 %s8078_s17, 7  ;;  %s8353_s10 = int_to_ptr.vmem [resolvable:$true] %s790_s10 }
 0x13e   : > { %s8349_s20 = scalar_lea.hbm %s10121_s11, %s8132_s19  ;;  %s7496_s2 = scalar_lea.hbm %s10121_s11, 2048 }
 0x13f   : > { %s7491_s27 = scalar_lea.hbm %s8349_s20, 1024  ;;  %p7497_p9 = scmp.lt.u32.totalorder %s8349_s20, %s10121_s11 }
 0x140   : > { %p7492_p2 = scmp.ne.s32.totalorder %s8349_s20, %s7491_s27  ;;  %p7498_p8 = scmp.lt.u32.totalorder %s7496_s2, %s7491_s27 }
 0x141   : > { %p7500_p11 = scmp.lt.u32.totalorder %s7491_s27, %s8349_s20 }
 0x142   : > { %p7494_p12 = pnand %p7492_p2, %p8103_p5  ;;  %p7499_p7 = por %p7498_p8, %p7497_p9 }
 0x144   : > { %p7495_p10 = pneg %p7494_p12  ;;  %p7501_p4 = por %p7500_p11, %p7499_p7 }
 0x146   : > { %p7502_p0 = pnand %p7501_p4, %p7495_p10 }
 0x148   : > { %7505 = shalt.err (!%p7502_p0)
}
 0x149   : > { %s7506_s14 = scalar_lea.vmem %s8353_s10, 1024  ;;  %s7781_s18 = smov [#allocation10]  }
 0x14a   : > { %p7507_p13 = scmp.ne.s32.totalorder %s8353_s10, %s7506_s14  ;;  %s7511_s30 = sshll.u32 %s7781_s18, 4  ;;  %s7512_s30 = int_to_ptr.vmem [resolvable:$false] %s7511_s30 }
 0x14b   : > { %s7513_s29 = scalar_lea.vmem %s7512_s30, 2048  ;;  %p7514_p1 = scmp.lt.s32.totalorder %s8353_s10, %s7512_s30 }
 0x14c   : > { %p7509_p3 = pnand %p7507_p13, %p8103_p5  ;;  %p7515_p2 = scmp.lt.s32.totalorder %s7513_s29, %s7506_s14 }
 0x14e   : > { %p7510_p6 = pneg %p7509_p3  ;;  %p7516_p12 = por %p7515_p2, %p7514_p1 }
 0x150   : > { %p7517_p9 = pnand %p7516_p12, %p7510_p6 }
 0x152   : > { %7520 = shalt.err (!%p7517_p9)
}
 0x153   : > { %p10122_p10 = scmp.ne.s32.totalorder %s10095_s1, 0  ;;  %s10123_s28 = smov 4  }
 0x154   : > { %s10124_s16 = smov 64   ;;  %s10125_s27 = scalar_lea.sflag [#allocation9], %s8073_s22 }
 0x155   : > { %6658 = dma.hbm_to_vmem [thread:$0]  (!%p10122_p10), %s8349_s20, 1024, %s8353_s10, %s10125_s27, %s10124_s16, %s10124_s16, %s10123_s28  }
 0x156   : > { %s6163_s12 = sshll.u32 %s7757_s5, 11  ;;  %s843_s21 = scalar_lea.vmem [#allocation13], %s5952_s9 }
 0x157   : > { %s850_s2 = sshll.u32 %s843_s21, 4  ;;  %s10126_s14 = sld [smem:[#allocation73_spill]]  ;;  %s8389_s2 = int_to_ptr.vmem [resolvable:$true] %s850_s2 }
 0x15d   : > { %s8387_s18 = scalar_lea.hbm %s10126_s14, %s6163_s12  ;;  %s7526_s9 = scalar_lea.hbm %s10126_s14, 4096 }
 0x15e   : > { %s7521_s30 = scalar_lea.hbm %s8387_s18, 2048  ;;  %p7527_p4 = scmp.lt.u32.totalorder %s8387_s18, %s10126_s14 }
 0x15f   : > { %p7522_p8 = scmp.ne.s32.totalorder %s8387_s18, %s7521_s30  ;;  %p7528_p0 = scmp.lt.u32.totalorder %s7526_s9, %s7521_s30 }
 0x160   : > { %p7530_p3 = scmp.lt.u32.totalorder %s7521_s30, %s8387_s18 }
 0x161   : > { %p7524_p7 = pnand %p7522_p8, %p8103_p5  ;;  %p7529_p13 = por %p7528_p0, %p7527_p4 }
 0x163   : > { %p7525_p11 = pneg %p7524_p7  ;;  %p7531_p6 = por %p7530_p3, %p7529_p13 }
 0x165   : > { %p7532_p1 = pnand %p7531_p6, %p7525_p11 }
 0x167   : > { %7535 = shalt.err (!%p7532_p1)
}
 0x168   : > { %s7536_s12 = scalar_lea.vmem %s8389_s2, 2048  ;;  %s7782_s21 = smov [#allocation13]  }
 0x169   : > { %p7537_p2 = scmp.ne.s32.totalorder %s8389_s2, %s7536_s12  ;;  %s7541_s19 = sshll.u32 %s7782_s21, 4  ;;  %s7542_s19 = int_to_ptr.vmem [resolvable:$false] %s7541_s19 }
 0x16a   : > { %s7543_s8 = scalar_lea.vmem %s7542_s19, 4096  ;;  %p7544_p8 = scmp.lt.s32.totalorder %s8389_s2, %s7542_s19 }
 0x16b   : > { %p7539_p12 = pnand %p7537_p2, %p8103_p5  ;;  %p7545_p7 = scmp.lt.s32.totalorder %s7543_s8, %s7536_s12 }
 0x16d   : > { %p7540_p9 = pneg %p7539_p12  ;;  %p7546_p4 = por %p7545_p7, %p7544_p8 }
 0x16f   : > { %p7547_p0 = pnand %p7546_p4, %p7540_p9 }
 0x171   : > { %7550 = shalt.err (!%p7547_p0)
}
 0x172   : > { %s10127_s30 = scalar_lea.sflag [#allocation12], %s8073_s22  ;;  %s5958_s20 = sshll.u32 %s8078_s17, 8 }
 0x173   : > { %6664 = dma.hbm_to_vmem [thread:$0]  (!%p10122_p10), %s8387_s18, 2048, %s8389_s2, %s10127_s30, %s10117_s7, %s10117_s7, %s10116_s3  }
 0x174   : > { %s6165_s10 = sshll.u32 %s7757_s5, 12  ;;  %s10128_s27 = sld [smem:[#allocation78_spill]] }
 0x175   : > { %s903_s21 = scalar_lea.vmem [#allocation16], %s5958_s20 }
 0x176   : > { %s910_s19 = sshll.u32 %s903_s21, 4  ;;  %s8428_s19 = int_to_ptr.vmem [resolvable:$true] %s910_s19 }
 0x17a   : > { %s8424_s12 = scalar_lea.hbm %s10128_s27, %s6165_s10  ;;  %s7556_s2 = scalar_lea.hbm %s10128_s27, 8192 }
 0x17b   : > { %s7551_s8 = scalar_lea.hbm %s8424_s12, 4096  ;;  %p7557_p6 = scmp.lt.u32.totalorder %s8424_s12, %s10128_s27 }
 0x17c   : > { %p7552_p11 = scmp.ne.s32.totalorder %s8424_s12, %s7551_s8  ;;  %p7558_p1 = scmp.lt.u32.totalorder %s7556_s2, %s7551_s8 }
 0x17d   : > { %p7560_p12 = scmp.lt.u32.totalorder %s7551_s8, %s8424_s12 }
 0x17e   : > { %p7554_p13 = pnand %p7552_p11, %p8103_p5  ;;  %p7559_p2 = por %p7558_p1, %p7557_p6 }
 0x180   : > { %p7555_p3 = pneg %p7554_p13  ;;  %p7561_p9 = por %p7560_p12, %p7559_p2 }
 0x182   : > { %p7562_p8 = pnand %p7561_p9, %p7555_p3 }
 0x184   : > { %7565 = shalt.err (!%p7562_p8)
}
 0x185   : > { %s7566_s9 = scalar_lea.vmem %s8428_s19, 4096  ;;  %s7783_s29 = smov [#allocation16]  }
 0x186   : > { %p7567_p7 = scmp.ne.s32.totalorder %s8428_s19, %s7566_s9  ;;  %s7571_s21 = sshll.u32 %s7783_s29, 4  ;;  %s7572_s21 = int_to_ptr.vmem [resolvable:$false] %s7571_s21 }
 0x187   : > { %s7573_s3 = scalar_lea.vmem %s7572_s21, 8192  ;;  %p7574_p11 = scmp.lt.s32.totalorder %s8428_s19, %s7572_s21 }
 0x188   : > { %p7569_p4 = pnand %p7567_p7, %p8103_p5  ;;  %p7575_p13 = scmp.lt.s32.totalorder %s7573_s3, %s7566_s9 }
 0x18a   : > { %p7570_p0 = pneg %p7569_p4  ;;  %p7576_p6 = por %p7575_p13, %p7574_p11 }
 0x18c   : > { %p7577_p1 = pnand %p7576_p6, %p7570_p0 }
 0x18e   : > { %7580 = shalt.err (!%p7577_p1)
}
 0x18f   : > { %s7784_s8 = smov 256   ;;  %s7785_s7 = smov 16  }
 0x190   : > { %s10129_s2 = scalar_lea.sflag [#allocation15], %s8073_s22  ;;  %s10130_s9 = sld [smem:[#allocation80_spill]] }
 0x191   : > { %6670 = dma.hbm_to_vmem [thread:$0]  (!%p10122_p10), %s8424_s12, 4096, %s8428_s19, %s10129_s2, %s7784_s8, %s7784_s8, %s7785_s7  }
 0x192   : > { %s931_s21 = scalar_lea.vmem [#allocation17], %s5958_s20  ;;  %s928_s11 = scalar_lea.sflag [#allocation18], %s8073_s22 }
 0x193   : > { %s938_s3 = sshll.u32 %s931_s21, 4  ;;  %s8462_s3 = int_to_ptr.vmem [resolvable:$true] %s938_s3 }
 0x196   : > { %s8458_s29 = scalar_lea.hbm %s10130_s9, %s6165_s10  ;;  %s7586_s10 = scalar_lea.hbm %s10130_s9, 8192 }
 0x197   : > { %s7581_s14 = scalar_lea.hbm %s8458_s29, 4096  ;;  %p7587_p9 = scmp.lt.u32.totalorder %s8458_s29, %s10130_s9 }
 0x198   : > { %p7582_p3 = scmp.ne.s32.totalorder %s8458_s29, %s7581_s14  ;;  %p7588_p8 = scmp.lt.u32.totalorder %s7586_s10, %s7581_s14 }
 0x199   : > { %p7590_p4 = scmp.lt.u32.totalorder %s7581_s14, %s8458_s29 }
 0x19a   : > { %p7584_p2 = pnand %p7582_p3, %p8103_p5  ;;  %p7589_p7 = por %p7588_p8, %p7587_p9 }
 0x19c   : > { %p7585_p12 = pneg %p7584_p2  ;;  %p7591_p0 = por %p7590_p4, %p7589_p7 }
 0x19e   : > { %p7592_p11 = pnand %p7591_p0, %p7585_p12 }
 0x1a0   : > { %7595 = shalt.err (!%p7592_p11)
}
 0x1a1   : > { %s7596_s20 = scalar_lea.vmem %s8462_s3, 4096  ;;  %s7786_s7 = smov [#allocation17]  }
 0x1a2   : > { %p7597_p13 = scmp.ne.s32.totalorder %s8462_s3, %s7596_s20  ;;  %s7601_s2 = sshll.u32 %s7786_s7, 4  ;;  %s7602_s2 = int_to_ptr.vmem [resolvable:$false] %s7601_s2 }
 0x1a3   : > { %s7603_s18 = scalar_lea.vmem %s7602_s2, 8192  ;;  %p7604_p3 = scmp.lt.s32.totalorder %s8462_s3, %s7602_s2 }
 0x1a4   : > { %p7599_p6 = pnand %p7597_p13, %p8103_p5  ;;  %p7605_p2 = scmp.lt.s32.totalorder %s7603_s18, %s7596_s20 }
 0x1a6   : > { %p7600_p1 = pneg %p7599_p6  ;;  %p7606_p9 = por %p7605_p2, %p7604_p3 }
 0x1a8   : > { %p7607_p8 = pnand %p7606_p9, %p7600_p1 }
 0x1aa   : > { %7610 = shalt.err (!%p7607_p8)
}
 0x1ab   : > { %6673 = dma.hbm_to_vmem [thread:$0]  (!%p10122_p10), %s8458_s29, 4096, %s8462_s3, %s928_s11, %s10124_s16, %s10124_s16, %s10123_s28  }
 0x1ac   : > { %s10131_s13 = sld [smem:[#allocation46_spill]] }
 0x1b2   : > { %p10132_p5 = scmp.ne.s32.totalorder %s10131_s13, 0 }
 0x1b4   : > { %956 = sbr.rel (%p10132_p5) target bundleno = 7299 (0x1c83), region = 108 }
 0x1bb   : > { %s10133_s14 = sld [smem:[#allocation43_spill]]  ;;  %s8494_s30 = sand.u32 1, %s7741_s4  }
 0x1bc   : > { %10134 = sst [smem:[#allocation52_spill]] %s8494_s30  ;;  %s8497_s21 = sshll.u32 %s8494_s30, 5 }
 0x1bd   : > { %s959_s1 = scalar_lea.sflag [#allocation3], %s8494_s30  ;;  %s8501_s12 = scalar_lea.vmem [#allocation2], %s8497_s21 }
 0x1c1   : > { %p10135_p12 = scmp.ne.s32.totalorder %s10133_s14, 0 }
 0x1c3   : > { %7684 = dma.done.wait (%p10135_p12), %s959_s1, 512  }
 0x1c4   : > { %7686 = vsyncadd (%p10135_p12), %s959_s1, 4294966784  ;;  %s8508_s22 = sand.u32 1, %s7965_s25   ;;  %s8512_s28 = scalar_lea.vmem [#allocation5], %s8497_s21 }
 0x1c5   : > { %s968_s11 = scalar_lea.sflag [#allocation6], %s8508_s22 }
 0x1c6   : > { %7688 = dma.done.wait (%p10135_p12), %s968_s11, 512  }
 0x1c7   : > { %7690 = vsyncadd (%p10135_p12), %s968_s11, 4294966784  ;;  %p10136_p10 = scmp.eq.s32.totalorder %s7965_s25, 0 }
 0x1c9   : > { %7692 = dma.done.wait (%p10136_p10), [#allocation6], 1024   ;;  %p10137_p7 = pmov %p10136_p10 }
 0x1ca   : > { %s10138_s16 = sld [smem:[#allocation33_spill]]  ;;  %s10139_s29 = sld [smem:[#allocation44_spill]] }
 0x1cb   : > { %7694 = vsyncadd (%p10137_p7), [#allocation6], 4294966272  ;;  %s981_s10 = scalar_lea.sflag [#allocation9], %s8508_s22 }
 0x1d0   : > { %s982_s3 = sand.u32 1, %s10138_s16   ;;  %p10140_p4 = scmp.ne.s32.totalorder %s10139_s29, 0 }
 0x1d1   : > { %s6603_s19 = smul.u32 192, %s982_s3 }
 0x1d3   : > { %s8524_s8 = scalar_lea.vmem [#allocation8], %s6603_s19 }
 0x1d4   : > { %7696 = dma.done.wait (%p10140_p4), %s981_s10, 4096  }
 0x1d5   : > { %7698 = vsyncadd (%p10140_p4), %s981_s10, 4294963200  ;;  %s5968_s17 = sshll.u32 %s982_s3, 6  ;;  %s999_s7 = scalar_lea.sflag [#allocation12], %s8508_s22 }
 0x1d6   : > { %s8530_s20 = scalar_lea.vmem [#allocation10], %s5968_s17  ;;  %s8533_s2 = scalar_lea.vmem [#allocation11], %s5968_s17 }
 0x1d7   : > { %7700 = dma.done.wait (%p10140_p4), %s999_s7, 3072  }
 0x1d8   : > { %7702 = vsyncadd (%p10140_p4), %s999_s7, 4294964224  ;;  %s5970_s18 = sshll.u32 %s982_s3, 7  ;;  %s1017_s14 = scalar_lea.sflag [#allocation15], %s8508_s22 }
 0x1d9   : > { %s8539_s13 = scalar_lea.vmem [#allocation13], %s5970_s18  ;;  %s8542_s1 = scalar_lea.vmem [#allocation14], %s5968_s17 }
 0x1da   : > { %10141 = sst [smem:[#allocation53_spill]] %s8542_s1 }
 0x1db   : > { %7704 = dma.done.wait (%p10140_p4), %s1017_s14, 5120  }
 0x1dc   : > { %7706 = vsyncadd (%p10140_p4), %s1017_s14, 4294962176  ;;  %s5972_s11 = sshll.u32 %s982_s3, 8  ;;  %s1035_s19 = scalar_lea.sflag [#allocation18], %s8508_s22 }
 0x1dd   : > { %s8548_s16 = scalar_lea.vmem [#allocation16], %s5972_s11  ;;  %s8551_s10 = scalar_lea.vmem [#allocation17], %s5972_s11 }
 0x1de   : > { %10142 = sst [smem:[#allocation54_spill]] %s8548_s16 }
 0x1df   : > { %10143 = sst [smem:[#allocation55_spill]] %s8551_s10 }
 0x1e0   : > { %7708 = dma.done.wait (%p10140_p4), %s1035_s19, 4096  }
 0x1e1   : > { %7710 = vsyncadd (%p10140_p4), %s1035_s19, 4294963200  ;;  %p10144_p0 = pmov %p10137_p7 }
 0x1e3   : > { %7712 = dma.done.wait (%p10144_p0), [#allocation18], 16   ;;  %p10145_p11 = pmov %p10144_p0 }
 0x1e4   : > { %p10146_p13 = pmov %p10144_p0 }
 0x1e5   : > { %7714 = vsyncadd (%p10145_p11), [#allocation18], 4294967280 }
 0x1e6   : > { %7716 = dma.done.wait (%p10146_p13), [#allocation21], 16   ;;  %p10147_p6 = pmov %p10144_p0 }
 0x1e7   : > { %s10148_s22 = sld [smem:[#allocation38_spill]]  ;;  %s10153_s6 = sld [smem:[#allocation71_spill]] }
 0x1e8   : > { %7718 = vsyncadd (%p10147_p6), [#allocation21], 4294967280  ;;  %s10154_s16 = sld [smem:[#allocation75_spill]]  ;;  %s10155_s18 = sld [smem:[#allocation76_spill]] }
 0x1e9   : > { %s10156_s26 = sld [smem:[#allocation77_spill]]  ;;  %s10157_s29 = sld [smem:[#allocation81_spill]] }
 0x1ea   : > { %s10158_s0 = sld [smem:[#allocation79_spill]]  ;;  %s8612_s30 = scalar_lea.vmem [#allocation22], %s8497_s21 }
 0x1ed   : > { %p1180_p1 = scmp.lt.s32.totalorder %s10148_s22, 1  ;;  %p5978_p3 = scmp.ne.s32.totalorder %s10148_s22, 0 }
 0x1ee   : > { %v1217_v0 = vld [vmem:[%s8501_s12] sm:$0xff] (!%p5978_p3)  ;;  %v1218_v1 = vld [vmem:[%s8501_s12 + $0x8] sm:$0xff] (!%p5978_p3)  ;;  %v1219_v2 = vld [vmem:[%s8501_s12 + $0x10] sm:$0xff] (!%p5978_p3) }
 0x1ef   : > { %s8567_s3 = scalar_select %p1180_p1, %s10148_s22, 1 }
 0x1f0   : > { %1216 = sbr.rel (%p5978_p3) target bundleno = 503 (0x1f7), region = 160  ;;  %1221 = vst [vmem:[%s8612_s30] sm:$0xff] (!%p5978_p3), %v1217_v0  ;;  %1222 = vst [vmem:[%s8612_s30 + $0x8] sm:$0xff] (!%p5978_p3), %v1218_v1  ;;  %v1220_v3 = vld [vmem:[%s8501_s12 + $0x18] sm:$0xff] (!%p5978_p3) }
 0x1f1   : > { %s1194_s23 = scalar_lea.vmem %s10153_s6, %s8567_s3  ;;  %s1197_s7 = scalar_lea.vmem %s10154_s16, %s8567_s3  ;;  %1223 = vst [vmem:[%s8612_s30 + $0x10] sm:$0xff] (!%p5978_p3), %v1219_v2  ;;  %1224 = vst [vmem:[%s8612_s30 + $0x18] sm:$0xff] (!%p5978_p3), %v1220_v3 }
 0x1f2   : > { %s1200_s14 = scalar_lea.vmem %s10155_s18, %s8567_s3  ;;  %s1203_s27 = scalar_lea.vmem %s10156_s26, %s8567_s3 }
 0x1f3   : > { %s5977_s9 = sshll.u32 %s8567_s3, 2  ;;  %s1210_s17 = scalar_lea.vmem %s10157_s29, %s8567_s3 }
 0x1f4   : > { %s8609_s6 = scalar_lea.vmem %s10158_s0, %s5977_s9 }
 0x1f7 PF: > { %v1225_v4 = vld [vmem:[%s8612_s30] sm:$0xff]  ;;  %v1226_v5 = vld [vmem:[%s8612_s30 + $0x8] sm:$0xff]  ;;  %v6859_v24 = vld [vmem:[%s8524_s8 + $0x34] ss:$12 sps:$4 sm:$0xff]   ;;  %v7787_v34 = vmov 0   ;;  %s10159_s21 = sld [smem:[#allocation65_spill]] }
 0x1f8   : > { %1243 = vadd.xlane.f32.xlu0 %v1225_v4  ;;  %v1227_v6 = vld [vmem:[%s8612_s30 + $0x10] sm:$0xff]  ;;  %v6853_v7 = vld [vmem:[%s8524_s8 + $0x4] ss:$12 sps:$4 sm:$0xff]   ;;  %v6855_v8 = vld [vmem:[%s8524_s8] ss:$12 sps:$4 sm:$0xff]   ;;  %1502 = vmatprep.mubr.bf16.mxu0 %v7787_v34  ;;  %s10161_s10 = sld [smem:[#allocation66_spill]] }
 0x1f9   : > { %v6856_v9 = vld [vmem:[%s8524_s8 + $0x1c] ss:$12 sps:$4 sm:$0xff]   ;;  %1470 = vmatprep.subr.bf16.mxu0 %v6853_v7  ;;  %v6858_v23 = vld [vmem:[%s8524_s8 + $0x18] ss:$12 sps:$4 sm:$0xff]   ;;  %v6867_v29 = vld [vmem:[%s8524_s8 + $0x60] ss:$12 sps:$4 sm:$0xff]  }
 0x1fa   : > { %1471 = vmatpush1.bf16.msra.mxu0 %v6855_v8  ;;  %v1228_v21 = vld [vmem:[%s8612_s30 + $0x18] sm:$0xff]  ;;  %v6862_v26 = vld [vmem:[%s8524_s8 + $0x4c] ss:$12 sps:$4 sm:$0xff]   ;;  %v6864_v27 = vld [vmem:[%s8524_s8 + $0x48] ss:$12 sps:$4 sm:$0xff]   ;;  %v7788_v2 = vmov 0.0  }
 0x1fb   : > { %1472 = vmatprep.subr.bf16.mxu0 %v6856_v9  ;;  %v6861_v25 = vld [vmem:[%s8524_s8 + $0x30] ss:$12 sps:$4 sm:$0xff]   ;;  %v6870_v31 = vld [vmem:[%s8524_s8 + $0x78] ss:$12 sps:$4 sm:$0xff]   ;;  %v6871_v32 = vld [vmem:[%s8524_s8 + $0x94] ss:$12 sps:$4 sm:$0xff]  }
 0x1fc   : > { %1245 = vadd.xlane.f32.xlu0 %v1226_v5  ;;  %v6865_v28 = vld [vmem:[%s8524_s8 + $0x64] ss:$12 sps:$4 sm:$0xff]   ;;  %v6868_v30 = vld [vmem:[%s8524_s8 + $0x7c] ss:$12 sps:$4 sm:$0xff]   ;;  %v6874_v35 = vld [vmem:[%s8524_s8 + $0xac] ss:$12 sps:$4 sm:$0xff]  }
 0x1fd   : > { %v6873_v33 = vld [vmem:[%s8524_s8 + $0x90] ss:$12 sps:$4 sm:$0xff]   ;;  %v6876_v36 = vld [vmem:[%s8524_s8 + $0xa8] ss:$12 sps:$4 sm:$0xff]   ;;  %v6878_v38 = vld [vmem:[%s8524_s8 + $0x20] ss:$12 sps:$4 sm:$0xff]   ;;  %s10160_s12 = scalar_lea.vmem %s10159_s21, %s8567_s3 }
 0x1fe   : > { %1473 = vmatpush1.bf16.msra.mxu0 %v6858_v23  ;;  %v6877_v37 = vld [vmem:[%s8524_s8 + $0x8] ss:$12 sps:$4 sm:$0xff]   ;;  %v6879_v39 = vld [vmem:[%s8524_s8 + $0x38] ss:$12 sps:$4 sm:$0xff]   ;;  %v5979_v52 = vld [vmem:[%s10160_s12] ss:$0 sm:$0xff]  ;;  %s10162_s22 = scalar_lea.vmem %s10161_s10, %s8567_s3 }
 0x1ff   : > { %1474 = vmatprep.subr.bf16.mxu0 %v6859_v24  ;;  %6329 = vmatprep.subr.bf16.mxu1 %v6877_v37  ;;  %v5980_v56 = vld [vmem:[%s10162_s22] ss:$0 sm:$0xff]  ;;  %v6880_v61 = vld [vmem:[%s8524_s8 + $0x50] ss:$12 sps:$4 sm:$0xff]   ;;  %v6881_v62 = vld [vmem:[%s8524_s8 + $0x68] ss:$12 sps:$4 sm:$0xff]  }
 0x200   : > { %1247 = vadd.xlane.f32.xlu0 %v1227_v6  ;;  %6330 = vmatpush3.bf16.msra.mxu1 %v6877_v37  ;;  %v6882_v63 = vld [vmem:[%s8524_s8 + $0x80] ss:$12 sps:$4 sm:$0xff]   ;;  %v6883_v0 = vld [vmem:[%s8524_s8 + $0x98] ss:$12 sps:$4 sm:$0xff]   ;;  %v6884_v1 = vld [vmem:[%s8524_s8 + $0xb0] ss:$12 sps:$4 sm:$0xff]  }
 0x201   : > { %6331 = vmatprep.subr.bf16.mxu1 %v6878_v38  ;;  %vm7789_vm0 = vmmov 0   ;;  %vm1574_vm1 = vcmask 261120   ;;  %vm1622_vm2 = vcmask 130048   ;;  %s7790_s8 = smov 96   ;;  %s7791_s25 = smov 64   ;;  %vm2083_vm3 = vcmask 523264  }
 0x202   : > { %1475 = vmatpush1.bf16.msra.mxu0 %v6861_v25  ;;  %s7792_s19 = smov 32   ;;  %vm2086_vm4 = vcmask 785408   ;;  %s10163_s11 = sld [smem:[#allocation69_spill]] }
 0x203   : > { %1476 = vmatprep.subr.bf16.mxu0 %v6862_v26  ;;  %s10165_s5 = sld [smem:[#allocation70_spill]]  ;;  %s10170_s21 = sld [smem:[#allocation54_spill]] }
 0x204   : > { %6332 = vmatpush3.bf16.msra.mxu1 %v6878_v38  ;;  %v8705_v38 = vld [vmem:[#allocation7] sm:$0xff] }
 0x205   : > { %6333 = vmatprep.subr.bf16.mxu1 %v6879_v39 }
 0x206   : > { %1477 = vmatpush1.bf16.msra.mxu0 %v6864_v27 }
 0x207   : > { %1478 = vmatprep.subr.bf16.mxu0 %v6865_v28 }
 0x208   : > { %6334 = vmatpush3.bf16.msra.mxu1 %v6879_v39  ;;  %s10164_s26 = scalar_lea.vmem %s10163_s11, %s8567_s3 }
 0x209   : > { %6335 = vmatprep.subr.bf16.mxu1 %v6880_v61  ;;  %s10166_s29 = scalar_lea.vmem %s10165_s5, %s8567_s3  ;;  %s10187_s3 = sld [smem:[#allocation38_spill]] }
 0x20a   : > { %1479 = vmatpush1.bf16.msra.mxu0 %v6867_v29 }
 0x20b   : > { %1480 = vmatprep.subr.bf16.mxu0 %v6868_v30 }
 0x20c   : > { %6336 = vmatpush3.bf16.msra.mxu1 %v6880_v61 }
 0x20d   : > { %6337 = vmatprep.subr.bf16.mxu1 %v6881_v62 }
 0x20e   : > { %1481 = vmatpush1.bf16.msra.mxu0 %v6870_v31 }
 0x20f   : > { %1482 = vmatprep.subr.bf16.mxu0 %v6871_v32  ;;  %p6148_p2 = scmp.ne.s32.totalorder %s10187_s3, 1 }
 0x210   : > { %6338 = vmatpush3.bf16.msra.mxu1 %v6881_v62 }
 0x211   : > { %6339 = vmatprep.subr.bf16.mxu1 %v6882_v63 }
 0x212   : > { %1483 = vmatpush1.bf16.msra.mxu0 %v6873_v33 }
 0x213   : > { %1484 = vmatprep.subr.bf16.mxu0 %v6874_v35 }
 0x214   : > { %6340 = vmatpush3.bf16.msra.mxu1 %v6882_v63 }
 0x215   : > { %6341 = vmatprep.subr.bf16.mxu1 %v6883_v0 }
 0x216   : > { %1485 = vmatpush1.bf16.msra.mxu0 %v6876_v36 }
 0x217   : > { %6379 = vmatprep.subr.bf16.mxu0 %v7788_v2 }
 0x218   : > { %6342 = vmatpush3.bf16.msra.mxu1 %v6883_v0 }
 0x219   : > { %6343 = vmatprep.subr.bf16.mxu1 %v6884_v1 }
 0x21c   : > { %6344 = vmatpush3.bf16.msra.mxu1 %v6884_v1 }
 0x21d   : > { %6349 = vmatprep.subr.bf16.mxu1 %v7788_v2 }
 0x285   : > { %v1244_v10 = vpop.xlane.xlu0 %1243 }
 0x286   : > { %v1252_v11 = vmul.f32 0.0078125, %v1244_v10 }
 0x288   : > { %v8629_v12 = vsub.f32 %v1225_v4, %v1252_v11 }
 0x289   : > { %v1246_v13 = vpop.xlane.xlu0 %1245 }
 0x28a   : > { %v1253_v14 = vmul.f32 0.0078125, %v1246_v13  ;;  %v1260_v15 = vmul.f32 %v8629_v12, %v8629_v12 }
 0x28c   : > { %1264 = vadd.xlane.f32.xlu1 %v1260_v15  ;;  %v8633_v16 = vsub.f32 %v1226_v5, %v1253_v14 }
 0x28d   : > { %v1248_v17 = vpop.xlane.xlu0 %1247 }
 0x28e   : > { %v1261_v18 = vmul.f32 %v8633_v16, %v8633_v16  ;;  %v1254_v19 = vmul.f32 0.0078125, %v1248_v17 }
 0x290   : > { %1266 = vadd.xlane.f32.xlu1 %v1261_v18  ;;  %v8637_v20 = vsub.f32 %v1227_v6, %v1254_v19 }
 0x292   : > { %v1262_v22 = vmul.f32 %v8637_v20, %v8637_v20 }
 0x294   : > { %1249 = vadd.xlane.f32.xlu1 %v1228_v21  ;;  %1268 = vadd.xlane.f32.xlu0 %v1262_v22 }
 0x319   : > { %v1265_v40 = vpop.xlane.xlu1 %1264 }
 0x31a   : > { %v1272_v41 = vmul.f32 0.0078125, %v1265_v40  ;;  %v8707_v40 = vld [vmem:[#allocation7 + $0x8] sm:$0xff] }
 0x31c   : > { %v1276_v42 = vadd.f32 1e-05, %v1272_v41 }
 0x31d   : > { %v1267_v43 = vpop.xlane.xlu1 %1266 }
 0x31e   : > { %7013 = vrsqrt.f32 %v1276_v42  ;;  %v1273_v44 = vmul.f32 0.0078125, %v1267_v43 }
 0x320   : > { %v1277_v45 = vadd.f32 1e-05, %v1273_v44 }
 0x321   : > { %v1250_v46 = vpop.xlane.xlu1 %1249  ;;  %v1269_v3 = vpop.xlane.xlu0 %1268 }
 0x322   : > { %7015 = vrsqrt.f32 %v1277_v45  ;;  %v1255_v47 = vmul.f32 0.0078125, %v1250_v46  ;;  %v1274_v4 = vmul.f32 0.0078125, %v1269_v3 }
 0x324   : > { %v1259_v48 = vsub.f32 %v1228_v21, %v1255_v47  ;;  %v1278_v5 = vadd.f32 1e-05, %v1274_v4 }
 0x326   : > { %v1263_v49 = vmul.f32 %v1259_v48, %v1259_v48  ;;  %7017 = vrsqrt.f32 %v1278_v5 }
 0x328   : > { %v7014_v50 = vpop.eup %7013  ;;  %1270 = vadd.xlane.f32.xlu1 %v1263_v49 }
 0x329   : > { %v1284_v51 = vmul.f32 %v7014_v50, %v8629_v12 }
 0x32b   : > { %v1294_v55 = vmul.f32 %v5979_v52, %v1284_v51 }
 0x32c   : > { %v7016_v53 = vpop.eup %7015 }
 0x32d   : > { %v1285_v54 = vmul.f32 %v7016_v53, %v8633_v16  ;;  %v1304_v58 = vadd.f32 %v5980_v56, %v1294_v55 }
 0x32f   : > { %v1295_v57 = vmul.f32 %v5979_v52, %v1285_v54 }
 0x330   : > { %v7018_v9 = vpop.eup %7017 }
 0x331   : > { %v1305_v59 = vadd.f32 %v5980_v56, %v1295_v57  ;;  %v1286_v10 = vmul.f32 %v7018_v9, %v8637_v20  ;;  %v8731_v9 = vld [vmem:[#allocation7 + $0x10] sm:$0xff] }
 0x333   : > { %v1308_v60 = vpack.c.bf16 %v1305_v59, %v1304_v58  ;;  %v1296_v13 = vmul.f32 %v5979_v52, %v1286_v10 }
 0x335   : > { %1503 = vmatmul.mubr.bf16.vlgmr.msra.gmra.mrb[0].mxu0 %v1308_v60  ;;  %6345 = vmatprep.mubr.bf16.mxu1 %v1308_v60  ;;  %v1306_v15 = vadd.f32 %v5980_v56, %v1296_v13 }
 0x336   : > { %1512 = vmatprep.mubr.bf16.mxu0 %v7787_v34 }
 0x3b5   : > { %v1271_v6 = vpop.xlane.xlu1 %1270 }
 0x3b6   : > { %v1275_v7 = vmul.f32 0.0078125, %v1271_v6 }
 0x3b8   : > { %v1279_v8 = vadd.f32 1e-05, %v1275_v7 }
 0x3ba   : > { %7019 = vrsqrt.f32 %v1279_v8 }
 0x3c4   : > { %v7020_v11 = vpop.eup %7019 }
 0x3c5   : > { %v1287_v12 = vmul.f32 %v7020_v11, %v1259_v48  ;;  %v8733_v11 = vld [vmem:[#allocation7 + $0x18] sm:$0xff] }
 0x3c7   : > { %v1297_v14 = vmul.f32 %v5979_v52, %v1287_v12 }
 0x3c9   : > { %v1307_v16 = vadd.f32 %v5980_v56, %v1297_v14 }
 0x3cb   : > { %v1309_v17 = vpack.c.bf16 %v1307_v16, %v1306_v15 }
 0x3cd   : > { %1513 = vmatmul.mubr.bf16.gmra.mrb[4].mxu0 %v1309_v17  ;;  %6346 = vmatmul.mubr.bf16.vlgmr.msra.gmra.mrb[0].mxu1 %v1309_v17 }
 0x3ce   : > { %6351 = vmatprep.mubr.msk.bf16.mxu1 %vm7789_vm0, %v7788_v2  ;;  %6381 = vmatprep.mubr.msk.bf16.mxu0 %vm7789_vm0, %v7788_v2 }
 0x408   : > { %v1504_v18 = vpop.f32.mrb[0].mxu0 }
 0x409   : > { %v1506_v19 = vpop.f32.mrb[1].mxu0 }
 0x40a   : > { %v1508_v21 = vpop.f32.mrb[2].mxu0 }
 0x40b   : > { %v8684_v20 = vpack.c.bf16 %v1508_v21, %v1504_v18  ;;  %v1510_v22 = vpop.f32.mrb[3].mxu0 }
 0x40c   : > { %v8686_v23 = vpack.c.bf16 %v1510_v22, %v1506_v19 }
 0x40e   : > { %v1579_v24 = vsel %vm1574_vm1, %v8686_v23, 0 }
 0x40f   : > { %6350 = vmatpush3.bf16.xpose.msra.mxu1 %v1579_v24 }
 0x410   : > { %6355 = vmatprep.subr.bf16.mxu1 %v7788_v2 }
 0x416   : > { %6352 = vmatmul.mubr.msk.bf16.vlgmr.msra.gmra.mrb[4].mxu1 %vm1574_vm1, %v8684_v20 }
 0x417   : > { %6357 = vmatprep.mubr.msk.bf16.mxu1 %vm7789_vm0, %v7788_v2 }
 0x4a0   : > { %v1514_v25 = vpop.f32.mrb[4].mxu0  ;;  %v6347_v26 = vpop.f32.mrb[0].mxu1 }
 0x4a1   : > { %v1516_v27 = vpop.f32.mrb[5].mxu0  ;;  %v1557_v28 = vpop.f32.mrb[1].mxu1 }
 0x4a2   : > { %v1518_v29 = vpop.f32.mrb[6].mxu0  ;;  %v6348_v30 = vpop.f32.mrb[2].mxu1 }
 0x4a3   : > { %v8695_v31 = vpack.c.bf16 %v1518_v29, %v1514_v25  ;;  %v8697_v32 = vpack.c.bf16 %v6348_v30, %v6347_v26  ;;  %v1520_v33 = vpop.f32.mrb[7].mxu0  ;;  %v1560_v35 = vpop.f32.mrb[3].mxu1 }
 0x4a4   : > { %v8699_v36 = vpack.c.bf16 %v1520_v33, %v1516_v27  ;;  %v8701_v37 = vpack.c.bf16 %v1560_v35, %v1557_v28 }
 0x4a6   : > { %6356 = vmatpush3.bf16.msra.mxu1 %v8701_v37 }
 0x4a7   : > { %6361 = vmatprep.subr.bf16.mxu1 %v7788_v2 }
 0x4e9   : > { %v1615_v39 = vpop.f32.mrb[4].mxu1 }
 0x4ea   : > { %v1616_v41 = vadd.f32 %v1615_v39, %v8705_v38  ;;  %v6353_v42 = vpop.f32.mrb[5].mxu1 }
 0x4eb   : > { %v1618_v43 = vpop.f32.mrb[6].mxu1 }
 0x4ec   : > { %v1619_v44 = vadd.f32 %v1618_v43, %v8707_v40  ;;  %v6354_v45 = vpop.f32.mrb[7].mxu1  ;;  %v1623_v46 = vsel %vm1622_vm2, %v1616_v41, -inf }
 0x4ed   : > { %1624 = vmax.xlane.f32.xlu0 %v1623_v46 }
 0x4ee   : > { %v1626_v47 = vsel %vm1622_vm2, %v1619_v44, -inf }
 0x4ef   : > { %1627 = vmax.xlane.f32.xlu1 %v1626_v47 }
 0x57a   : > { %v1625_v48 = vpop.xlane.xlu0 %1624 }
 0x57b   : > { %v1629_v49 = vsub.f32 %v1616_v41, %v1625_v48 }
 0x57c   : > { %v1628_v50 = vpop.xlane.xlu1 %1627 }
 0x57d   : > { %v1631_v51 = vmul.f32 1.442695, %v1629_v49  ;;  %v1630_v52 = vsub.f32 %v1619_v44, %v1628_v50  ;;  %v2095_v50 = vsel %vm1574_vm1, %v8699_v36, 0 }
 0x57f   : > { %7021 = vpow2.f32 %v1631_v51  ;;  %v1633_v53 = vmul.f32 1.442695, %v1630_v52 }
 0x581   : > { %7023 = vpow2.f32 %v1633_v53 }
 0x589   : > { %v7022_v54 = vpop.eup %7021 }
 0x58a   : > { %v1635_v55 = vsel %vm1622_vm2, %v7022_v54, 0.0 }
 0x58b   : > { %v7024_v56 = vpop.eup %7023  ;;  %1636 = vadd.xlane.f32.xlu0 %v1635_v55 }
 0x58c   : > { %v1638_v57 = vsel %vm1622_vm2, %v7024_v56, 0.0 }
 0x58d   : > { %1639 = vadd.xlane.f32.xlu1 %v1638_v57 }
 0x59e   : > { %1692 = vrot.lane.b32.xlu1 %v8684_v20, %s7790_s8 }
 0x5a1   : > { %1695 = vrot.lane.b32.xlu0 %v8686_v23, %s7790_s8 }
 0x618   : > { %v1637_v58 = vpop.xlane.xlu0 %1636 }
 0x619   : > { %7025 = vrcp.f32 %v1637_v58 }
 0x61a   : > { %v1640_v59 = vpop.xlane.xlu1 %1639 }
 0x61b   : > { %7027 = vrcp.f32 %v1640_v59 }
 0x61c   : > { %v1696_v0 = vpop.permute.xlu0 %1695 }
 0x61d   : > { %v1701_v3 = vsel %vm1574_vm1, %v1696_v0, 0 }
 0x61e   : > { %v1693_v4 = vpop.permute.xlu1 %1692 }
 0x623   : > { %v7026_v60 = vpop.eup %7025 }
 0x624   : > { %v1642_v62 = vmul.f32 %v7026_v60, %v7022_v54 }
 0x625   : > { %v7028_v61 = vpop.eup %7027 }
 0x626   : > { %v1644_v63 = vmul.f32 %v7028_v61, %v7024_v56 }
 0x628   : > { %v1645_v1 = vpack.c.bf16 %v1644_v63, %v1642_v62  ;;  %v1237_v63 = vld [vmem:[#allocation7 + $0x20] sm:$0xff] }
 0x62a   : > { %6358 = vmatmul.mubr.msk.bf16.vlgmr.msra.gmra.mrb[8].mxu1 %vm1622_vm2, %v1645_v1  ;;  %v1238_v1 = vld [vmem:[#allocation7 + $0x28] sm:$0xff] }
 0x62b   : > { %6362 = vmatpush3.bf16.xpose.msra.mxu1 %v1701_v3  ;;  %6363 = vmatprep.mubr.msk.bf16.mxu1 %vm7789_vm0, %v7788_v2 }
 0x62c   : > { %6367 = vmatprep.subr.bf16.mxu1 %v7788_v2 }
 0x632   : > { %6364 = vmatmul.mubr.msk.bf16.vlgmr.msra.gmra.mrb[12].mxu1 %vm1574_vm1, %v1693_v4 }
 0x633   : > { %6369 = vmatprep.mubr.msk.bf16.mxu1 %vm7789_vm0, %v7788_v2 }
 0x6fd   : > { %v8727_v5 = vpop.f32.mrb[8].mxu1 }
 0x6fe   : > { %v6359_v6 = vpop.f32.mrb[9].mxu1 }
 0x6ff   : > { %v8729_v7 = vpop.f32.mrb[10].mxu1 }
 0x700   : > { %v6360_v8 = vpop.f32.mrb[11].mxu1 }
 0x705   : > { %v1737_v10 = vpop.f32.mrb[12].mxu1 }
 0x706   : > { %v1738_v12 = vadd.f32 %v1737_v10, %v8731_v9  ;;  %v6365_v13 = vpop.f32.mrb[13].mxu1 }
 0x707   : > { %v1740_v14 = vpop.f32.mrb[14].mxu1 }
 0x708   : > { %v1741_v15 = vadd.f32 %v1740_v14, %v8733_v11  ;;  %v6366_v16 = vpop.f32.mrb[15].mxu1  ;;  %v1744_v17 = vsel %vm1622_vm2, %v1738_v12, -inf  ;;  %v1239_v14 = vld [vmem:[#allocation7 + $0x30] sm:$0xff] }
 0x709   : > { %1745 = vmax.xlane.f32.xlu1 %v1744_v17  ;;  %v1240_v16 = vld [vmem:[#allocation7 + $0x38] sm:$0xff] }
 0x70a   : > { %v1747_v18 = vsel %vm1622_vm2, %v1741_v15, -inf }
 0x70b   : > { %1748 = vmax.xlane.f32.xlu0 %v1747_v18 }
 0x71a   : > { %1817 = vrot.lane.b32.xlu1 %v8686_v23, %s7791_s25 }
 0x796   : > { %v1746_v19 = vpop.xlane.xlu1 %1745 }
 0x797   : > { %v1750_v21 = vsub.f32 %v1738_v12, %v1746_v19 }
 0x798   : > { %v1749_v22 = vpop.xlane.xlu0 %1748 }
 0x799   : > { %v1752_v24 = vmul.f32 1.442695, %v1750_v21  ;;  %v1751_v25 = vsub.f32 %v1741_v15, %v1749_v22 }
 0x79b   : > { %7029 = vpow2.f32 %v1752_v24  ;;  %v1754_v26 = vmul.f32 1.442695, %v1751_v25 }
 0x79d   : > { %7031 = vpow2.f32 %v1754_v26 }
 0x7a5   : > { %v7030_v27 = vpop.eup %7029 }
 0x7a6   : > { %v1756_v28 = vsel %vm1622_vm2, %v7030_v27, 0.0 }
 0x7a7   : > { %v7032_v29 = vpop.eup %7031  ;;  %1757 = vadd.xlane.f32.xlu0 %v1756_v28 }
 0x7a8   : > { %v1759_v30 = vsel %vm1622_vm2, %v7032_v29, 0.0 }
 0x7a9   : > { %1760 = vadd.xlane.f32.xlu1 %v1759_v30 }
 0x7ba   : > { %1815 = vrot.lane.b32.xlu1 %v8684_v20, %s7791_s25 }
 0x7bd   : > { %1768 = vrot.lane.b32.xlu0 %v8701_v37, %s7790_s8 }
 0x7be   : > { %1938 = vrot.lane.b32.xlu1 %v8686_v23, %s7792_s19  ;;  %v1818_v23 = vpop.permute.xlu1 %1817 }
 0x7bf   : > { %v1823_v46 = vsel %vm1574_vm1, %v1818_v23, 0 }
 0x7c1   : > { %1936 = vrot.lane.b32.xlu0 %v8684_v20, %s7792_s19 }
 0x7c2   : > { %2210 = vrot.lane.b32.xlu1 %v8699_v36, %s7790_s8 }
 0x7c5   : > { %2207 = vrot.lane.b32.xlu0 %v8695_v31, %s7790_s8 }
 0x7c6   : > { %2332 = vrot.lane.b32.xlu1 %v8699_v36, %s7791_s25 }
 0x7c9   : > { %2330 = vrot.lane.b32.xlu0 %v8695_v31, %s7791_s25 }
 0x7ca   : > { %2453 = vrot.lane.b32.xlu1 %v8699_v36, %s7792_s19 }
 0x7cd   : > { %2451 = vrot.lane.b32.xlu0 %v8695_v31, %s7792_s19 }
 0x834   : > { %v1758_v20 = vpop.xlane.xlu0 %1757 }
 0x835   : > { %7033 = vrcp.f32 %v1758_v20 }
 0x836   : > { %v1761_v33 = vpop.xlane.xlu1 %1760 }
 0x837   : > { %7035 = vrcp.f32 %v1761_v33 }
 0x838   : > { %v1769_v35 = vpop.permute.xlu0 %1768 }
 0x839   : > { %6368 = vmatpush3.bf16.msra.mxu1 %v1769_v35 }
 0x83a   : > { %6373 = vmatprep.subr.bf16.mxu1 %v7788_v2  ;;  %v1816_v45 = vpop.permute.xlu1 %1815 }
 0x83c   : > { %v1937_v49 = vpop.permute.xlu0 %1936 }
 0x83e   : > { %v1939_v47 = vpop.permute.xlu1 %1938 }
 0x83f   : > { %v7034_v39 = vpop.eup %7033  ;;  %v1944_v48 = vsel %vm1574_vm1, %v1939_v47, 0 }
 0x840   : > { %v1763_v42 = vmul.f32 %v7034_v39, %v7030_v27  ;;  %v2208_v36 = vpop.permute.xlu0 %2207 }
 0x841   : > { %v7036_v41 = vpop.eup %7035 }
 0x842   : > { %v1765_v43 = vmul.f32 %v7036_v41, %v7032_v29  ;;  %v2211_v51 = vpop.permute.xlu1 %2210 }
 0x843   : > { %v2216_v52 = vsel %vm1574_vm1, %v2211_v51, 0 }
 0x844   : > { %v1766_v44 = vpack.c.bf16 %v1765_v43, %v1763_v42 }
 0x846   : > { %6370 = vmatmul.mubr.msk.bf16.vlgmr.msra.gmra.mrb[16].mxu1 %vm1622_vm2, %v1766_v44  ;;  %v2333_v53 = vpop.permute.xlu1 %2332 }
 0x847   : > { %6374 = vmatpush3.bf16.xpose.msra.mxu1 %v1823_v46  ;;  %6375 = vmatprep.mubr.msk.bf16.mxu1 %vm7789_vm0, %v7788_v2  ;;  %v2338_v54 = vsel %vm1574_vm1, %v2333_v53, 0 }
 0x848   : > { %6385 = vmatprep.subr.bf16.mxu1 %v7788_v2 }
 0x84a   : > { %v2454_v55 = vpop.permute.xlu1 %2453 }
 0x84b   : > { %v2459_v56 = vsel %vm1574_vm1, %v2454_v55, 0 }
 0x84e   : > { %6376 = vmatmul.mubr.msk.bf16.vlgmr.msra.gmra.mrb[20].mxu1 %vm1574_vm1, %v1816_v45 }
 0x84f   : > { %6386 = vmatpush3.bf16.xpose.msra.mxu1 %v1944_v48  ;;  %6387 = vmatprep.mubr.msk.bf16.mxu1 %vm7789_vm0, %v7788_v2 }
 0x850   : > { %6397 = vmatprep.subr.bf16.mxu1 %v7788_v2 }
 0x856   : > { %6388 = vmatmul.mubr.msk.bf16.vlgmr.msra.gmra.mrb[24].mxu1 %vm1574_vm1, %v1937_v49 }
 0x857   : > { %6398 = vmatpush3.bf16.xpose.msra.mxu1 %v2095_v50  ;;  %6399 = vmatprep.mubr.msk.bf16.mxu1 %vm7789_vm0, %v7788_v2 }
 0x858   : > { %6409 = vmatprep.subr.bf16.mxu1 %v7788_v2 }
 0x85e   : > { %6400 = vmatmul.mubr.msk.bf16.vlgmr.msra.gmra.mrb[28].mxu1 %vm1574_vm1, %v8695_v31  ;;  %v2331_v31 = vpop.permute.xlu0 %2330 }
 0x85f   : > { %6410 = vmatpush3.bf16.xpose.msra.mxu1 %v2216_v52  ;;  %6411 = vmatprep.mubr.msk.bf16.mxu1 %vm7789_vm0, %v7788_v2 }
 0x860   : > { %6421 = vmatprep.subr.bf16.mxu1 %v7788_v2 }
 0x862   : > { %v2452_v57 = vpop.permute.xlu0 %2451 }
 0x866   : > { %6412 = vmatmul.mubr.msk.bf16.vlgmr.msra.gmra.mrb[32].mxu1 %vm1574_vm1, %v2208_v36 }
 0x867   : > { %6422 = vmatpush3.bf16.xpose.msra.mxu1 %v2338_v54  ;;  %6423 = vmatprep.mubr.msk.bf16.mxu1 %vm7789_vm0, %v7788_v2 }
 0x868   : > { %6433 = vmatprep.subr.bf16.mxu1 %v7788_v2 }
 0x86e   : > { %6424 = vmatmul.mubr.msk.bf16.vlgmr.msra.gmra.mrb[36].mxu1 %vm1574_vm1, %v2331_v31 }
 0x86f   : > { %6434 = vmatpush3.bf16.xpose.msra.mxu1 %v2459_v56  ;;  %6435 = vmatprep.mubr.msk.bf16.mxu1 %vm7789_vm0, %v7788_v2 }
 0x876   : > { %6436 = vmatmul.mubr.msk.bf16.vlgmr.msra.gmra.mrb[40].mxu1 %vm1574_vm1, %v2452_v57 }
 0x919   : > { %v8796_v58 = vpop.f32.mrb[16].mxu1 }
 0x91a   : > { %v6371_v59 = vpop.f32.mrb[17].mxu1 }
 0x91b   : > { %v8798_v60 = vpop.f32.mrb[18].mxu1 }
 0x91c   : > { %v6793_v61 = vpack.i.bf16 %v8798_v60, %v8796_v58  ;;  %v6372_v62 = vpop.f32.mrb[19].mxu1 }
 0x921   : > { %v1859_v0 = vpop.f32.mrb[20].mxu1 }
 0x922   : > { %v8802_v3 = vadd.f32 %v1859_v0, %v1237_v63  ;;  %v6377_v4 = vpop.f32.mrb[21].mxu1 }
 0x923   : > { %v1862_v6 = vpop.f32.mrb[22].mxu1 }
 0x924   : > { %v8804_v8 = vadd.f32 %v1862_v6, %v1238_v1  ;;  %v6378_v10 = vpop.f32.mrb[23].mxu1  ;;  %v1866_v12 = vsel %vm1622_vm2, %v8802_v3, -inf }
 0x925   : > { %1867 = vmax.xlane.f32.xlu1 %v1866_v12 }
 0x926   : > { %v1869_v13 = vsel %vm1622_vm2, %v8804_v8, -inf }
 0x927   : > { %1870 = vmax.xlane.f32.xlu0 %v1869_v13 }
 0x929   : > { %v1980_v15 = vpop.f32.mrb[24].mxu1 }
 0x92a   : > { %v1981_v17 = vadd.f32 %v1980_v15, %v1239_v14  ;;  %v6389_v18 = vpop.f32.mrb[25].mxu1 }
 0x92b   : > { %v1983_v19 = vpop.f32.mrb[26].mxu1 }
 0x92c   : > { %v8810_v21 = vadd.f32 %v1983_v19, %v1240_v16  ;;  %v6390_v22 = vpop.f32.mrb[27].mxu1  ;;  %v1987_v24 = vsel %vm1622_vm2, %v1981_v17, -inf }
 0x92d   : > { %1988 = vmax.xlane.f32.xlu0 %v1987_v24 }
 0x92e   : > { %v1990_v25 = vsel %vm1622_vm2, %v8810_v21, -inf }
 0x931   : > { %1991 = vmax.xlane.f32.xlu0 %v1990_v25  ;;  %v2131_v26 = vpop.f32.mrb[28].mxu1 }
 0x932   : > { %v2132_v27 = vadd.f32 %v2131_v26, %v8705_v38  ;;  %v6401_v28 = vpop.f32.mrb[29].mxu1 }
 0x933   : > { %v2134_v29 = vpop.f32.mrb[30].mxu1 }
 0x934   : > { %v8817_v30 = vadd.f32 %v2134_v29, %v8707_v40  ;;  %v6402_v23 = vpop.f32.mrb[31].mxu1  ;;  %v2138_v20 = vsel %vm1622_vm2, %v2132_v27, -inf }
 0x935   : > { %2139 = vmax.xlane.f32.xlu1 %v2138_v20 }
 0x936   : > { %v2141_v33 = vsel %vm1622_vm2, %v8817_v30, -inf }
 0x937   : > { %2142 = vmax.xlane.f32.xlu0 %v2141_v33 }
 0x939   : > { %v2252_v35 = vpop.f32.mrb[32].mxu1 }
 0x93a   : > { %v2253_v39 = vadd.f32 %v2252_v35, %v8731_v9  ;;  %v6413_v41 = vpop.f32.mrb[33].mxu1 }
 0x93b   : > { %v2255_v42 = vpop.f32.mrb[34].mxu1 }
 0x93c   : > { %v8824_v38 = vadd.f32 %v2255_v42, %v8733_v11  ;;  %v6414_v43 = vpop.f32.mrb[35].mxu1  ;;  %v2259_v40 = vsel %vm1622_vm2, %v2253_v39, -inf }
 0x93d   : > { %2260 = vmax.xlane.f32.xlu1 %v2259_v40 }
 0x93e   : > { %v2262_v44 = vsel %vm1622_vm2, %v8824_v38, -inf }
 0x93f   : > { %2263 = vmax.xlane.f32.xlu0 %v2262_v44 }
 0x941   : > { %v2374_v45 = vpop.f32.mrb[36].mxu1 }
 0x942   : > { %v8829_v46 = vadd.f32 %v2374_v45, %v1237_v63  ;;  %v6425_v47 = vpop.f32.mrb[37].mxu1 }
 0x943   : > { %v2377_v48 = vpop.f32.mrb[38].mxu1 }
 0x944   : > { %v8831_v49 = vadd.f32 %v2377_v48, %v1238_v1  ;;  %v6426_v9 = vpop.f32.mrb[39].mxu1  ;;  %v2381_v11 = vsel %vm1622_vm2, %v8829_v46, -inf }
 0x945   : > { %2382 = vmax.xlane.f32.xlu1 %v2381_v11 }
 0x946   : > { %v2384_v50 = vsel %vm1622_vm2, %v8831_v49, -inf }
 0x947   : > { %2385 = vmax.xlane.f32.xlu0 %v2384_v50 }
 0x949   : > { %v2495_v51 = vpop.f32.mrb[40].mxu1 }
 0x94a   : > { %v8837_v52 = vadd.f32 %v2495_v51, %v1239_v14  ;;  %v6437_v53 = vpop.f32.mrb[41].mxu1 }
 0x94b   : > { %v2498_v36 = vpop.f32.mrb[42].mxu1 }
 0x94c   : > { %v8839_v54 = vadd.f32 %v2498_v36, %v1240_v16  ;;  %v6438_v55 = vpop.f32.mrb[43].mxu1  ;;  %v2502_v31 = vsel %vm1622_vm2, %v8837_v52, -inf }
 0x94d   : > { %2503 = vmax.xlane.f32.xlu1 %v2502_v31 }
 0x94e   : > { %v2505_v56 = vsel %vm1622_vm2, %v8839_v54, -inf }
 0x94f   : > { %2506 = vmax.xlane.f32.xlu0 %v2505_v56 }
 0x95e   : > { %1889 = vrot.lane.b32.xlu1 %v8701_v37, %s7791_s25 }
 0x9b2   : > { %v1868_v57 = vpop.xlane.xlu1 %1867 }
 0x9b3   : > { %v1872_v59 = vsub.f32 %v8802_v3, %v1868_v57 }
 0x9b4   : > { %v1871_v62 = vpop.xlane.xlu0 %1870 }
 0x9b5   : > { %v1874_v63 = vmul.f32 1.442695, %v1872_v59  ;;  %v1873_v0 = vsub.f32 %v8804_v8, %v1871_v62 }
 0x9b7   : > { %7037 = vpow2.f32 %v1874_v63  ;;  %v1876_v1 = vmul.f32 1.442695, %v1873_v0 }
 0x9b9   : > { %7039 = vpow2.f32 %v1876_v1 }
 0x9ba   : > { %v1989_v4 = vpop.xlane.xlu0 %1988 }
 0x9bb   : > { %v1993_v6 = vsub.f32 %v1981_v17, %v1989_v4 }
 0x9bd   : > { %v1995_v10 = vmul.f32 1.442695, %v1993_v6 }
 0x9be   : > { %v1992_v33 = vpop.xlane.xlu0 %1991 }
 0x9bf   : > { %7041 = vpow2.f32 %v1995_v10  ;;  %v1994_v35 = vsub.f32 %v8810_v21, %v1992_v33 }
 0x9c1   : > { %v8849_v12 = vpop.eup %7037  ;;  %v1997_v41 = vmul.f32 1.442695, %v1994_v35 }
 0x9c2   : > { %v2140_v13 = vpop.xlane.xlu1 %2139  ;;  %v1878_v14 = vsel %vm1622_vm2, %v8849_v12, 0.0 }
 0x9c3   : > { %v8853_v15 = vpop.eup %7039  ;;  %v2144_v3 = vsub.f32 %v2132_v27, %v2140_v13  ;;  %1879 = vadd.xlane.f32.xlu1 %v1878_v14 }
 0x9c4   : > { %v1881_v8 = vsel %vm1622_vm2, %v8853_v15, 0.0 }
 0x9c5   : > { %v2146_v16 = vmul.f32 1.442695, %v2144_v3  ;;  %1882 = vadd.xlane.f32.xlu0 %v1881_v8 }
 0x9c7   : > { %7043 = vpow2.f32 %v2146_v16 }
 0x9c9   : > { %v8857_v18 = vpop.eup %7041 }
 0x9ca   : > { %v2261_v17 = vpop.xlane.xlu1 %2260  ;;  %v1999_v19 = vsel %vm1622_vm2, %v8857_v18, 0.0 }
 0x9cb   : > { %v2265_v22 = vsub.f32 %v2253_v39, %v2261_v17  ;;  %2000 = vadd.xlane.f32.xlu1 %v1999_v19  ;;  %v2143_v39 = vpop.xlane.xlu0 %2142 }
 0x9cc   : > { %v2145_v42 = vsub.f32 %v8817_v30, %v2143_v39 }
 0x9cd   : > { %v2267_v24 = vmul.f32 1.442695, %v2265_v22 }
 0x9ce   : > { %v2148_v40 = vmul.f32 1.442695, %v2145_v42 }
 0x9cf   : > { %7045 = vpow2.f32 %v2267_v24  ;;  %v2264_v43 = vpop.xlane.xlu0 %2263 }
 0x9d0   : > { %7047 = vpow2.f32 %v1997_v41  ;;  %v2266_v44 = vsub.f32 %v8824_v38, %v2264_v43 }
 0x9d1   : > { %v8861_v25 = vpop.eup %7043  ;;  %7049 = vpow2.f32 %v2148_v40 }
 0x9d2   : > { %v2150_v26 = vsel %vm1622_vm2, %v8861_v25, 0.0  ;;  %v2383_v27 = vpop.xlane.xlu1 %2382 }
 0x9d3   : > { %2151 = vadd.xlane.f32.xlu1 %v2150_v26  ;;  %v2387_v45 = vsub.f32 %v8829_v46, %v2383_v27 }
 0x9d4   : > { %v2386_v47 = vpop.xlane.xlu0 %2385 }
 0x9d5   : > { %v2389_v48 = vmul.f32 1.442695, %v2387_v45  ;;  %v2388_v21 = vsub.f32 %v8831_v49, %v2386_v47 }
 0x9d7   : > { %v2391_v30 = vmul.f32 1.442695, %v2388_v21 }
 0x9d9   : > { %v8865_v28 = vpop.eup %7045 }
 0x9da   : > { %v2504_v29 = vpop.xlane.xlu1 %2503  ;;  %v2271_v23 = vsel %vm1622_vm2, %v8865_v28, 0.0  ;;  %v7048_v11 = vpop.eup %7047 }
 0x9db   : > { %2272 = vadd.xlane.f32.xlu1 %v2271_v23  ;;  %2010 = vrot.lane.b32.xlu0 %v8701_v37, %s7792_s19  ;;  %v2269_v37 = vmul.f32 1.442695, %v2266_v44  ;;  %v2002_v38 = vsel %vm1622_vm2, %v7048_v11, 0.0  ;;  %v8881_v51 = vpop.eup %7049  ;;  %v2508_v53 = vsub.f32 %v8837_v52, %v2504_v29 }
 0x9dc   : > { %v2507_v9 = vpop.xlane.xlu0 %2506  ;;  %v2153_v36 = vsel %vm1622_vm2, %v8881_v51, 0.0 }
 0x9dd   : > { %7051 = vpow2.f32 %v2269_v37  ;;  %v2509_v50 = vsub.f32 %v8839_v54, %v2507_v9  ;;  %v2510_v49 = vmul.f32 1.442695, %v2508_v53 }
 0x9de   : > { %v1890_v20 = vpop.permute.xlu1 %1889  ;;  %7053 = vpow2.f32 %v2389_v48 }
 0x9df   : > { %6380 = vmatpush3.bf16.msra.mxu0 %v1890_v20  ;;  %7055 = vpow2.f32 %v2391_v30  ;;  %v2512_v46 = vmul.f32 1.442695, %v2509_v50 }
 0x9e0   : > { %6391 = vmatprep.subr.bf16.mxu0 %v7788_v2 }
 0x9e1   : > { %7057 = vpow2.f32 %v2512_v46 }
 0x9e2   : > { %7059 = vpow2.f32 %v2510_v49 }
 0x9e7   : > { %v8886_v55 = vpop.eup %7051 }
 0x9e8   : > { %v2274_v54 = vsel %vm1622_vm2, %v8886_v55, 0.0  ;;  %v8890_v31 = vpop.eup %7053 }
 0x9e9   : > { %v2393_v52 = vsel %vm1622_vm2, %v8890_v31, 0.0  ;;  %v8894_v56 = vpop.eup %7055 }
 0x9ea   : > { %v2396_v57 = vsel %vm1622_vm2, %v8894_v56, 0.0 }
 0x9eb   : > { %v8898_v59 = vpop.eup %7057 }
 0x9ec   : > { %2283 = vrot.lane.b32.xlu1 %v8697_v32, %s7790_s8  ;;  %v8900_v62 = vpop.eup %7059  ;;  %v2517_v63 = vsel %vm1622_vm2, %v8898_v59, 0.0 }
 0x9ed   : > { %v2514_v0 = vsel %vm1622_vm2, %v8900_v62, 0.0 }
 0x9fa   : > { %2003 = vadd.xlane.f32.xlu0 %v2002_v38 }
 0x9fe   : > { %2154 = vadd.xlane.f32.xlu0 %v2153_v36 }
 0xa02   : > { %2275 = vadd.xlane.f32.xlu0 %v2274_v54  ;;  %v6885_v54 = vld [vmem:[%s8530_s20] sm:$0xff]  }
 0xa03   : > { %6445 = vmatprep.subr.bf16.mxu1 %v6885_v54 }
 0xa04   : > { %6446 = vmatpush3.bf16.msra.mxu1 %v6885_v54 }
 0xa06   : > { %2394 = vadd.xlane.f32.xlu0 %v2393_v52  ;;  %v6887_v52 = vld [vmem:[%s8530_s20 + $0x10] sm:$0xff]  }
 0xa0a   : > { %2397 = vadd.xlane.f32.xlu0 %v2396_v57 }
 0xa0e   : > { %2518 = vadd.xlane.f32.xlu0 %v2517_v63 }
 0xa10   : > { %2515 = vadd.xlane.f32.xlu1 %v2514_v0 }
 0xa21   : > { %2525 = vrot.lane.b32.xlu1 %v8697_v32, %s7792_s19 }
 0xa24   : > { %2404 = vrot.lane.b32.xlu0 %v8697_v32, %s7791_s25 }
 0xa25   : > { %6794 = vrot.lane.b32.xlu1 %v6793_v61, %s7792_s19 }
 0xa50   : > { %v1880_v1 = vpop.xlane.xlu1 %1879 }
 0xa51   : > { %7061 = vrcp.f32 %v1880_v1  ;;  %v6888_v1 = vld [vmem:[%s8530_s20 + $0x18] sm:$0xff]  }
 0xa52   : > { %v1883_v4 = vpop.xlane.xlu0 %1882 }
 0xa53   : > { %7063 = vrcp.f32 %v1883_v4 }
 0xa56   : > { %v2011_v8 = vpop.permute.xlu0 %2010 }
 0xa58   : > { %v2001_v58 = vpop.xlane.xlu1 %2000 }
 0xa59   : > { %7065 = vrcp.f32 %v2001_v58 }
 0xa5b   : > { %v7062_v6 = vpop.eup %7061 }
 0xa5c   : > { %v1885_v13 = vmul.f32 %v7062_v6, %v8849_v12 }
 0xa5d   : > { %v7064_v10 = vpop.eup %7063 }
 0xa5e   : > { %v1887_v14 = vmul.f32 %v7064_v10, %v8853_v15  ;;  %v6889_v10 = vld [vmem:[%s8530_s20 + $0x20] sm:$0xff]  }
 0xa60   : > { %v1888_v3 = vpack.c.bf16 %v1887_v14, %v1885_v13  ;;  %v2152_v61 = vpop.xlane.xlu1 %2151 }
 0xa62   : > { %6382 = vmatmul.mubr.msk.bf16.vlgmr.msra.gmra.mrb[8].mxu0 %vm1622_vm2, %v1888_v3  ;;  %v6890_v3 = vld [vmem:[%s8530_s20 + $0x28] sm:$0xff]  }
 0xa63   : > { %6392 = vmatpush3.bf16.msra.mxu0 %v2011_v8  ;;  %6393 = vmatprep.mubr.msk.bf16.mxu0 %vm7789_vm0, %v7788_v2  ;;  %v7066_v15 = vpop.eup %7065 }
 0xa64   : > { %6403 = vmatprep.subr.bf16.mxu0 %v7788_v2  ;;  %v2006_v19 = vmul.f32 %v7066_v15, %v8857_v18  ;;  %v6892_v15 = vld [vmem:[%s8530_s20 + $0x38] sm:$0xff]  }
 0xa68   : > { %v2273_v22 = vpop.xlane.xlu1 %2272 }
 0xa6c   : > { %v2284_v35 = vpop.permute.xlu1 %2283 }
 0xa87   : > { %v2004_v60 = vpop.xlane.xlu0 %2003 }
 0xa88   : > { %7067 = vrcp.f32 %v2004_v60  ;;  %v6891_v60 = vld [vmem:[%s8530_s20 + $0x30] sm:$0xff]  }
 0xa8b   : > { %v2155_v16 = vpop.xlane.xlu0 %2154 }
 0xa8c   : > { %7069 = vrcp.f32 %v2155_v16 }
 0xa8d   : > { %7071 = vrcp.f32 %v2152_v61 }
 0xa8f   : > { %v2276_v12 = vpop.xlane.xlu0 %2275 }
 0xa90   : > { %7073 = vrcp.f32 %v2276_v12 }
 0xa91   : > { %7075 = vrcp.f32 %v2273_v22 }
 0xa92   : > { %v7068_v17 = vpop.eup %7067 }
 0xa93   : > { %v2008_v24 = vmul.f32 %v7068_v17, %v7048_v11  ;;  %v2395_v26 = vpop.xlane.xlu0 %2394 }
 0xa95   : > { %v2009_v27 = vpack.c.bf16 %v2008_v24, %v2006_v19 }
 0xa96   : > { %v7070_v29 = vpop.eup %7069 }
 0xa97   : > { %6394 = vmatmul.mubr.msk.bf16.vlgmr.msra.gmra.mrb[12].mxu0 %vm1622_vm2, %v2009_v27  ;;  %v7072_v23 = vpop.eup %7071  ;;  %v2159_v20 = vmul.f32 %v7070_v29, %v8881_v51  ;;  %v2398_v33 = vpop.xlane.xlu0 %2397 }
 0xa98   : > { %6404 = vmatpush3.bf16.msra.mxu0 %v8697_v32  ;;  %6405 = vmatprep.mubr.msk.bf16.mxu0 %vm7789_vm0, %v7788_v2  ;;  %v2157_v18 = vmul.f32 %v7072_v23, %v8861_v25  ;;  %7077 = vrcp.f32 %v2398_v33  ;;  %v8964_v33 = vld [vmem:[%s8512_s28] sm:$0xff] }
 0xa99   : > { %6415 = vmatprep.subr.bf16.mxu0 %v7788_v2  ;;  %7079 = vrcp.f32 %v2395_v26 }
 0xa9a   : > { %v2160_v39 = vpack.c.bf16 %v2159_v20, %v2157_v18  ;;  %v7074_v41 = vpop.eup %7073  ;;  %v1230_v18 = vld [vmem:[%s8512_s28 + $0x8] sm:$0xff] }
 0xa9b   : > { %v7076_v42 = vpop.eup %7075  ;;  %v2280_v32 = vmul.f32 %v7074_v41, %v8886_v55  ;;  %v2519_v43 = vpop.xlane.xlu0 %2518 }
 0xa9c   : > { %v2278_v25 = vmul.f32 %v7076_v42, %v8865_v28 }
 0xa9d   : > { %v2516_v40 = vpop.xlane.xlu1 %2515 }
 0xa9e   : > { %7081 = vrcp.f32 %v2516_v40  ;;  %v2281_v44 = vpack.c.bf16 %v2280_v32, %v2278_v25 }
 0xa9f   : > { %6406 = vmatmul.mubr.msk.bf16.vlgmr.msra.gmra.mrb[16].mxu0 %vm1622_vm2, %v2160_v39  ;;  %7083 = vrcp.f32 %v2519_v43  ;;  %v2405_v45 = vpop.permute.xlu0 %2404 }
 0xaa0   : > { %6416 = vmatpush3.bf16.msra.mxu0 %v2284_v35  ;;  %6417 = vmatprep.mubr.msk.bf16.mxu0 %vm7789_vm0, %v7788_v2 }
 0xaa1   : > { %6427 = vmatprep.subr.bf16.mxu0 %v7788_v2  ;;  %v2526_v11 = vpop.permute.xlu1 %2525 }
 0xaa2   : > { %v7078_v37 = vpop.eup %7077 }
 0xaa3   : > { %v7080_v47 = vpop.eup %7079  ;;  %v2402_v48 = vmul.f32 %v7078_v37, %v8894_v56 }
 0xaa4   : > { %v2400_v21 = vmul.f32 %v7080_v47, %v8890_v31  ;;  %v6886_v31 = vld [vmem:[%s8530_s20 + $0x8] sm:$0xff]  }
 0xaa5   : > { %6447 = vmatprep.subr.bf16.mxu1 %v6886_v31  ;;  %v6795_v35 = vpop.permute.xlu1 %6794 }
 0xaa6   : > { %v2403_v9 = vpack.c.bf16 %v2402_v48, %v2400_v21  ;;  %6448 = vmatpush3.bf16.msra.mxu1 %v6886_v31  ;;  %v6797_v41 = vunpack.i.h.bf16 %v6795_v35  ;;  %v6796_v42 = vunpack.i.l.bf16 %v6795_v35  ;;  %v6899_v35 = vld [vmem:[%s8539_s13 + $0x20] ss:$8 sps:$4 sm:$0xff]  }
 0xaa7   : > { %6418 = vmatmul.mubr.msk.bf16.vlgmr.msra.gmra.mrb[20].mxu0 %vm1622_vm2, %v2281_v44  ;;  %6449 = vmatprep.subr.bf16.mxu1 %v6887_v52 }
 0xaa8   : > { %6428 = vmatpush3.bf16.msra.mxu0 %v2405_v45  ;;  %6429 = vmatprep.mubr.msk.bf16.mxu0 %vm7789_vm0, %v7788_v2  ;;  %v7082_v28 = vpop.eup %7081  ;;  %v2082_v25 = vsel %vm1574_vm1, %v8729_v7, %v6797_v41  ;;  %v2081_v44 = vsel %vm1574_vm1, %v8727_v5, %v6796_v42  ;;  %v6902_v41 = vld [vmem:[%s8539_s13 + $0x30] ss:$8 sps:$4 sm:$0xff]   ;;  %v6907_v42 = vld [vmem:[%s8539_s13 + $0x44] ss:$8 sps:$4 sm:$0xff]  }
 0xaa9   : > { %6439 = vmatprep.subr.bf16.mxu0 %v7788_v2  ;;  %v7084_v30 = vpop.eup %7083  ;;  %v2521_v50 = vmul.f32 %v7082_v28, %v8900_v62 }
 0xaaa   : > { %v2523_v38 = vmul.f32 %v7084_v30, %v8898_v59  ;;  %6450 = vmatpush3.bf16.msra.mxu1 %v6887_v52 }
 0xaab   : > { %6451 = vmatprep.subr.bf16.mxu1 %v6888_v1 }
 0xaac   : > { %v2524_v51 = vpack.c.bf16 %v2523_v38, %v2521_v50 }
 0xaae   : > { %6452 = vmatpush3.bf16.msra.mxu1 %v6888_v1 }
 0xaaf   : > { %6430 = vmatmul.mubr.msk.bf16.vlgmr.msra.gmra.mrb[24].mxu0 %vm1622_vm2, %v2403_v9  ;;  %6453 = vmatprep.subr.bf16.mxu1 %v6889_v10 }
 0xab0   : > { %6440 = vmatpush3.bf16.msra.mxu0 %v2526_v11  ;;  %6441 = vmatprep.mubr.msk.bf16.mxu0 %vm7789_vm0, %v7788_v2 }
 0xab2   : > { %6454 = vmatpush3.bf16.msra.mxu1 %v6889_v10 }
 0xab3   : > { %6455 = vmatprep.subr.bf16.mxu1 %v6890_v3 }
 0xab6   : > { %6456 = vmatpush3.bf16.msra.mxu1 %v6890_v3  ;;  %v7237_v3 = vld [vmem:[%s8612_s30] sm:$0xff] }
 0xab7   : > { %6442 = vmatmul.mubr.msk.bf16.vlgmr.msra.gmra.mrb[28].mxu0 %vm1622_vm2, %v2524_v51  ;;  %6457 = vmatprep.subr.bf16.mxu1 %v6891_v60 }
 0xaba   : > { %6458 = vmatpush3.bf16.msra.mxu1 %v6891_v60  ;;  %v7238_v60 = vld [vmem:[%s8612_s30 + $0x18] sm:$0xff] }
 0xabb   : > { %6459 = vmatprep.subr.bf16.mxu1 %v6892_v15 }
 0xabe   : > { %6460 = vmatpush3.bf16.msra.mxu1 %v6892_v15 }
 0xb35   : > { %v1929_v53 = vpop.f32.mrb[8].mxu0 }
 0xb36   : > { %v6383_v46 = vpop.f32.mrb[9].mxu0 }
 0xb37   : > { %v1932_v36 = vpop.f32.mrb[10].mxu0 }
 0xb38   : > { %v6798_v55 = vpack.i.bf16 %v1932_v36, %v1929_v53  ;;  %v6384_v49 = vpop.f32.mrb[11].mxu0 }
 0xb3a   : > { %6799 = vrot.lane.b32.xlu1 %v6798_v55, %s7791_s25 }
 0xb6a   : > { %v2050_v56 = vpop.f32.mrb[12].mxu0 }
 0xb6b   : > { %v6395_v57 = vpop.f32.mrb[13].mxu0 }
 0xb6c   : > { %v2053_v59 = vpop.f32.mrb[14].mxu0 }
 0xb6d   : > { %v6803_v62 = vpack.i.bf16 %v2053_v59, %v2050_v56  ;;  %v6396_v63 = vpop.f32.mrb[15].mxu0  ;;  %v6021_v59 = vld [vmem:[%s10164_s26] ss:$0 sm:$0xff] }
 0xb6f   : > { %6804 = vrot.lane.b32.xlu1 %v6803_v62, %s7790_s8 }
 0xb72   : > { %v8951_v0 = vpop.f32.mrb[16].mxu0 }
 0xb73   : > { %v6407_v4 = vpop.f32.mrb[17].mxu0 }
 0xb74   : > { %v8954_v6 = vpop.f32.mrb[18].mxu0 }
 0xb75   : > { %v6408_v13 = vpop.f32.mrb[19].mxu0 }
 0xb7a   : > { %v2323_v14 = vpop.f32.mrb[20].mxu0 }
 0xb7b   : > { %v6419_v8 = vpop.f32.mrb[21].mxu0 }
 0xb7c   : > { %v2326_v58 = vpop.f32.mrb[22].mxu0 }
 0xb7d   : > { %v6808_v61 = vpack.i.bf16 %v2326_v58, %v2323_v14  ;;  %v6420_v16 = vpop.f32.mrb[23].mxu0 }
 0xb7f   : > { %6809 = vrot.lane.b32.xlu1 %v6808_v61, %s7792_s19 }
 0xb82   : > { %v2444_v12 = vpop.f32.mrb[24].mxu0 }
 0xb83   : > { %v6431_v17 = vpop.f32.mrb[25].mxu0 }
 0xb84   : > { %v2447_v19 = vpop.f32.mrb[26].mxu0  ;;  %v7239_v17 = vld [vmem:[%s8612_s30 + $0x8] sm:$0xff] }
 0xb85   : > { %v6813_v22 = vpack.i.bf16 %v2447_v19, %v2444_v12  ;;  %v6432_v24 = vpop.f32.mrb[27].mxu0 }
 0xb86   : > { %v7240_v24 = vld [vmem:[%s8612_s30 + $0x10] sm:$0xff] }
 0xb87   : > { %6814 = vrot.lane.b32.xlu0 %v6813_v22, %s7791_s25 }
 0xb8a   : > { %v2565_v26 = vpop.f32.mrb[28].mxu0 }
 0xb8b   : > { %v6443_v27 = vpop.f32.mrb[29].mxu0 }
 0xb8c   : > { %v2568_v29 = vpop.f32.mrb[30].mxu0 }
 0xb8d   : > { %v6818_v23 = vpack.i.bf16 %v2568_v29, %v2565_v26  ;;  %v6444_v20 = vpop.f32.mrb[31].mxu0  ;;  %v6895_v29 = vld [vmem:[%s8539_s13 + $0x4] ss:$8 sps:$4 sm:$0xff]  }
 0xb8e   : > { %3059 = vmatprep.subr.bf16.mxu1 %v6895_v29  ;;  %v6898_v20 = vld [vmem:[%s8539_s13 + $0x14] ss:$8 sps:$4 sm:$0xff]  }
 0xb8f   : > { %6819 = vrot.lane.b32.xlu1 %v6818_v23, %s7790_s8  ;;  %v6893_v23 = vld [vmem:[%s8539_s13] ss:$8 sps:$4 sm:$0xff]  }
 0xba6   : > { %2794 = vadd.xlane.f32.xlu0 %v8964_v33 }
 0xbac   : > { %v6800_v39 = vpop.permute.xlu1 %6799 }
 0xbad   : > { %v6802_v32 = vunpack.i.h.bf16 %v6800_v39  ;;  %v6801_v43 = vunpack.i.l.bf16 %v6800_v39  ;;  %v6904_v39 = vld [vmem:[%s8539_s13 + $0x34] ss:$8 sps:$4 sm:$0xff]  }
 0xbaf   : > { %v2085_v47 = vsel %vm2083_vm3, %v2082_v25, %v6802_v32  ;;  %v2084_v48 = vsel %vm2083_vm3, %v2081_v44, %v6801_v43  ;;  %v6905_v32 = vld [vmem:[%s8539_s13 + $0x40] ss:$8 sps:$4 sm:$0xff]   ;;  %v6910_v43 = vld [vmem:[%s8539_s13 + $0x54] ss:$8 sps:$4 sm:$0xff]   ;;  %v6913_v25 = vld [vmem:[%s8539_s13 + $0x64] ss:$8 sps:$4 sm:$0xff]  }
 0xbb0   : > { %v6911_v44 = vld [vmem:[%s8539_s13 + $0x60] ss:$8 sps:$4 sm:$0xff]  }
 0xbb3   : > { %2796 = vadd.xlane.f32.xlu1 %v1230_v18 }
 0xbe1   : > { %v6805_v40 = vpop.permute.xlu1 %6804 }
 0xbe2   : > { %v6807_v37 = vunpack.i.h.bf16 %v6805_v40  ;;  %v6806_v45 = vunpack.i.l.bf16 %v6805_v40  ;;  %v6908_v40 = vld [vmem:[%s8539_s13 + $0x50] ss:$8 sps:$4 sm:$0xff]  }
 0xbe4   : > { %v2087_v21 = vsel %vm2086_vm4, %v2084_v48, %v6806_v45  ;;  %v2088_v9 = vsel %vm2086_vm4, %v2085_v47, %v6807_v37  ;;  %v6916_v37 = vld [vmem:[%s8539_s13 + $0x74] ss:$8 sps:$4 sm:$0xff]   ;;  %v6914_v45 = vld [vmem:[%s8539_s13 + $0x70] ss:$8 sps:$4 sm:$0xff]   ;;  %v6917_v47 = vld [vmem:[%s8533_s2] sm:$0xff]  }
 0xbe5   : > { %v2602_v28 = vpack.c.bf16 %v2088_v9, %v2087_v21  ;;  %6465 = vmatprep.subr.bf16.mxu0 %v6917_v47 }
 0xbe6   : > { %6466 = vmatpush3.bf16.msra.mxu0 %v6917_v47 }
 0xbe7   : > { %6461 = vmatprep.mubr.bf16.mxu1 %v2602_v28 }
 0xbf1   : > { %v6810_v11 = vpop.permute.xlu1 %6809 }
 0xbf2   : > { %v6812_v50 = vunpack.i.h.bf16 %v6810_v11  ;;  %v6811_v38 = vunpack.i.l.bf16 %v6810_v11 }
 0xbf4   : > { %v2597_v53 = vsel %vm1574_vm1, %v8954_v6, %v6812_v50  ;;  %v2596_v46 = vsel %vm1574_vm1, %v8951_v0, %v6811_v38 }
 0xbf9   : > { %v6815_v30 = vpop.permute.xlu0 %6814 }
 0xbfa   : > { %v6817_v7 = vunpack.i.h.bf16 %v6815_v30  ;;  %v6816_v51 = vunpack.i.l.bf16 %v6815_v30 }
 0xbfc   : > { %v2599_v49 = vsel %vm2083_vm3, %v2597_v53, %v6817_v7  ;;  %v2598_v54 = vsel %vm2083_vm3, %v2596_v46, %v6816_v51 }
 0xc01   : > { %v6820_v5 = vpop.permute.xlu1 %6819 }
 0xc02   : > { %v6822_v36 = vunpack.i.h.bf16 %v6820_v5  ;;  %v6821_v55 = vunpack.i.l.bf16 %v6820_v5 }
 0xc04   : > { %v2601_v31 = vsel %vm2086_vm4, %v2599_v49, %v6822_v36  ;;  %v2600_v52 = vsel %vm2086_vm4, %v2598_v54, %v6821_v55 }
 0xc05   : > { %v2603_v56 = vpack.c.bf16 %v2601_v31, %v2600_v52 }
 0xc07   : > { %6462 = vmatmul.mubr.bf16.vlgmr.msra.gmra.mrb[44].mxu1 %v2603_v56 }
 0xc08   : > { %3091 = vmatprep.mubr.bf16.mxu1 %v7787_v34  ;;  %3060 = vmatpush1.bf16.msra.mxu1 %v6893_v23 }
 0xc09   : > { %3061 = vmatprep.subr.bf16.mxu1 %v6898_v20 }
 0xc33   : > { %v2795_v14 = vpop.xlane.xlu0 %2794 }
 0xc34   : > { %v2802_v16 = vmul.f32 0.0078125, %v2795_v14 }
 0xc36   : > { %v9007_v22 = vsub.f32 %v8964_v33, %v2802_v16  ;;  %v6896_v33 = vld [vmem:[%s8539_s13 + $0x10] ss:$8 sps:$4 sm:$0xff]  }
 0xc37   : > { %3062 = vmatpush1.bf16.msra.mxu1 %v6896_v33 }
 0xc38   : > { %v2810_v27 = vmul.f32 %v9007_v22, %v9007_v22 }
 0xc40   : > { %v2797_v57 = vpop.xlane.xlu1 %2796 }
 0xc41   : > { %v2803_v62 = vmul.f32 0.0078125, %v2797_v57 }
 0xc43   : > { %v8990_v13 = vsub.f32 %v1230_v18, %v2803_v62  ;;  %v6901_v18 = vld [vmem:[%s8539_s13 + $0x24] ss:$8 sps:$4 sm:$0xff]  }
 0xc44   : > { %3063 = vmatprep.subr.bf16.mxu1 %v6901_v18 }
 0xc45   : > { %v2811_v12 = vmul.f32 %v8990_v13, %v8990_v13  ;;  %3064 = vmatpush1.bf16.msra.mxu1 %v6899_v35 }
 0xc46   : > { %3065 = vmatprep.subr.bf16.mxu1 %v6904_v39 }
 0xc49   : > { %3066 = vmatpush1.bf16.msra.mxu1 %v6902_v41 }
 0xc4a   : > { %3067 = vmatprep.subr.bf16.mxu1 %v6907_v42 }
 0xc4d   : > { %3068 = vmatpush1.bf16.msra.mxu1 %v6905_v32 }
 0xc4e   : > { %3069 = vmatprep.subr.bf16.mxu1 %v6910_v43 }
 0xc51   : > { %3070 = vmatpush1.bf16.msra.mxu1 %v6908_v40 }
 0xc52   : > { %3071 = vmatprep.subr.bf16.mxu1 %v6913_v25 }
 0xc55   : > { %3072 = vmatpush1.bf16.msra.mxu1 %v6911_v44 }
 0xc56   : > { %3073 = vmatprep.subr.bf16.mxu1 %v6916_v37 }
 0xc59   : > { %3074 = vmatpush1.bf16.msra.mxu1 %v6914_v45 }
 0xc5a   : > { %6515 = vmatprep.subr.bf16.mxu1 %v7788_v2 }
 0xcda   : > { %v6463_v63 = vpop.f32.mrb[44].mxu1 }
 0xcdb   : > { %v2709_v0 = vpop.f32.mrb[45].mxu1  ;;  %v2718_v15 = vadd.f32 %v6463_v63, %v6021_v59  ;;  %v6918_v63 = vld [vmem:[%s8533_s2 + $0x8] sm:$0xff]  }
 0xcdc   : > { %v2710_v1 = vadd.f32 %v6021_v59, %v2709_v0  ;;  %v6464_v4 = vpop.f32.mrb[46].mxu1  ;;  %6467 = vmatprep.subr.bf16.mxu0 %v6918_v63 }
 0xcdd   : > { %v2721_v6 = vadd.f32 %v6464_v4, %v6021_v59  ;;  %v2712_v10 = vpop.f32.mrb[47].mxu1  ;;  %v9010_v26 = vadd.f32 %v7240_v24, %v2718_v15  ;;  %6468 = vmatpush3.bf16.msra.mxu0 %v6918_v63  ;;  %v6921_v15 = vld [vmem:[%s8533_s2 + $0x20] sm:$0xff]   ;;  %v6924_v24 = vld [vmem:[%s8533_s2 + $0x38] sm:$0xff]  }
 0xcde   : > { %v8993_v8 = vadd.f32 %v7237_v3, %v2710_v1  ;;  %v2713_v58 = vadd.f32 %v6021_v59, %v2712_v10  ;;  %v9060_v1 = vld [vmem:[%s10166_s29] ss:$0 sm:$0xff] }
 0xcdf   : > { %v8996_v61 = vadd.f32 %v7238_v60, %v2721_v6  ;;  %v6919_v6 = vld [vmem:[%s8533_s2 + $0x10] sm:$0xff]  }
 0xce0   : > { %2730 = vadd.xlane.f32.xlu0 %v8993_v8  ;;  %v9003_v19 = vadd.f32 %v7239_v17, %v2713_v58  ;;  %6469 = vmatprep.subr.bf16.mxu0 %v6919_v6  ;;  %v6920_v58 = vld [vmem:[%s8533_s2 + $0x18] sm:$0xff]   ;;  %v6922_v17 = vld [vmem:[%s8533_s2 + $0x28] sm:$0xff]  }
 0xce1   : > { %2736 = vadd.xlane.f32.xlu1 %v8996_v61  ;;  %6470 = vmatpush3.bf16.msra.mxu0 %v6919_v6  ;;  %v9113_v6 = vld [vmem:[#allocation7] sm:$0xff] }
 0xce2   : > { %6471 = vmatprep.subr.bf16.mxu0 %v6920_v58 }
 0xce4   : > { %2732 = vadd.xlane.f32.xlu0 %v9003_v19 }
 0xce5   : > { %2816 = vadd.xlane.f32.xlu1 %v2811_v12  ;;  %6472 = vmatpush3.bf16.msra.mxu0 %v6920_v58  ;;  %v9116_v58 = vld [vmem:[#allocation7 + $0x8] sm:$0xff] }
 0xce6   : > { %6473 = vmatprep.subr.bf16.mxu0 %v6921_v15 }
 0xce8   : > { %2734 = vadd.xlane.f32.xlu0 %v9010_v26 }
 0xce9   : > { %6474 = vmatpush3.bf16.msra.mxu0 %v6921_v15 }
 0xcea   : > { %6475 = vmatprep.subr.bf16.mxu0 %v6922_v17 }
 0xcec   : > { %2814 = vadd.xlane.f32.xlu0 %v2810_v27 }
 0xced   : > { %6476 = vmatpush3.bf16.msra.mxu0 %v6922_v17 }
 0xd6d   : > { %v2731_v48 = vpop.xlane.xlu0 %2730 }
 0xd6e   : > { %v2738_v21 = vmul.f32 0.0078125, %v2731_v48  ;;  %v2737_v9 = vpop.xlane.xlu1 %2736 }
 0xd6f   : > { %v2741_v30 = vmul.f32 0.0078125, %v2737_v9 }
 0xd70   : > { %v9034_v28 = vsub.f32 %v8993_v8, %v2738_v21 }
 0xd71   : > { %v2733_v11 = vpop.xlane.xlu0 %2732  ;;  %v9042_v36 = vsub.f32 %v8996_v61, %v2741_v30 }
 0xd72   : > { %v2739_v50 = vmul.f32 0.0078125, %v2733_v11  ;;  %v2817_v38 = vpop.xlane.xlu1 %2816  ;;  %v2746_v7 = vmul.f32 %v9034_v28, %v9034_v28 }
 0xd73   : > { %v2823_v51 = vmul.f32 0.0078125, %v2817_v38  ;;  %v2749_v56 = vmul.f32 %v9042_v36, %v9042_v36 }
 0xd74   : > { %v9039_v5 = vsub.f32 %v9003_v19, %v2739_v50  ;;  %2750 = vadd.xlane.f32.xlu0 %v2746_v7 }
 0xd75   : > { %v2827_v53 = vadd.f32 1e-05, %v2823_v51  ;;  %v2735_v46 = vpop.xlane.xlu0 %2734 }
 0xd76   : > { %v2740_v55 = vmul.f32 0.0078125, %v2735_v46  ;;  %v2747_v49 = vmul.f32 %v9039_v5, %v9039_v5 }
 0xd77   : > { %7085 = vrsqrt.f32 %v2827_v53 }
 0xd78   : > { %v9047_v54 = vsub.f32 %v9010_v26, %v2740_v55  ;;  %2752 = vadd.xlane.f32.xlu1 %v2747_v49 }
 0xd79   : > { %v2815_v31 = vpop.xlane.xlu0 %2814 }
 0xd7a   : > { %v2822_v52 = vmul.f32 0.0078125, %v2815_v31  ;;  %v2748_v57 = vmul.f32 %v9047_v54, %v9047_v54 }
 0xd7c   : > { %v2826_v59 = vadd.f32 1e-05, %v2822_v52  ;;  %2756 = vadd.xlane.f32.xlu1 %v2749_v56  ;;  %2754 = vadd.xlane.f32.xlu0 %v2748_v57 }
 0xd7e   : > { %7087 = vrsqrt.f32 %v2826_v59 }
 0xd81   : > { %v7086_v62 = vpop.eup %7085 }
 0xd82   : > { %v2835_v0 = vmul.f32 %v7086_v62, %v8990_v13  ;;  %v9070_v13 = vld [vmem:[%s1194_s23] ss:$0 sm:$0xff]  ;;  %s10168_s23 = sld [smem:[#allocation53_spill]] }
 0xd84   : > { %v2839_v14 = vmul.f32 %v9060_v1, %v2835_v0 }
 0xd86   : > { %v2843_v16 = vadd.f32 %v9070_v13, %v2839_v14 }
 0xd88   : > { %v7088_v4 = vpop.eup %7087 }
 0xd89   : > { %v2834_v10 = vmul.f32 %v7088_v4, %v9007_v22  ;;  %v6923_v22 = vld [vmem:[%s8533_s2 + $0x30] sm:$0xff]  }
 0xd8a   : > { %6477 = vmatprep.subr.bf16.mxu0 %v6923_v22 }
 0xd8b   : > { %v2838_v3 = vmul.f32 %v9060_v1, %v2834_v10  ;;  %6478 = vmatpush3.bf16.msra.mxu0 %v6923_v22 }
 0xd8c   : > { %6479 = vmatprep.subr.bf16.mxu0 %v6924_v24 }
 0xd8d   : > { %v2842_v60 = vadd.f32 %v9070_v13, %v2838_v3 }
 0xd8f   : > { %v2961_v12 = vpack.c.bf16 %v2843_v16, %v2842_v60  ;;  %6480 = vmatpush3.bf16.msra.mxu0 %v6924_v24 }
 0xd90   : > { %6485 = vmatprep.subr.bf16.mxu0 %v7788_v2 }
 0xd91   : > { %3092 = vmatmul.mubr.bf16.vlgmr.msra.gmra.mrb[48].mxu1 %v2961_v12 }
 0xd92   : > { %3101 = vmatprep.mubr.bf16.mxu1 %v7787_v34 }
 0xe01   : > { %v2751_v27 = vpop.xlane.xlu0 %2750 }
 0xe02   : > { %v2758_v29 = vmul.f32 0.0078125, %v2751_v27 }
 0xe04   : > { %v2762_v23 = vadd.f32 1e-05, %v2758_v29 }
 0xe05   : > { %v2753_v20 = vpop.xlane.xlu1 %2752 }
 0xe06   : > { %7089 = vrsqrt.f32 %v2762_v23  ;;  %v2759_v33 = vmul.f32 0.0078125, %v2753_v20 }
 0xe08   : > { %v2763_v18 = vadd.f32 1e-05, %v2759_v33 }
 0xe09   : > { %v2757_v35 = vpop.xlane.xlu1 %2756  ;;  %v2755_v39 = vpop.xlane.xlu0 %2754 }
 0xe0a   : > { %7091 = vrsqrt.f32 %v2763_v18  ;;  %v2761_v41 = vmul.f32 0.0078125, %v2757_v35  ;;  %v2760_v42 = vmul.f32 0.0078125, %v2755_v39  ;;  %v1232_v39 = vld [vmem:[%s8512_s28 + $0x18] sm:$0xff] }
 0xe0c   : > { %v2765_v32 = vadd.f32 1e-05, %v2761_v41  ;;  %v2764_v43 = vadd.f32 1e-05, %v2760_v42  ;;  %v1231_v41 = vld [vmem:[%s8512_s28 + $0x10] sm:$0xff] }
 0xe0e   : > { %7093 = vrsqrt.f32 %v2765_v32 }
 0xe0f   : > { %7095 = vrsqrt.f32 %v2764_v43 }
 0xe10   : > { %v7090_v40 = vpop.eup %7089 }
 0xe11   : > { %v2770_v25 = vmul.f32 %v7090_v40, %v9034_v28 }
 0xe13   : > { %v2780_v45 = vmul.f32 %v9060_v1, %v2770_v25 }
 0xe14   : > { %v7092_v44 = vpop.eup %7091 }
 0xe15   : > { %v2771_v37 = vmul.f32 %v7092_v44, %v9039_v5  ;;  %v2790_v11 = vadd.f32 %v9070_v13, %v2780_v45 }
 0xe17   : > { %v2781_v47 = vmul.f32 %v9060_v1, %v2771_v37 }
 0xe18   : > { %v7094_v48 = vpop.eup %7093 }
 0xe19   : > { %v7096_v21 = vpop.eup %7095  ;;  %v2773_v9 = vmul.f32 %v7094_v48, %v9042_v36  ;;  %v2791_v30 = vadd.f32 %v9070_v13, %v2781_v47 }
 0xe1a   : > { %v2772_v50 = vmul.f32 %v7096_v21, %v9047_v54 }
 0xe1b   : > { %v2846_v38 = vpack.c.bf16 %v2791_v30, %v2790_v11  ;;  %v2783_v28 = vmul.f32 %v9060_v1, %v2773_v9 }
 0xe1c   : > { %v2782_v7 = vmul.f32 %v9060_v1, %v2772_v50 }
 0xe1d   : > { %6481 = vmatprep.mubr.bf16.mxu0 %v2846_v38  ;;  %v2793_v51 = vadd.f32 %v9070_v13, %v2783_v28 }
 0xe1e   : > { %v2792_v5 = vadd.f32 %v9070_v13, %v2782_v7 }
 0xe20   : > { %v2847_v53 = vpack.c.bf16 %v2793_v51, %v2792_v5 }
 0xe22   : > { %6482 = vmatmul.mubr.bf16.vlgmr.msra.gmra.mrb[32].mxu0 %v2847_v53 }
 0xe23   : > { %6487 = vmatprep.mubr.msk.bf16.mxu0 %vm7789_vm0, %v7788_v2 }
 0xe64   : > { %v3093_v46 = vpop.f32.mrb[48].mxu1 }
 0xe65   : > { %v3095_v36 = vpop.f32.mrb[49].mxu1 }
 0xe66   : > { %v3097_v55 = vpop.f32.mrb[50].mxu1 }
 0xe67   : > { %v9096_v49 = vpack.c.bf16 %v3097_v55, %v3093_v46  ;;  %v3099_v54 = vpop.f32.mrb[51].mxu1 }
 0xe68   : > { %v9098_v31 = vpack.c.bf16 %v3099_v54, %v3095_v36 }
 0xe69   : > { %v3118_v52 = vsel %vm1574_vm1, %v9096_v49, 0 }
 0xe6a   : > { %6486 = vmatpush3.bf16.xpose.msra.mxu0 %v3118_v52 }
 0xe6b   : > { %6491 = vmatprep.subr.bf16.mxu0 %v7788_v2 }
 0xef5   : > { %v6483_v56 = vpop.f32.mrb[32].mxu0 }
 0xef6   : > { %v2946_v57 = vpop.f32.mrb[33].mxu0 }
 0xef7   : > { %v6484_v59 = vpop.f32.mrb[34].mxu0 }
 0xef8   : > { %v9103_v62 = vpack.c.bf16 %v6484_v59, %v6483_v56  ;;  %v2949_v63 = vpop.f32.mrb[35].mxu0 }
 0xef9   : > { %v9105_v0 = vpack.c.bf16 %v2949_v63, %v2946_v57 }
 0xefb   : > { %6488 = vmatmul.mubr.msk.bf16.vlgmr.msra.gmra.mrb[36].mxu0 %vm1574_vm1, %v9105_v0 }
 0xefc   : > { %6492 = vmatpush3.bf16.msra.mxu0 %v9098_v31  ;;  %6493 = vmatprep.mubr.msk.bf16.mxu0 %vm7789_vm0, %v7788_v2 }
 0xefd   : > { %6497 = vmatprep.subr.bf16.mxu0 %v7788_v2 }
 0xfce   : > { %v3154_v4 = vpop.f32.mrb[36].mxu0 }
 0xfcf   : > { %v3155_v10 = vadd.f32 %v9113_v6, %v3154_v4  ;;  %v6489_v14 = vpop.f32.mrb[37].mxu0 }
 0xfd0   : > { %v3157_v3 = vpop.f32.mrb[38].mxu0 }
 0xfd1   : > { %v3158_v60 = vadd.f32 %v9116_v58, %v3157_v3  ;;  %v6490_v16 = vpop.f32.mrb[39].mxu0  ;;  %v3161_v12 = vsel %vm1622_vm2, %v3155_v10, -inf }
 0xfd2   : > { %3162 = vmax.xlane.f32.xlu0 %v3161_v12 }
 0xfd3   : > { %v3164_v15 = vsel %vm1622_vm2, %v3158_v60, -inf }
 0xfd4   : > { %3165 = vmax.xlane.f32.xlu1 %v3164_v15 }
0x105f   : > { %v3163_v17 = vpop.xlane.xlu0 %3162 }
0x1060   : > { %v3167_v22 = vsub.f32 %v3155_v10, %v3163_v17  ;;  %v9147_v17 = vld [vmem:[#allocation7 + $0x10] sm:$0xff] }
0x1061   : > { %v3166_v24 = vpop.xlane.xlu1 %3165 }
0x1062   : > { %v3169_v27 = vmul.f32 1.442695, %v3167_v22  ;;  %v3168_v29 = vsub.f32 %v3158_v60, %v3166_v24 }
0x1064   : > { %7097 = vpow2.f32 %v3169_v27  ;;  %v3171_v23 = vmul.f32 1.442695, %v3168_v29  ;;  %v9150_v27 = vld [vmem:[#allocation7 + $0x18] sm:$0xff] }
0x1066   : > { %7099 = vpow2.f32 %v3171_v23 }
0x106e   : > { %v7098_v20 = vpop.eup %7097 }
0x106f   : > { %v3173_v33 = vsel %vm1622_vm2, %v7098_v20, 0.0 }
0x1070   : > { %v7100_v18 = vpop.eup %7099  ;;  %3174 = vadd.xlane.f32.xlu0 %v3173_v33 }
0x1071   : > { %v3176_v35 = vsel %vm1622_vm2, %v7100_v18, 0.0 }
0x1072   : > { %3177 = vadd.xlane.f32.xlu1 %v3176_v35 }
0x1083   : > { %3230 = vrot.lane.b32.xlu1 %v9105_v0, %s7790_s8 }
0x1086   : > { %3233 = vrot.lane.b32.xlu0 %v9096_v49, %s7790_s8 }
0x10a5   : > { %2800 = vadd.xlane.f32.xlu0 %v1232_v39 }
0x10a7   : > { %2798 = vadd.xlane.f32.xlu1 %v1231_v41 }
0x10fd   : > { %v3175_v42 = vpop.xlane.xlu0 %3174 }
0x10fe   : > { %7101 = vrcp.f32 %v3175_v42 }
0x10ff   : > { %v3178_v32 = vpop.xlane.xlu1 %3177 }
0x1100   : > { %7103 = vrcp.f32 %v3178_v32 }
0x1101   : > { %v3234_v37 = vpop.permute.xlu0 %3233 }
0x1102   : > { %v3239_v47 = vsel %vm1574_vm1, %v3234_v37, 0 }
0x1103   : > { %v3231_v48 = vpop.permute.xlu1 %3230 }
0x1108   : > { %v7102_v43 = vpop.eup %7101 }
0x1109   : > { %v3180_v25 = vmul.f32 %v7102_v43, %v7098_v20 }
0x110a   : > { %v7104_v40 = vpop.eup %7103 }
0x110b   : > { %v3182_v44 = vmul.f32 %v7104_v40, %v7100_v18 }
0x110d   : > { %v3183_v45 = vpack.c.bf16 %v3182_v44, %v3180_v25 }
0x110f   : > { %6494 = vmatmul.mubr.msk.bf16.vlgmr.msra.gmra.mrb[40].mxu0 %vm1622_vm2, %v3183_v45 }
0x1110   : > { %6498 = vmatpush3.bf16.xpose.msra.mxu0 %v3239_v47  ;;  %6499 = vmatprep.mubr.msk.bf16.mxu0 %vm7789_vm0, %v7788_v2 }
0x1111   : > { %6503 = vmatprep.subr.bf16.mxu0 %v7788_v2 }
0x1117   : > { %6500 = vmatmul.mubr.msk.bf16.vlgmr.msra.gmra.mrb[44].mxu0 %vm1574_vm1, %v3231_v48 }
0x1118   : > { %6505 = vmatprep.mubr.msk.bf16.mxu0 %vm7789_vm0, %v7788_v2 }
0x1132   : > { %v2801_v21 = vpop.xlane.xlu0 %2800 }
0x1133   : > { %v2805_v9 = vmul.f32 0.0078125, %v2801_v21 }
0x1134   : > { %v2799_v11 = vpop.xlane.xlu1 %2798 }
0x1135   : > { %v2809_v30 = vsub.f32 %v1232_v39, %v2805_v9  ;;  %v2804_v50 = vmul.f32 0.0078125, %v2799_v11 }
0x1137   : > { %v2808_v38 = vsub.f32 %v1231_v41, %v2804_v50  ;;  %v2813_v28 = vmul.f32 %v2809_v30, %v2809_v30 }
0x1139   : > { %2820 = vadd.xlane.f32.xlu1 %v2813_v28  ;;  %v2812_v7 = vmul.f32 %v2808_v38, %v2808_v38 }
0x113b   : > { %2818 = vadd.xlane.f32.xlu0 %v2812_v7 }
0x11c6   : > { %v2821_v51 = vpop.xlane.xlu1 %2820 }
0x11c7   : > { %v2825_v5 = vmul.f32 0.0078125, %v2821_v51 }
0x11c8   : > { %v2819_v53 = vpop.xlane.xlu0 %2818 }
0x11c9   : > { %v2829_v46 = vadd.f32 1e-05, %v2825_v5  ;;  %v2824_v36 = vmul.f32 0.0078125, %v2819_v53 }
0x11cb   : > { %7105 = vrsqrt.f32 %v2829_v46  ;;  %v2828_v55 = vadd.f32 1e-05, %v2824_v36 }
0x11cd   : > { %7107 = vrsqrt.f32 %v2828_v55 }
0x11d5   : > { %v7106_v54 = vpop.eup %7105 }
0x11d6   : > { %v2837_v52 = vmul.f32 %v7106_v54, %v2809_v30 }
0x11d7   : > { %v7108_v56 = vpop.eup %7107 }
0x11d8   : > { %v2836_v57 = vmul.f32 %v7108_v56, %v2808_v38  ;;  %v2841_v59 = vmul.f32 %v9060_v1, %v2837_v52 }
0x11da   : > { %v2840_v63 = vmul.f32 %v9060_v1, %v2836_v57  ;;  %v2845_v10 = vadd.f32 %v9070_v13, %v2841_v59 }
0x11dc   : > { %v2844_v4 = vadd.f32 %v9070_v13, %v2840_v63 }
0x11de   : > { %v2962_v14 = vpack.c.bf16 %v2845_v10, %v2844_v4 }
0x11e0   : > { %3102 = vmatmul.mubr.bf16.gmra.mrb[52].mxu1 %v2962_v14 }
0x11e1   : > { %6517 = vmatprep.mubr.msk.bf16.mxu1 %vm7789_vm0, %v7788_v2 }
0x11e2   : > { %v9143_v3 = vpop.f32.mrb[40].mxu0 }
0x11e3   : > { %v6495_v60 = vpop.f32.mrb[41].mxu0 }
0x11e4   : > { %v9145_v16 = vpop.f32.mrb[42].mxu0 }
0x11e5   : > { %v6496_v12 = vpop.f32.mrb[43].mxu0 }
0x11ea   : > { %v3275_v15 = vpop.f32.mrb[44].mxu0 }
0x11eb   : > { %v3276_v1 = vadd.f32 %v9147_v17, %v3275_v15  ;;  %v6501_v22 = vpop.f32.mrb[45].mxu0 }
0x11ec   : > { %v3278_v24 = vpop.f32.mrb[46].mxu0 }
0x11ed   : > { %v3279_v13 = vadd.f32 %v9150_v27, %v3278_v24  ;;  %v6502_v29 = vpop.f32.mrb[47].mxu0  ;;  %v3282_v23 = vsel %vm1622_vm2, %v3276_v1, -inf  ;;  %v7245_v24 = vld [vmem:[#allocation7 + $0x20] sm:$0xff] }
0x11ee   : > { %3283 = vmax.xlane.f32.xlu0 %v3282_v23 }
0x11ef   : > { %v3285_v20 = vsel %vm1622_vm2, %v3279_v13, -inf }
0x11f0   : > { %3286 = vmax.xlane.f32.xlu1 %v3285_v20  ;;  %v7246_v20 = vld [vmem:[#allocation7 + $0x28] sm:$0xff] }
0x1201   : > { %3355 = vrot.lane.b32.xlu1 %v9096_v49, %s7791_s25 }
0x127b   : > { %v3284_v33 = vpop.xlane.xlu0 %3283 }
0x127c   : > { %v3288_v18 = vsub.f32 %v3276_v1, %v3284_v33 }
0x127d   : > { %v3287_v35 = vpop.xlane.xlu1 %3286 }
0x127e   : > { %v3290_v39 = vmul.f32 1.442695, %v3288_v18  ;;  %v3289_v41 = vsub.f32 %v3279_v13, %v3287_v35 }
0x1280   : > { %7109 = vpow2.f32 %v3290_v39  ;;  %v3292_v42 = vmul.f32 1.442695, %v3289_v41 }
0x1282   : > { %7111 = vpow2.f32 %v3292_v42  ;;  %v7247_v42 = vld [vmem:[#allocation7 + $0x30] sm:$0xff] }
0x128a   : > { %v7110_v32 = vpop.eup %7109 }
0x128b   : > { %v3294_v43 = vsel %vm1622_vm2, %v7110_v32, 0.0 }
0x128c   : > { %v7112_v40 = vpop.eup %7111  ;;  %3295 = vadd.xlane.f32.xlu0 %v3294_v43 }
0x128d   : > { %v3297_v25 = vsel %vm1622_vm2, %v7112_v40, 0.0 }
0x128e   : > { %3298 = vadd.xlane.f32.xlu1 %v3297_v25  ;;  %v7248_v25 = vld [vmem:[#allocation7 + $0x38] sm:$0xff] }
0x129f   : > { %3353 = vrot.lane.b32.xlu1 %v9105_v0, %s7791_s25 }
0x12a2   : > { %3306 = vrot.lane.b32.xlu0 %v9098_v31, %s7790_s8 }
0x12a3   : > { %3476 = vrot.lane.b32.xlu1 %v9096_v49, %s7792_s19  ;;  %v3356_v49 = vpop.permute.xlu1 %3355 }
0x12a4   : > { %v3361_v5 = vsel %vm1574_vm1, %v3356_v49, 0 }
0x12a6   : > { %3474 = vrot.lane.b32.xlu0 %v9105_v0, %s7792_s19 }
0x12aa   : > { %3743 = vrot.lane.b32.xlu0 %v9103_v62, %s7790_s8 }
0x12ae   : > { %3866 = vrot.lane.b32.xlu0 %v9103_v62, %s7791_s25 }
0x12b2   : > { %3987 = vrot.lane.b32.xlu0 %v9103_v62, %s7792_s19 }
0x12b3   : > { %v3103_v44 = vpop.f32.mrb[52].mxu1 }
0x12b4   : > { %v3105_v37 = vpop.f32.mrb[53].mxu1 }
0x12b5   : > { %v3107_v45 = vpop.f32.mrb[54].mxu1 }
0x12b6   : > { %v3626_v47 = vpack.c.bf16 %v3107_v45, %v3103_v44  ;;  %v3109_v48 = vpop.f32.mrb[55].mxu1 }
0x12b7   : > { %v9173_v21 = vpack.c.bf16 %v3109_v48, %v3105_v37 }
0x12b8   : > { %3746 = vrot.lane.b32.xlu1 %v3626_v47, %s7790_s8  ;;  %v3631_v55 = vsel %vm1574_vm1, %v3626_v47, 0 }
0x12bc   : > { %3868 = vrot.lane.b32.xlu1 %v3626_v47, %s7791_s25 }
0x12c0   : > { %3989 = vrot.lane.b32.xlu1 %v3626_v47, %s7792_s19 }
0x1319   : > { %v3296_v0 = vpop.xlane.xlu0 %3295 }
0x131a   : > { %7113 = vrcp.f32 %v3296_v0 }
0x131b   : > { %v3299_v9 = vpop.xlane.xlu1 %3298 }
0x131c   : > { %7115 = vrcp.f32 %v3299_v9 }
0x131d   : > { %v3307_v11 = vpop.permute.xlu0 %3306 }
0x131e   : > { %6504 = vmatpush3.bf16.msra.mxu0 %v3307_v11 }
0x131f   : > { %6509 = vmatprep.subr.bf16.mxu0 %v7788_v2  ;;  %v3354_v51 = vpop.permute.xlu1 %3353 }
0x1321   : > { %v3475_v36 = vpop.permute.xlu0 %3474 }
0x1323   : > { %v3477_v53 = vpop.permute.xlu1 %3476 }
0x1324   : > { %v7114_v30 = vpop.eup %7113  ;;  %v3482_v46 = vsel %vm1574_vm1, %v3477_v53, 0 }
0x1325   : > { %v3301_v38 = vmul.f32 %v7114_v30, %v7110_v32  ;;  %v3744_v57 = vpop.permute.xlu0 %3743 }
0x1326   : > { %v7116_v50 = vpop.eup %7115 }
0x1327   : > { %v3303_v28 = vmul.f32 %v7116_v50, %v7112_v40 }
0x1329   : > { %v3304_v7 = vpack.c.bf16 %v3303_v28, %v3301_v38 }
0x132a   : > { %v3747_v54 = vpop.permute.xlu1 %3746 }
0x132b   : > { %6506 = vmatmul.mubr.msk.bf16.vlgmr.msra.gmra.mrb[48].mxu0 %vm1622_vm2, %v3304_v7  ;;  %v3752_v52 = vsel %vm1574_vm1, %v3747_v54, 0 }
0x132c   : > { %6510 = vmatpush3.bf16.xpose.msra.mxu0 %v3361_v5  ;;  %6511 = vmatprep.mubr.msk.bf16.mxu0 %vm7789_vm0, %v7788_v2 }
0x132d   : > { %6521 = vmatprep.subr.bf16.mxu0 %v7788_v2 }
0x132e   : > { %v3869_v56 = vpop.permute.xlu1 %3868 }
0x132f   : > { %v3874_v59 = vsel %vm1574_vm1, %v3869_v56, 0 }
0x1332   : > { %v3990_v63 = vpop.permute.xlu1 %3989 }
0x1333   : > { %6512 = vmatmul.mubr.msk.bf16.vlgmr.msra.gmra.mrb[52].mxu0 %vm1574_vm1, %v3354_v51  ;;  %v3995_v4 = vsel %vm1574_vm1, %v3990_v63, 0 }
0x1334   : > { %6522 = vmatpush3.bf16.xpose.msra.mxu0 %v3482_v46  ;;  %6523 = vmatprep.mubr.msk.bf16.mxu0 %vm7789_vm0, %v7788_v2 }
0x1335   : > { %6533 = vmatprep.subr.bf16.mxu0 %v7788_v2 }
0x133b   : > { %6524 = vmatmul.mubr.msk.bf16.vlgmr.msra.gmra.mrb[56].mxu0 %vm1574_vm1, %v3475_v36 }
0x133c   : > { %6534 = vmatpush3.bf16.xpose.msra.mxu0 %v3631_v55  ;;  %6535 = vmatprep.mubr.msk.bf16.mxu0 %vm7789_vm0, %v7788_v2 }
0x133d   : > { %6545 = vmatprep.subr.bf16.mxu0 %v7788_v2 }
0x1343   : > { %6536 = vmatmul.mubr.msk.bf16.vlgmr.msra.gmra.mrb[60].mxu0 %vm1574_vm1, %v9103_v62  ;;  %v3867_v62 = vpop.permute.xlu0 %3866 }
0x1344   : > { %6546 = vmatpush3.bf16.xpose.msra.mxu0 %v3752_v52  ;;  %6547 = vmatprep.mubr.msk.bf16.mxu0 %vm7789_vm0, %v7788_v2 }
0x1345   : > { %6557 = vmatprep.subr.bf16.mxu0 %v7788_v2 }
0x1347   : > { %v3988_v10 = vpop.permute.xlu0 %3987 }
0x134b   : > { %6548 = vmatmul.mubr.msk.bf16.vlgmr.msra.gmra.mrb[64].mxu0 %vm1574_vm1, %v3744_v57 }
0x134c   : > { %6558 = vmatpush3.bf16.xpose.msra.mxu0 %v3874_v59  ;;  %6559 = vmatprep.mubr.msk.bf16.mxu0 %vm7789_vm0, %v7788_v2 }
0x134d   : > { %6569 = vmatprep.subr.bf16.mxu0 %v7788_v2 }
0x1353   : > { %6560 = vmatmul.mubr.msk.bf16.vlgmr.msra.gmra.mrb[68].mxu0 %vm1574_vm1, %v3867_v62 }
0x1354   : > { %6570 = vmatpush3.bf16.xpose.msra.mxu0 %v3995_v4  ;;  %6571 = vmatprep.mubr.msk.bf16.mxu0 %vm7789_vm0, %v7788_v2 }
0x135b   : > { %6572 = vmatmul.mubr.msk.bf16.vlgmr.msra.gmra.mrb[72].mxu0 %vm1574_vm1, %v3988_v10 }
0x13fe   : > { %v9210_v14 = vpop.f32.mrb[48].mxu0 }
0x13ff   : > { %v6507_v60 = vpop.f32.mrb[49].mxu0 }
0x1400   : > { %v9212_v12 = vpop.f32.mrb[50].mxu0 }
0x1401   : > { %v6823_v15 = vpack.i.bf16 %v9212_v12, %v9210_v14  ;;  %v6508_v1 = vpop.f32.mrb[51].mxu0 }
0x1406   : > { %v3397_v22 = vpop.f32.mrb[52].mxu0 }
0x1407   : > { %v9216_v13 = vadd.f32 %v7245_v24, %v3397_v22  ;;  %v6513_v29 = vpop.f32.mrb[53].mxu0 }
0x1408   : > { %v3400_v23 = vpop.f32.mrb[54].mxu0 }
0x1409   : > { %v9218_v33 = vadd.f32 %v7246_v20, %v3400_v23  ;;  %v6514_v18 = vpop.f32.mrb[55].mxu0  ;;  %v3404_v35 = vsel %vm1622_vm2, %v9216_v13, -inf }
0x140a   : > { %3405 = vmax.xlane.f32.xlu1 %v3404_v35 }
0x140b   : > { %v3407_v39 = vsel %vm1622_vm2, %v9218_v33, -inf }
0x140c   : > { %3408 = vmax.xlane.f32.xlu0 %v3407_v39 }
0x140e   : > { %v3518_v41 = vpop.f32.mrb[56].mxu0 }
0x140f   : > { %v3519_v32 = vadd.f32 %v7247_v42, %v3518_v41  ;;  %v6525_v43 = vpop.f32.mrb[57].mxu0 }
0x1410   : > { %v3521_v40 = vpop.f32.mrb[58].mxu0 }
0x1411   : > { %v9224_v44 = vadd.f32 %v7248_v25, %v3521_v40  ;;  %v6526_v37 = vpop.f32.mrb[59].mxu0  ;;  %v3525_v45 = vsel %vm1622_vm2, %v3519_v32, -inf }
0x1412   : > { %3526 = vmax.xlane.f32.xlu0 %v3525_v45 }
0x1413   : > { %v3528_v47 = vsel %vm1622_vm2, %v9224_v44, -inf }
0x1416   : > { %3529 = vmax.xlane.f32.xlu0 %v3528_v47  ;;  %v3667_v48 = vpop.f32.mrb[60].mxu0 }
0x1417   : > { %v3668_v49 = vadd.f32 %v9113_v6, %v3667_v48  ;;  %v6537_v0 = vpop.f32.mrb[61].mxu0 }
0x1418   : > { %v3670_v9 = vpop.f32.mrb[62].mxu0 }
0x1419   : > { %v9231_v11 = vadd.f32 %v9116_v58, %v3670_v9  ;;  %v6538_v30 = vpop.f32.mrb[63].mxu0  ;;  %v3674_v50 = vsel %vm1622_vm2, %v3668_v49, -inf }
0x141a   : > { %3675 = vmax.xlane.f32.xlu1 %v3674_v50 }
0x141b   : > { %v3677_v38 = vsel %vm1622_vm2, %v9231_v11, -inf }
0x141c   : > { %3678 = vmax.xlane.f32.xlu0 %v3677_v38 }
0x141e   : > { %v3788_v28 = vpop.f32.mrb[64].mxu0 }
0x141f   : > { %v3789_v7 = vadd.f32 %v9147_v17, %v3788_v28  ;;  %v6549_v51 = vpop.f32.mrb[65].mxu0 }
0x1420   : > { %v3791_v5 = vpop.f32.mrb[66].mxu0 }
0x1421   : > { %v9238_v6 = vadd.f32 %v9150_v27, %v3791_v5  ;;  %v6550_v53 = vpop.f32.mrb[67].mxu0  ;;  %v3795_v58 = vsel %vm1622_vm2, %v3789_v7, -inf }
0x1422   : > { %3796 = vmax.xlane.f32.xlu1 %v3795_v58 }
0x1423   : > { %v3798_v46 = vsel %vm1622_vm2, %v9238_v6, -inf }
0x1424   : > { %3799 = vmax.xlane.f32.xlu0 %v3798_v46 }
0x1426   : > { %v3910_v36 = vpop.f32.mrb[68].mxu0 }
0x1427   : > { %v9243_v55 = vadd.f32 %v7245_v24, %v3910_v36  ;;  %v6561_v54 = vpop.f32.mrb[69].mxu0 }
0x1428   : > { %v3913_v52 = vpop.f32.mrb[70].mxu0 }
0x1429   : > { %v9245_v56 = vadd.f32 %v7246_v20, %v3913_v52  ;;  %v6562_v17 = vpop.f32.mrb[71].mxu0  ;;  %v3917_v27 = vsel %vm1622_vm2, %v9243_v55, -inf }
0x142a   : > { %3918 = vmax.xlane.f32.xlu1 %v3917_v27 }
0x142b   : > { %v3920_v57 = vsel %vm1622_vm2, %v9245_v56, -inf }
0x142c   : > { %3921 = vmax.xlane.f32.xlu0 %v3920_v57 }
0x142e   : > { %v4031_v59 = vpop.f32.mrb[72].mxu0 }
0x142f   : > { %v9251_v63 = vadd.f32 %v7247_v42, %v4031_v59  ;;  %v6573_v62 = vpop.f32.mrb[73].mxu0 }
0x1430   : > { %v4034_v4 = vpop.f32.mrb[74].mxu0 }
0x1431   : > { %v9253_v10 = vadd.f32 %v7248_v25, %v4034_v4  ;;  %v6574_v60 = vpop.f32.mrb[75].mxu0  ;;  %v4038_v1 = vsel %vm1622_vm2, %v9251_v63, -inf }
0x1432   : > { %4039 = vmax.xlane.f32.xlu1 %v4038_v1 }
0x1433   : > { %v4041_v22 = vsel %vm1622_vm2, %v9253_v10, -inf }
0x1434   : > { %4042 = vmax.xlane.f32.xlu0 %v4041_v22 }
0x1443   : > { %3427 = vrot.lane.b32.xlu1 %v9098_v31, %s7791_s25 }
0x1497   : > { %v3406_v24 = vpop.xlane.xlu1 %3405 }
0x1498   : > { %v3410_v29 = vsub.f32 %v9216_v13, %v3406_v24 }
0x1499   : > { %v3409_v23 = vpop.xlane.xlu0 %3408 }
0x149a   : > { %v3412_v20 = vmul.f32 1.442695, %v3410_v29  ;;  %v3411_v18 = vsub.f32 %v9218_v33, %v3409_v23 }
0x149c   : > { %7117 = vpow2.f32 %v3412_v20  ;;  %v3414_v35 = vmul.f32 1.442695, %v3411_v18 }
0x149e   : > { %7119 = vpow2.f32 %v3414_v35 }
0x149f   : > { %v3527_v39 = vpop.xlane.xlu0 %3526 }
0x14a0   : > { %v3531_v41 = vsub.f32 %v3519_v32, %v3527_v39 }
0x14a2   : > { %v3533_v42 = vmul.f32 1.442695, %v3531_v41 }
0x14a3   : > { %v3530_v5 = vpop.xlane.xlu0 %3529 }
0x14a4   : > { %7121 = vpow2.f32 %v3533_v42  ;;  %v3532_v53 = vsub.f32 %v9224_v44, %v3530_v5 }
0x14a6   : > { %v9263_v43 = vpop.eup %7117  ;;  %v3535_v46 = vmul.f32 1.442695, %v3532_v53 }
0x14a7   : > { %v3676_v40 = vpop.xlane.xlu1 %3675  ;;  %v3416_v25 = vsel %vm1622_vm2, %v9263_v43, 0.0 }
0x14a8   : > { %v9267_v37 = vpop.eup %7119  ;;  %v3680_v13 = vsub.f32 %v3668_v49, %v3676_v40  ;;  %3417 = vadd.xlane.f32.xlu1 %v3416_v25 }
0x14a9   : > { %v3419_v33 = vsel %vm1622_vm2, %v9267_v37, 0.0  ;;  %v3679_v58 = vpop.xlane.xlu0 %3678 }
0x14aa   : > { %v3682_v45 = vmul.f32 1.442695, %v3680_v13  ;;  %3420 = vadd.xlane.f32.xlu0 %v3419_v33  ;;  %v3681_v36 = vsub.f32 %v9231_v11, %v3679_v58 }
0x14ac   : > { %7123 = vpow2.f32 %v3682_v45  ;;  %v3684_v52 = vmul.f32 1.442695, %v3681_v36 }
0x14ae   : > { %v9271_v47 = vpop.eup %7121 }
0x14af   : > { %v3797_v32 = vpop.xlane.xlu1 %3796  ;;  %v3537_v48 = vsel %vm1622_vm2, %v9271_v47, 0.0 }
0x14b0   : > { %v3801_v0 = vsub.f32 %v3789_v7, %v3797_v32  ;;  %3538 = vadd.xlane.f32.xlu1 %v3537_v48 }
0x14b1   : > { %v3800_v54 = vpop.xlane.xlu0 %3799 }
0x14b2   : > { %v3803_v9 = vmul.f32 1.442695, %v3801_v0  ;;  %v3802_v17 = vsub.f32 %v9238_v6, %v3800_v54 }
0x14b4   : > { %7125 = vpow2.f32 %v3803_v9 }
0x14b5   : > { %7127 = vpow2.f32 %v3535_v46 }
0x14b6   : > { %v9275_v30 = vpop.eup %7123  ;;  %7129 = vpow2.f32 %v3684_v52 }
0x14b7   : > { %v3686_v49 = vsel %vm1622_vm2, %v9275_v30, 0.0  ;;  %v3919_v50 = vpop.xlane.xlu1 %3918 }
0x14b8   : > { %3687 = vadd.xlane.f32.xlu1 %v3686_v49  ;;  %v3923_v27 = vsub.f32 %v9243_v55, %v3919_v50 }
0x14b9   : > { %v3922_v57 = vpop.xlane.xlu0 %3921 }
0x14ba   : > { %v3925_v59 = vmul.f32 1.442695, %v3923_v27  ;;  %v3924_v44 = vsub.f32 %v9245_v56, %v3922_v57 }
0x14bc   : > { %v3927_v11 = vmul.f32 1.442695, %v3924_v44 }
0x14be   : > { %v9279_v38 = vpop.eup %7125 }
0x14bf   : > { %v4040_v28 = vpop.xlane.xlu1 %4039  ;;  %v3807_v51 = vsel %vm1622_vm2, %v9279_v38, 0.0  ;;  %v7128_v4 = vpop.eup %7127 }
0x14c0   : > { %3808 = vadd.xlane.f32.xlu1 %v3807_v51  ;;  %3548 = vrot.lane.b32.xlu0 %v9098_v31, %s7792_s19  ;;  %v3805_v31 = vmul.f32 1.442695, %v3802_v17  ;;  %v3540_v6 = vsel %vm1622_vm2, %v7128_v4, 0.0  ;;  %v9295_v1 = vpop.eup %7129  ;;  %v4044_v22 = vsub.f32 %v9251_v63, %v4040_v28 }
0x14c1   : > { %v4043_v62 = vpop.xlane.xlu0 %4042  ;;  %v3689_v24 = vsel %vm1622_vm2, %v9295_v1, 0.0 }
0x14c2   : > { %7131 = vpow2.f32 %v3805_v31  ;;  %v4045_v60 = vsub.f32 %v9253_v10, %v4043_v62  ;;  %v4046_v56 = vmul.f32 1.442695, %v4044_v22 }
0x14c3   : > { %v3428_v7 = vpop.permute.xlu1 %3427  ;;  %7133 = vpow2.f32 %v3925_v59 }
0x14c4   : > { %6516 = vmatpush3.bf16.msra.mxu1 %v3428_v7  ;;  %7135 = vpow2.f32 %v3927_v11  ;;  %v4048_v55 = vmul.f32 1.442695, %v4045_v60 }
0x14c5   : > { %6527 = vmatprep.subr.bf16.mxu1 %v7788_v2 }
0x14c6   : > { %7137 = vpow2.f32 %v4048_v55 }
0x14c7   : > { %7139 = vpow2.f32 %v4046_v56 }
0x14cc   : > { %v9300_v29 = vpop.eup %7131 }
0x14cd   : > { %v3810_v10 = vsel %vm1622_vm2, %v9300_v29, 0.0  ;;  %v9304_v23 = vpop.eup %7133 }
0x14ce   : > { %v3929_v63 = vsel %vm1622_vm2, %v9304_v23, 0.0  ;;  %v9308_v20 = vpop.eup %7135 }
0x14cf   : > { %v3932_v18 = vsel %vm1622_vm2, %v9308_v20, 0.0 }
0x14d0   : > { %v9312_v35 = vpop.eup %7137 }
0x14d1   : > { %3819 = vrot.lane.b32.xlu1 %v9173_v21, %s7790_s8  ;;  %v9314_v39 = vpop.eup %7139  ;;  %v4053_v41 = vsel %vm1622_vm2, %v9312_v35, 0.0 }
0x14d2   : > { %v4050_v42 = vsel %vm1622_vm2, %v9314_v39, 0.0 }
0x14df   : > { %3541 = vadd.xlane.f32.xlu0 %v3540_v6 }
0x14e3   : > { %3690 = vadd.xlane.f32.xlu0 %v3689_v24 }
0x14e7   : > { %3811 = vadd.xlane.f32.xlu0 %v3810_v10 }
0x14eb   : > { %3930 = vadd.xlane.f32.xlu0 %v3929_v63 }
0x14ef   : > { %3933 = vadd.xlane.f32.xlu0 %v3932_v18  ;;  %v6925_v18 = vld [vmem:[%s10168_s23] sm:$0xff]  }
0x14f0   : > { %6581 = vmatprep.subr.bf16.mxu0 %v6925_v18 }
0x14f1   : > { %6582 = vmatpush3.bf16.msra.mxu0 %v6925_v18 }
0x14f3   : > { %4054 = vadd.xlane.f32.xlu0 %v4053_v41 }
0x14f5   : > { %4051 = vadd.xlane.f32.xlu1 %v4050_v42 }
0x1506   : > { %4061 = vrot.lane.b32.xlu1 %v9173_v21, %s7792_s19 }
0x1509   : > { %3940 = vrot.lane.b32.xlu0 %v9173_v21, %s7791_s25 }
0x150a   : > { %6824 = vrot.lane.b32.xlu1 %v6823_v15, %s7792_s19 }
0x1535   : > { %v3418_v40 = vpop.xlane.xlu1 %3417 }
0x1536   : > { %7141 = vrcp.f32 %v3418_v40 }
0x1537   : > { %v3421_v25 = vpop.xlane.xlu0 %3420 }
0x1538   : > { %7143 = vrcp.f32 %v3421_v25 }
0x153b   : > { %v3549_v0 = vpop.permute.xlu0 %3548 }
0x153d   : > { %v3539_v14 = vpop.xlane.xlu1 %3538 }
0x153e   : > { %7145 = vrcp.f32 %v3539_v14 }
0x1540   : > { %v7142_v13 = vpop.eup %7141 }
0x1541   : > { %v3423_v45 = vmul.f32 %v7142_v13, %v9263_v43 }
0x1542   : > { %v7144_v33 = vpop.eup %7143 }
0x1543   : > { %v3425_v32 = vmul.f32 %v7144_v33, %v9267_v37  ;;  %v6928_v33 = vld [vmem:[%s10168_s23 + $0x18] sm:$0xff]  }
0x1545   : > { %v3426_v48 = vpack.c.bf16 %v3425_v32, %v3423_v45  ;;  %v3688_v15 = vpop.xlane.xlu1 %3687 }
0x1547   : > { %6518 = vmatmul.mubr.msk.bf16.vlgmr.msra.gmra.mrb[56].mxu1 %vm1622_vm2, %v3426_v48  ;;  %v6929_v48 = vld [vmem:[%s10168_s23 + $0x20] sm:$0xff]  }
0x1548   : > { %6528 = vmatpush3.bf16.msra.mxu1 %v3549_v0  ;;  %6529 = vmatprep.mubr.msk.bf16.mxu1 %vm7789_vm0, %v7788_v2  ;;  %v7146_v37 = vpop.eup %7145 }
0x1549   : > { %6539 = vmatprep.subr.bf16.mxu1 %v7788_v2  ;;  %v3544_v50 = vmul.f32 %v7146_v37, %v9271_v47 }
0x154d   : > { %v3809_v28 = vpop.xlane.xlu1 %3808 }
0x1551   : > { %v3820_v54 = vpop.permute.xlu1 %3819 }
0x156c   : > { %v3542_v12 = vpop.xlane.xlu0 %3541 }
0x156d   : > { %7147 = vrcp.f32 %v3542_v12  ;;  %v6930_v12 = vld [vmem:[%s10168_s23 + $0x28] sm:$0xff]  }
0x1570   : > { %v3691_v9 = vpop.xlane.xlu0 %3690 }
0x1571   : > { %7149 = vrcp.f32 %v3691_v9 }
0x1572   : > { %7151 = vrcp.f32 %v3688_v15 }
0x1574   : > { %v3812_v43 = vpop.xlane.xlu0 %3811 }
0x1575   : > { %7153 = vrcp.f32 %v3812_v43  ;;  %v6931_v43 = vld [vmem:[%s10168_s23 + $0x30] sm:$0xff]  }
0x1576   : > { %7155 = vrcp.f32 %v3809_v28  ;;  %v6932_v28 = vld [vmem:[%s10168_s23 + $0x38] sm:$0xff]  }
0x1577   : > { %v7148_v49 = vpop.eup %7147 }
0x1578   : > { %v3546_v51 = vmul.f32 %v7148_v49, %v7128_v4  ;;  %v3931_v7 = vpop.xlane.xlu0 %3930 }
0x157a   : > { %v3547_v5 = vpack.c.bf16 %v3546_v51, %v3544_v50 }
0x157b   : > { %v7150_v53 = vpop.eup %7149 }
0x157c   : > { %6530 = vmatmul.mubr.msk.bf16.vlgmr.msra.gmra.mrb[60].mxu1 %vm1622_vm2, %v3547_v5  ;;  %v7152_v58 = vpop.eup %7151  ;;  %v3695_v46 = vmul.f32 %v7150_v53, %v9295_v1  ;;  %v3934_v36 = vpop.xlane.xlu0 %3933 }
0x157d   : > { %6540 = vmatpush3.bf16.msra.mxu1 %v9173_v21  ;;  %6541 = vmatprep.mubr.msk.bf16.mxu1 %vm7789_vm0, %v7788_v2  ;;  %v3693_v47 = vmul.f32 %v7152_v58, %v9275_v30  ;;  %7157 = vrcp.f32 %v3934_v36 }
0x157e   : > { %6551 = vmatprep.subr.bf16.mxu1 %v7788_v2  ;;  %7159 = vrcp.f32 %v3931_v7 }
0x157f   : > { %v3696_v52 = vpack.c.bf16 %v3695_v46, %v3693_v47  ;;  %v7154_v17 = vpop.eup %7153 }
0x1580   : > { %v7156_v31 = vpop.eup %7155  ;;  %v3816_v21 = vmul.f32 %v7154_v17, %v9300_v29  ;;  %v4055_v27 = vpop.xlane.xlu0 %4054 }
0x1581   : > { %v3814_v30 = vmul.f32 %v7156_v31, %v9279_v38 }
0x1582   : > { %v4052_v57 = vpop.xlane.xlu1 %4051 }
0x1583   : > { %7161 = vrcp.f32 %v4052_v57  ;;  %v3817_v59 = vpack.c.bf16 %v3816_v21, %v3814_v30 }
0x1584   : > { %6542 = vmatmul.mubr.msk.bf16.vlgmr.msra.gmra.mrb[64].mxu1 %vm1622_vm2, %v3696_v52  ;;  %7163 = vrcp.f32 %v4055_v27  ;;  %v3941_v62 = vpop.permute.xlu0 %3940 }
0x1585   : > { %6552 = vmatpush3.bf16.msra.mxu1 %v3820_v54  ;;  %6553 = vmatprep.mubr.msk.bf16.mxu1 %vm7789_vm0, %v7788_v2 }
0x1586   : > { %6563 = vmatprep.subr.bf16.mxu1 %v7788_v2  ;;  %v4062_v1 = vpop.permute.xlu1 %4061 }
0x1587   : > { %v7158_v44 = vpop.eup %7157 }
0x1588   : > { %v7160_v4 = vpop.eup %7159  ;;  %v3938_v11 = vmul.f32 %v7158_v44, %v9308_v20 }
0x1589   : > { %v3936_v60 = vmul.f32 %v7160_v4, %v9304_v23 }
0x158a   : > { %v6825_v52 = vpop.permute.xlu1 %6824 }
0x158b   : > { %v3939_v6 = vpack.c.bf16 %v3938_v11, %v3936_v60  ;;  %v6827_v31 = vunpack.i.h.bf16 %v6825_v52  ;;  %v6826_v21 = vunpack.i.l.bf16 %v6825_v52 }
0x158c   : > { %6554 = vmatmul.mubr.msk.bf16.vlgmr.msra.gmra.mrb[68].mxu1 %vm1622_vm2, %v3817_v59 }
0x158d   : > { %6564 = vmatpush3.bf16.msra.mxu1 %v3941_v62  ;;  %6565 = vmatprep.mubr.msk.bf16.mxu1 %vm7789_vm0, %v7788_v2  ;;  %v7162_v38 = vpop.eup %7161  ;;  %v3620_v59 = vsel %vm1574_vm1, %v9145_v16, %v6827_v31  ;;  %v3619_v44 = vsel %vm1574_vm1, %v9143_v3, %v6826_v21 }
0x158e   : > { %6575 = vmatprep.subr.bf16.mxu1 %v7788_v2  ;;  %v7164_v22 = vpop.eup %7163  ;;  %v4057_v55 = vmul.f32 %v7162_v38, %v9314_v39  ;;  %v6927_v39 = vld [vmem:[%s10168_s23 + $0x10] sm:$0xff]  }
0x158f   : > { %v4059_v24 = vmul.f32 %v7164_v22, %v9312_v35 }
0x1591   : > { %v4060_v29 = vpack.c.bf16 %v4059_v24, %v4057_v55 }
0x1594   : > { %6566 = vmatmul.mubr.msk.bf16.vlgmr.msra.gmra.mrb[72].mxu1 %vm1622_vm2, %v3939_v6 }
0x1595   : > { %6576 = vmatpush3.bf16.msra.mxu1 %v4062_v1  ;;  %6577 = vmatprep.mubr.msk.bf16.mxu1 %vm7789_vm0, %v7788_v2  ;;  %v6926_v2 = vld [vmem:[%s10168_s23 + $0x8] sm:$0xff]  }
0x1596   : > { %6583 = vmatprep.subr.bf16.mxu0 %v6926_v2 }
0x1597   : > { %6584 = vmatpush3.bf16.msra.mxu0 %v6926_v2 }
0x1598   : > { %6585 = vmatprep.subr.bf16.mxu0 %v6927_v39 }
0x159b   : > { %6586 = vmatpush3.bf16.msra.mxu0 %v6927_v39 }
0x159c   : > { %6578 = vmatmul.mubr.msk.bf16.vlgmr.msra.gmra.mrb[76].mxu1 %vm1622_vm2, %v4060_v29  ;;  %6587 = vmatprep.subr.bf16.mxu0 %v6928_v33 }
0x159d   : > { %4578 = vmatprep.mubr.bf16.mxu1 %v7787_v34 }
0x159f   : > { %6588 = vmatpush3.bf16.msra.mxu0 %v6928_v33 }
0x15a0   : > { %6589 = vmatprep.subr.bf16.mxu0 %v6929_v48 }
0x15a3   : > { %6590 = vmatpush3.bf16.msra.mxu0 %v6929_v48 }
0x15a4   : > { %6591 = vmatprep.subr.bf16.mxu0 %v6930_v12 }
0x15a7   : > { %6592 = vmatpush3.bf16.msra.mxu0 %v6930_v12 }
0x15a8   : > { %6593 = vmatprep.subr.bf16.mxu0 %v6931_v43 }
0x15ab   : > { %6594 = vmatpush3.bf16.msra.mxu0 %v6931_v43  ;;  %v6936_v43 = vld [vmem:[%s10170_s21 + $0x8] ss:$16 sps:$4 sm:$0xff]  }
0x15ac   : > { %6595 = vmatprep.subr.bf16.mxu0 %v6932_v28 }
0x15af   : > { %6596 = vmatpush3.bf16.msra.mxu0 %v6932_v28  ;;  %v6942_v28 = vld [vmem:[%s10170_s21 + $0x28] ss:$16 sps:$4 sm:$0xff]  }
0x161a   : > { %v3467_v56 = vpop.f32.mrb[56].mxu1 }
0x161b   : > { %v6519_v10 = vpop.f32.mrb[57].mxu1 }
0x161c   : > { %v3470_v23 = vpop.f32.mrb[58].mxu1 }
0x161d   : > { %v6828_v63 = vpack.i.bf16 %v3470_v23, %v3467_v56  ;;  %v6520_v20 = vpop.f32.mrb[59].mxu1 }
0x161f   : > { %6829 = vrot.lane.b32.xlu1 %v6828_v63, %s7791_s25 }
0x164f   : > { %v3588_v35 = vpop.f32.mrb[60].mxu1 }
0x1650   : > { %v6531_v41 = vpop.f32.mrb[61].mxu1 }
0x1651   : > { %v3591_v42 = vpop.f32.mrb[62].mxu1 }
0x1652   : > { %v6833_v40 = vpack.i.bf16 %v3591_v42, %v3588_v35  ;;  %v6532_v25 = vpop.f32.mrb[63].mxu1  ;;  %v6072_v42 = vld [vmem:[%s1197_s7] ss:$0 sm:$0xff] }
0x1654   : > { %6834 = vrot.lane.b32.xlu1 %v6833_v40, %s7790_s8 }
0x1657   : > { %v9366_v13 = vpop.f32.mrb[64].mxu1 }
0x1658   : > { %v6543_v45 = vpop.f32.mrb[65].mxu1 }
0x1659   : > { %v3738_v32 = vpop.f32.mrb[66].mxu1 }
0x165a   : > { %v6544_v0 = vpop.f32.mrb[67].mxu1 }
0x165f   : > { %v3859_v14 = vpop.f32.mrb[68].mxu1 }
0x1660   : > { %v6555_v15 = vpop.f32.mrb[69].mxu1 }
0x1661   : > { %v3862_v9 = vpop.f32.mrb[70].mxu1 }
0x1662   : > { %v6838_v37 = vpack.i.bf16 %v3862_v9, %v3859_v14  ;;  %v6556_v49 = vpop.f32.mrb[71].mxu1  ;;  %v6933_v9 = vld [vmem:[%s10170_s21] ss:$16 sps:$4 sm:$0xff]  }
0x1663   : > { %v6941_v49 = vld [vmem:[%s10170_s21 + $0x24] ss:$16 sps:$4 sm:$0xff]  }
0x1664   : > { %6839 = vrot.lane.b32.xlu1 %v6838_v37, %s7792_s19  ;;  %v6938_v37 = vld [vmem:[%s10170_s21 + $0xc] ss:$16 sps:$4 sm:$0xff]  }
0x1665   : > { %4599 = vmatprep.subr.bf16.mxu0 %v6938_v37 }
0x1667   : > { %v3980_v50 = vpop.f32.mrb[72].mxu1 }
0x1668   : > { %v6567_v51 = vpop.f32.mrb[73].mxu1 }
0x1669   : > { %v3983_v7 = vpop.f32.mrb[74].mxu1 }
0x166a   : > { %v6843_v5 = vpack.i.bf16 %v3983_v7, %v3980_v50  ;;  %v6568_v53 = vpop.f32.mrb[75].mxu1  ;;  %v6944_v50 = vld [vmem:[%s10170_s21 + $0x2c] ss:$16 sps:$4 sm:$0xff]  }
0x166c   : > { %6844 = vrot.lane.b32.xlu0 %v6843_v5, %s7791_s25 }
0x166f   : > { %v4101_v58 = vpop.f32.mrb[76].mxu1 }
0x1670   : > { %v6579_v46 = vpop.f32.mrb[77].mxu1 }
0x1671   : > { %v4104_v36 = vpop.f32.mrb[78].mxu1 }
0x1672   : > { %v6848_v47 = vpack.i.bf16 %v4104_v36, %v4101_v58  ;;  %v6580_v54 = vpop.f32.mrb[79].mxu1 }
0x1674   : > { %6849 = vrot.lane.b32.xlu1 %v6848_v47, %s7790_s8  ;;  %s10177_s8 = sld [smem:[#allocation55_spill]] }
0x1691   : > { %v6830_v17 = vpop.permute.xlu1 %6829 }
0x1692   : > { %v6832_v27 = vunpack.i.h.bf16 %v6830_v17  ;;  %v6831_v57 = vunpack.i.l.bf16 %v6830_v17 }
0x1694   : > { %v3622_v11 = vsel %vm2083_vm3, %v3620_v59, %v6832_v27  ;;  %v3621_v60 = vsel %vm2083_vm3, %v3619_v44, %v6831_v57  ;;  %v6950_v59 = vld [vmem:[%s10170_s21 + $0x4c] ss:$16 sps:$4 sm:$0xff]   ;;  %v6945_v44 = vld [vmem:[%s10170_s21 + $0x40] ss:$16 sps:$4 sm:$0xff]  }
0x16c6   : > { %v6835_v30 = vpop.permute.xlu1 %6834 }
0x16c7   : > { %v6837_v62 = vunpack.i.h.bf16 %v6835_v30  ;;  %v6836_v4 = vunpack.i.l.bf16 %v6835_v30  ;;  %v6947_v30 = vld [vmem:[%s10170_s21 + $0x44] ss:$16 sps:$4 sm:$0xff]  }
0x16c9   : > { %v3623_v6 = vsel %vm2086_vm4, %v3621_v60, %v6836_v4  ;;  %v3624_v38 = vsel %vm2086_vm4, %v3622_v11, %v6837_v62  ;;  %v6948_v62 = vld [vmem:[%s10170_s21 + $0x48] ss:$16 sps:$4 sm:$0xff]   ;;  %v6953_v4 = vld [vmem:[%s10170_s21 + $0x64] ss:$16 sps:$4 sm:$0xff]   ;;  %v6956_v11 = vld [vmem:[%s10170_s21 + $0x6c] ss:$16 sps:$4 sm:$0xff]  }
0x16ca   : > { %v4138_v1 = vpack.c.bf16 %v3624_v38, %v3623_v6  ;;  %v6951_v60 = vld [vmem:[%s10170_s21 + $0x60] ss:$16 sps:$4 sm:$0xff]   ;;  %v6954_v6 = vld [vmem:[%s10170_s21 + $0x68] ss:$16 sps:$4 sm:$0xff]   ;;  %v6959_v38 = vld [vmem:[%s10170_s21 + $0x84] ss:$16 sps:$4 sm:$0xff]  }
0x16cc   : > { %6597 = vmatprep.mubr.bf16.mxu0 %v4138_v1  ;;  %v6962_v1 = vld [vmem:[%s10170_s21 + $0x8c] ss:$16 sps:$4 sm:$0xff]  }
0x16d6   : > { %v6840_v22 = vpop.permute.xlu1 %6839 }
0x16d7   : > { %v6842_v24 = vunpack.i.h.bf16 %v6840_v22  ;;  %v6841_v16 = vunpack.i.l.bf16 %v6840_v22  ;;  %v6957_v22 = vld [vmem:[%s10170_s21 + $0x80] ss:$16 sps:$4 sm:$0xff]  }
0x16d9   : > { %v4133_v10 = vsel %vm1574_vm1, %v3738_v32, %v6842_v24  ;;  %v4132_v23 = vsel %vm1574_vm1, %v9366_v13, %v6841_v16  ;;  %v6965_v24 = vld [vmem:[%s10170_s21 + $0xa4] ss:$16 sps:$4 sm:$0xff]   ;;  %v6968_v16 = vld [vmem:[%s10170_s21 + $0xac] ss:$16 sps:$4 sm:$0xff]  }
0x16de   : > { %v6845_v55 = vpop.permute.xlu0 %6844 }
0x16df   : > { %v6847_v29 = vunpack.i.h.bf16 %v6845_v55  ;;  %v6846_v56 = vunpack.i.l.bf16 %v6845_v55  ;;  %v6960_v55 = vld [vmem:[%s10170_s21 + $0x88] ss:$16 sps:$4 sm:$0xff]  }
0x16e1   : > { %v4135_v18 = vsel %vm2083_vm3, %v4133_v10, %v6847_v29  ;;  %v4134_v2 = vsel %vm2083_vm3, %v4132_v23, %v6846_v56  ;;  %v6963_v29 = vld [vmem:[%s10170_s21 + $0xa0] ss:$16 sps:$4 sm:$0xff]   ;;  %v6966_v56 = vld [vmem:[%s10170_s21 + $0xa8] ss:$16 sps:$4 sm:$0xff]   ;;  %v6974_v10 = vld [vmem:[%s10170_s21 + $0xcc] ss:$16 sps:$4 sm:$0xff]  }
0x16e2   : > { %v6969_v23 = vld [vmem:[%s10170_s21 + $0xc0] ss:$16 sps:$4 sm:$0xff]  }
0x16e6   : > { %v6850_v3 = vpop.permute.xlu1 %6849 }
0x16e7   : > { %v6852_v63 = vunpack.i.h.bf16 %v6850_v3  ;;  %v6851_v20 = vunpack.i.l.bf16 %v6850_v3  ;;  %v6971_v3 = vld [vmem:[%s10170_s21 + $0xc4] ss:$16 sps:$4 sm:$0xff]  }
0x16e9   : > { %v4137_v39 = vsel %vm2086_vm4, %v4135_v18, %v6852_v63  ;;  %v4136_v35 = vsel %vm2086_vm4, %v4134_v2, %v6851_v20  ;;  %v6972_v63 = vld [vmem:[%s10170_s21 + $0xc8] ss:$16 sps:$4 sm:$0xff]   ;;  %v6977_v20 = vld [vmem:[%s10170_s21 + $0xe4] ss:$16 sps:$4 sm:$0xff]   ;;  %v6980_v18 = vld [vmem:[%s10170_s21 + $0xec] ss:$16 sps:$4 sm:$0xff]  }
0x16ea   : > { %v4139_v41 = vpack.c.bf16 %v4137_v39, %v4136_v35  ;;  %v6975_v2 = vld [vmem:[%s10170_s21 + $0xe0] ss:$16 sps:$4 sm:$0xff]   ;;  %v6978_v39 = vld [vmem:[%s10170_s21 + $0xe8] ss:$16 sps:$4 sm:$0xff]  }
0x16ec   : > { %6598 = vmatmul.mubr.bf16.vlgmr.msra.gmra.mrb[76].mxu0 %v4139_v41 }
0x16ed   : > { %4631 = vmatprep.mubr.bf16.mxu0 %v7787_v34  ;;  %4600 = vmatpush1.bf16.msra.mxu0 %v6936_v43  ;;  %v6081_v43 = vld [vmem:[%s1200_s14] ss:$0 sm:$0xff] }
0x16ee   : > { %4601 = vmatprep.subr.bf16.mxu0 %v6944_v50 }
0x16f1   : > { %4602 = vmatpush1.bf16.msra.mxu0 %v6942_v28 }
0x16f2   : > { %4603 = vmatprep.subr.bf16.mxu0 %v6950_v59  ;;  %v6986_v59 = vld [vmem:[%s10177_s8 + $0xc8] sm:$0xff]  }
0x16f5   : > { %4604 = vmatpush1.bf16.msra.mxu0 %v6948_v62  ;;  %v6988_v62 = vld [vmem:[%s10177_s8 + $0x88] sm:$0xff]  }
0x16f6   : > { %4605 = vmatprep.subr.bf16.mxu0 %v6956_v11  ;;  %v6990_v11 = vld [vmem:[%s10177_s8 + $0xd0] sm:$0xff]  }
0x16f9   : > { %4606 = vmatpush1.bf16.msra.mxu0 %v6954_v6  ;;  %v6992_v6 = vld [vmem:[%s10177_s8 + $0x90] sm:$0xff]  }
0x16fa   : > { %4607 = vmatprep.subr.bf16.mxu0 %v6962_v1  ;;  %v6994_v1 = vld [vmem:[%s10177_s8 + $0xd8] sm:$0xff]  }
0x16fd   : > { %4608 = vmatpush1.bf16.msra.mxu0 %v6960_v55  ;;  %v6996_v55 = vld [vmem:[%s10177_s8 + $0x98] sm:$0xff]  }
0x16fe   : > { %4609 = vmatprep.subr.bf16.mxu0 %v6968_v16  ;;  %v6998_v16 = vld [vmem:[%s10177_s8 + $0xe0] sm:$0xff]  }
0x1701   : > { %4610 = vmatpush1.bf16.msra.mxu0 %v6966_v56  ;;  %v7000_v56 = vld [vmem:[%s10177_s8 + $0xa0] sm:$0xff]  }
0x1702   : > { %4611 = vmatprep.subr.bf16.mxu0 %v6974_v10  ;;  %v7002_v10 = vld [vmem:[%s10177_s8 + $0xe8] sm:$0xff]  }
0x1705   : > { %4612 = vmatpush1.bf16.msra.mxu0 %v6972_v63  ;;  %v7004_v63 = vld [vmem:[%s10177_s8 + $0xa8] sm:$0xff]  }
0x1706   : > { %4613 = vmatprep.subr.bf16.mxu0 %v6980_v18  ;;  %v7005_v18 = vld [vmem:[%s10177_s8 + $0x70] sm:$0xff]  }
0x1709   : > { %4614 = vmatpush1.bf16.msra.mxu0 %v6978_v39  ;;  %v7007_v39 = vld [vmem:[%s10177_s8 + $0x30] sm:$0xff]  }
0x17bf   : > { %v6599_v40 = vpop.f32.mrb[76].mxu0 }
0x17c0   : > { %v4245_v25 = vpop.f32.mrb[77].mxu0  ;;  %v4254_v32 = vadd.f32 %v6599_v40, %v6072_v42 }
0x17c1   : > { %v4246_v13 = vadd.f32 %v6072_v42, %v4245_v25  ;;  %v6600_v33 = vpop.f32.mrb[78].mxu0 }
0x17c2   : > { %v4248_v45 = vpop.f32.mrb[79].mxu0  ;;  %v9405_v12 = vadd.f32 %v4254_v32, %v9010_v26  ;;  %v4257_v15 = vadd.f32 %v6600_v33, %v6072_v42  ;;  %v6939_v26 = vld [vmem:[%s10170_s21 + $0x20] ss:$16 sps:$4 sm:$0xff]  }
0x17c3   : > { %v9398_v48 = vadd.f32 %v4246_v13, %v8993_v8  ;;  %v4249_v0 = vadd.f32 %v6072_v42, %v4248_v45 }
0x17c4   : > { %10173 = vst [vmem:[#allocation58_spill] sm:$0xff] %v9405_v12  ;;  %v9410_v8 = vadd.f32 %v4257_v15, %v8996_v61 }
0x17c5   : > { %10171 = vst [vmem:[#allocation56_spill] sm:$0xff] %v9398_v48  ;;  %v9401_v14 = vadd.f32 %v4249_v0, %v9003_v19  ;;  %4266 = vadd.xlane.f32.xlu0 %v9398_v48  ;;  %v6935_v19 = vld [vmem:[%s10170_s21 + $0x4] ss:$16 sps:$4 sm:$0xff]  }
0x17c6   : > { %10174 = vst [vmem:[#allocation59_spill] sm:$0xff] %v9410_v8  ;;  %4546 = vmatprep.subr.bf16.mxu1 %v6935_v19 }
0x17c7   : > { %10172 = vst [vmem:[#allocation57_spill] sm:$0xff] %v9401_v14  ;;  %4268 = vadd.xlane.f32.xlu1 %v9401_v14  ;;  %4547 = vmatpush1.bf16.msra.mxu1 %v6933_v9 }
0x17c8   : > { %4548 = vmatprep.subr.bf16.mxu1 %v6941_v49 }
0x17c9   : > { %4270 = vadd.xlane.f32.xlu0 %v9405_v12 }
0x17cb   : > { %4549 = vmatpush1.bf16.msra.mxu1 %v6939_v26 }
0x17cc   : > { %4550 = vmatprep.subr.bf16.mxu1 %v6947_v30  ;;  %v6984_v30 = vld [vmem:[%s10177_s8 + $0x80] sm:$0xff]  }
0x17cd   : > { %4272 = vadd.xlane.f32.xlu0 %v9410_v8 }
0x17cf   : > { %4551 = vmatpush1.bf16.msra.mxu1 %v6945_v44  ;;  %v6987_v44 = vld [vmem:[%s10177_s8 + $0x8] sm:$0xff]  }
0x17d0   : > { %4552 = vmatprep.subr.bf16.mxu1 %v6953_v4  ;;  %v6989_v4 = vld [vmem:[%s10177_s8 + $0x50] sm:$0xff]  }
0x17d3   : > { %4553 = vmatpush1.bf16.msra.mxu1 %v6951_v60  ;;  %v6991_v60 = vld [vmem:[%s10177_s8 + $0x10] sm:$0xff]  }
0x17d4   : > { %4554 = vmatprep.subr.bf16.mxu1 %v6959_v38  ;;  %v6993_v38 = vld [vmem:[%s10177_s8 + $0x58] sm:$0xff]  }
0x17d7   : > { %4555 = vmatpush1.bf16.msra.mxu1 %v6957_v22  ;;  %v6995_v22 = vld [vmem:[%s10177_s8 + $0x18] sm:$0xff]  }
0x17d8   : > { %4556 = vmatprep.subr.bf16.mxu1 %v6965_v24  ;;  %v6997_v24 = vld [vmem:[%s10177_s8 + $0x60] sm:$0xff]  }
0x17db   : > { %4557 = vmatpush1.bf16.msra.mxu1 %v6963_v29  ;;  %v6999_v29 = vld [vmem:[%s10177_s8 + $0x20] sm:$0xff]  }
0x17dc   : > { %4558 = vmatprep.subr.bf16.mxu1 %v6971_v3  ;;  %v7001_v3 = vld [vmem:[%s10177_s8 + $0x68] sm:$0xff]  }
0x17df   : > { %4559 = vmatpush1.bf16.msra.mxu1 %v6969_v23  ;;  %v7003_v23 = vld [vmem:[%s10177_s8 + $0x28] sm:$0xff]  }
0x17e0   : > { %4560 = vmatprep.subr.bf16.mxu1 %v6977_v20  ;;  %v4366_v20 = vlaneseq }
0x17e3   : > { %4561 = vmatpush1.bf16.msra.mxu1 %v6975_v2  ;;  %v7006_v2 = vld [vmem:[%s10177_s8 + $0xf0] sm:$0xff]  }
0x1852   : > { %v4267_v61 = vpop.xlane.xlu0 %4266 }
0x1853   : > { %v4274_v51 = vmul.f32 0.0078125, %v4267_v61  ;;  %v6082_v61 = vld [vmem:[%s1203_s27] ss:$0 sm:$0xff] }
0x1854   : > { %v4269_v7 = vpop.xlane.xlu1 %4268 }
0x1855   : > { %v9422_v5 = vsub.f32 %v9398_v48, %v4274_v51  ;;  %v4275_v53 = vmul.f32 0.0078125, %v4269_v7 }
0x1856   : > { %v4271_v58 = vpop.xlane.xlu0 %4270 }
0x1857   : > { %v9425_v46 = vsub.f32 %v9401_v14, %v4275_v53  ;;  %v4276_v36 = vmul.f32 0.0078125, %v4271_v58  ;;  %v4282_v47 = vmul.f32 %v9422_v5, %v9422_v5 }
0x1859   : > { %v9430_v54 = vsub.f32 %v9405_v12, %v4276_v36  ;;  %4286 = vadd.xlane.f32.xlu0 %v4282_v47  ;;  %v4283_v52 = vmul.f32 %v9425_v46, %v9425_v46 }
0x185a   : > { %v4273_v17 = vpop.xlane.xlu0 %4272 }
0x185b   : > { %v4277_v31 = vmul.f32 0.0078125, %v4273_v17  ;;  %4288 = vadd.xlane.f32.xlu1 %v4283_v52  ;;  %v4284_v21 = vmul.f32 %v9430_v54, %v9430_v54 }
0x185d   : > { %v9437_v27 = vsub.f32 %v9410_v8, %v4277_v31  ;;  %4290 = vadd.xlane.f32.xlu0 %v4284_v21  ;;  %v6981_v21 = vld [vmem:[%s10177_s8 + $0x40] sm:$0xff]  }
0x185e   : > { %6273 = vmatprep.subr.bf16.mxu1 %v6981_v21 }
0x185f   : > { %v4285_v57 = vmul.f32 %v9437_v27, %v9437_v27 }
0x1861   : > { %4292 = vadd.xlane.f32.xlu1 %v4285_v57  ;;  %v6983_v57 = vld [vmem:[%s10177_s8] sm:$0xff]  }
0x18e6   : > { %v4287_v35 = vpop.xlane.xlu0 %4286 }
0x18e7   : > { %v4294_v41 = vmul.f32 0.0078125, %v4287_v35  ;;  %v7008_v35 = vld [vmem:[%s10177_s8 + $0xb0] sm:$0xff]  }
0x18e8   : > { %v4289_v42 = vpop.xlane.xlu1 %4288 }
0x18e9   : > { %v4298_v40 = vadd.f32 1e-05, %v4294_v41  ;;  %v4295_v25 = vmul.f32 0.0078125, %v4289_v42  ;;  %v4367_v41 = vshrl.u32 %v4366_v20, 7  ;;  %v7009_v42 = vld [vmem:[%s10177_s8 + $0x78] sm:$0xff]  }
0x18ea   : > { %v4291_v13 = vpop.xlane.xlu0 %4290 }
0x18eb   : > { %7165 = vrsqrt.f32 %v4298_v40  ;;  %v4299_v33 = vadd.f32 1e-05, %v4295_v25  ;;  %v4296_v45 = vmul.f32 0.0078125, %v4291_v13  ;;  %v7010_v40 = vld [vmem:[%s10177_s8 + $0xf8] sm:$0xff]  }
0x18ec   : > { %v7011_v25 = vld [vmem:[%s10177_s8 + $0x38] sm:$0xff]  }
0x18ed   : > { %7167 = vrsqrt.f32 %v4299_v33  ;;  %v4300_v32 = vadd.f32 1e-05, %v4296_v45  ;;  %v7012_v13 = vld [vmem:[%s10177_s8 + $0xb8] sm:$0xff]   ;;  %v4368_v33 = vsub.s32 0, %v4367_v41  ;;  %v4376_v45 = vsub.s32 2, %v4367_v41 }
0x18ee   : > { %v4293_v0 = vpop.xlane.xlu1 %4292 }
0x18ef   : > { %7169 = vrsqrt.f32 %v4300_v32  ;;  %v4297_v15 = vmul.f32 0.0078125, %v4293_v0  ;;  %v4364_v32 = vld [vmem:[%s8609_s6] sm:$0xf]  ;;  %v4372_v0 = vsub.s32 1, %v4367_v41 }
0x18f1   : > { %v4301_v9 = vadd.f32 1e-05, %v4297_v15  ;;  %v4380_v15 = vsub.s32 3, %v4367_v41 }
0x18f3   : > { %7171 = vrsqrt.f32 %v4301_v9  ;;  %v9514_v9 = vrot.slane %v4364_v32, %v4368_v33 }
0x18f5   : > { %v7166_v19 = vpop.eup %7165 }
0x18f6   : > { %v4306_v37 = vmul.f32 %v7166_v19, %v9422_v5  ;;  %v9516_v19 = vrot.slane %v4364_v32, %v4376_v45 }
0x18f7   : > { %v7168_v49 = vpop.eup %7167 }
0x18f8   : > { %v4307_v50 = vmul.f32 %v7168_v49, %v9425_v46  ;;  %v4316_v26 = vmul.f32 %v6081_v43, %v4306_v37  ;;  %v9520_v37 = vrot.slane %v4364_v32, %v4380_v15 }
0x18f9   : > { %v7170_v28 = vpop.eup %7169 }
0x18fa   : > { %v4317_v51 = vmul.f32 %v6081_v43, %v4307_v50  ;;  %v4326_v7 = vadd.f32 %v6082_v61, %v4316_v26  ;;  %v4308_v58 = vmul.f32 %v7170_v28, %v9430_v54 }
0x18fc   : > { %v4327_v53 = vadd.f32 %v6082_v61, %v4317_v51  ;;  %v4318_v47 = vmul.f32 %v6081_v43, %v4308_v58 }
0x18fd   : > { %v7172_v36 = vpop.eup %7171 }
0x18fe   : > { %v4330_v5 = vpack.c.bf16 %v4327_v53, %v4326_v7  ;;  %v4309_v46 = vmul.f32 %v7172_v36, %v9437_v27  ;;  %v4328_v54 = vadd.f32 %v6082_v61, %v4318_v47  ;;  %v6982_v27 = vld [vmem:[%s10177_s8 + $0xc0] sm:$0xff]  }
0x18ff   : > { %6301 = vmatprep.subr.bf16.mxu0 %v6982_v27 }
0x1900   : > { %4579 = vmatmul.mubr.bf16.vlgmr.msra.gmra.mrb[80].mxu1 %v4330_v5  ;;  %4632 = vmatmul.mubr.bf16.vlgmr.msra.gmra.mrb[80].mxu0 %v4330_v5  ;;  %v4319_v52 = vmul.f32 %v6081_v43, %v4309_v46  ;;  %v9518_v43 = vrot.slane %v4364_v32, %v4372_v0 }
0x1901   : > { %4588 = vmatprep.mubr.bf16.mxu1 %v7787_v34  ;;  %4641 = vmatprep.mubr.bf16.mxu0 %v7787_v34  ;;  %v6985_v34 = vld [vmem:[%s10177_s8 + $0x48] sm:$0xff]  }
0x1902   : > { %v4329_v17 = vadd.f32 %v6082_v61, %v4319_v52  ;;  %6274 = vmatpush3.bf16.msra.mxu1 %v6983_v57  ;;  %6302 = vmatpush3.bf16.msra.mxu0 %v6984_v30 }
0x1903   : > { %6275 = vmatprep.subr.bf16.mxu1 %v6985_v34  ;;  %6303 = vmatprep.subr.bf16.mxu0 %v6986_v59 }
0x1904   : > { %v4331_v31 = vpack.c.bf16 %v4329_v17, %v4328_v54 }
0x1906   : > { %6276 = vmatpush3.bf16.msra.mxu1 %v6987_v44  ;;  %6304 = vmatpush3.bf16.msra.mxu0 %v6988_v62 }
0x1907   : > { %6277 = vmatprep.subr.bf16.mxu1 %v6989_v4  ;;  %6305 = vmatprep.subr.bf16.mxu0 %v6990_v11 }
0x1908   : > { %4589 = vmatmul.mubr.bf16.gmra.mrb[84].mxu1 %v4331_v31  ;;  %4642 = vmatmul.mubr.bf16.gmra.mrb[84].mxu0 %v4331_v31 }
0x190a   : > { %6278 = vmatpush3.bf16.msra.mxu1 %v6991_v60  ;;  %6306 = vmatpush3.bf16.msra.mxu0 %v6992_v6 }
0x190b   : > { %6279 = vmatprep.subr.bf16.mxu1 %v6993_v38  ;;  %6307 = vmatprep.subr.bf16.mxu0 %v6994_v1 }
0x190e   : > { %6280 = vmatpush3.bf16.msra.mxu1 %v6995_v22  ;;  %6308 = vmatpush3.bf16.msra.mxu0 %v6996_v55 }
0x190f   : > { %6281 = vmatprep.subr.bf16.mxu1 %v6997_v24  ;;  %6309 = vmatprep.subr.bf16.mxu0 %v6998_v16 }
0x1912   : > { %6282 = vmatpush3.bf16.msra.mxu1 %v6999_v29  ;;  %6310 = vmatpush3.bf16.msra.mxu0 %v7000_v56 }
0x1913   : > { %6283 = vmatprep.subr.bf16.mxu1 %v7001_v3  ;;  %6311 = vmatprep.subr.bf16.mxu0 %v7002_v10 }
0x1916   : > { %6284 = vmatpush3.bf16.msra.mxu1 %v7003_v23  ;;  %6312 = vmatpush3.bf16.msra.mxu0 %v7004_v63 }
0x1917   : > { %6285 = vmatprep.subr.bf16.mxu1 %v7005_v18  ;;  %6313 = vmatprep.subr.bf16.mxu0 %v7006_v2 }
0x191a   : > { %6286 = vmatpush3.bf16.msra.mxu1 %v7007_v39  ;;  %6314 = vmatpush3.bf16.msra.mxu0 %v7008_v35 }
0x191b   : > { %6287 = vmatprep.subr.bf16.mxu1 %v7009_v42  ;;  %6315 = vmatprep.subr.bf16.mxu0 %v7010_v40 }
0x191e   : > { %6288 = vmatpush3.bf16.msra.mxu1 %v7011_v25  ;;  %6316 = vmatpush3.bf16.msra.mxu0 %v7012_v13 }
0x19d3   : > { %v4580_v49 = vpop.f32.mrb[80].mxu1  ;;  %v4633_v50 = vpop.f32.mrb[80].mxu0 }
0x19d4   : > { %v9523_v26 = vadd.f32 %v4580_v49, %v9514_v9  ;;  %v9526_v28 = vadd.f32 %v4633_v50, %v9516_v19  ;;  %v4582_v61 = vpop.f32.mrb[81].mxu1  ;;  %v4635_v51 = vpop.f32.mrb[81].mxu0 }
0x19d5   : > { %v9529_v7 = vadd.f32 %v4582_v61, %v9518_v43  ;;  %v9532_v53 = vadd.f32 %v4635_v51, %v9520_v37  ;;  %v4584_v58 = vpop.f32.mrb[82].mxu1  ;;  %v4637_v36 = vpop.f32.mrb[82].mxu0 }
0x19d6   : > { %v9535_v5 = vmul.f32 0.70710677, %v9523_v26  ;;  %v9538_v46 = vmul.f32 0.70710677, %v9526_v28  ;;  %v4586_v30 = vpop.f32.mrb[83].mxu1  ;;  %v4639_v34 = vpop.f32.mrb[83].mxu0  ;;  %v9567_v24 = vadd.f32 %v4584_v58, %v9514_v9  ;;  %v9574_v56 = vadd.f32 %v4637_v36, %v9516_v19 }
0x19d7   : > { %v9541_v47 = vmul.f32 0.70710677, %v9529_v7  ;;  %v9544_v52 = vmul.f32 0.70710677, %v9532_v53  ;;  %v9580_v23 = vadd.f32 %v4586_v30, %v9518_v43  ;;  %v9587_v2 = vadd.f32 %v4639_v34, %v9520_v37 }
0x19d8   : > { %v4684_v17 = vand.u32 2147483647, %v9535_v5  ;;  %v4686_v54 = vand.u32 2147483647, %v9538_v46  ;;  %v9577_v10 = vmul.f32 0.70710677, %v9567_v24 }
0x19d9   : > { %v9549_v31 = vand.u32 2147483647, %v9541_v47  ;;  %v9552_v21 = vand.u32 2147483647, %v9544_v52  ;;  %v9583_v63 = vmul.f32 0.70710677, %v9574_v56 }
0x19da   : > { %v4700_v27 = vmul.f32 0.3275911, %v4684_v17  ;;  %v4702_v57 = vmul.f32 0.3275911, %v4686_v54  ;;  %v4908_v20 = vmul.f32 %v4684_v17, %v4684_v17  ;;  %v4688_v18 = vand.u32 2147483647, %v9577_v10 }
0x19db   : > { %v4701_v59 = vmul.f32 0.3275911, %v9549_v31  ;;  %v4590_v44 = vpop.f32.mrb[84].mxu1  ;;  %v9555_v62 = vpop.f32.mrb[84].mxu0  ;;  %v4703_v60 = vmul.f32 0.3275911, %v9552_v21  ;;  %v4910_v39 = vmul.f32 %v4686_v54, %v4686_v54 }
0x19dc   : > { %v4716_v4 = vadd.f32 1.0, %v4700_v27  ;;  %v4718_v11 = vadd.f32 1.0, %v4702_v57  ;;  %v9558_v6 = vpop.f32.mrb[85].mxu1  ;;  %v9560_v38 = vpop.f32.mrb[85].mxu0  ;;  %v4690_v35 = vand.u32 2147483647, %v9583_v63  ;;  %v4912_v50 = vmul.f32 %v4688_v18, %v4688_v18 }
0x19dd   : > { %v9562_v1 = vpop.f32.mrb[86].mxu1  ;;  %v9564_v22 = vpop.f32.mrb[86].mxu0  ;;  %v4717_v55 = vadd.f32 1.0, %v4701_v59  ;;  %v4719_v3 = vadd.f32 1.0, %v4703_v60  ;;  %v9591_v41 = vmul.f32 0.70710677, %v9580_v23 }
0x19de   : > { %7173 = vrcp.f32 %v4716_v4  ;;  %v9569_v16 = vpop.f32.mrb[87].mxu1  ;;  %v9571_v29 = vpop.f32.mrb[87].mxu0  ;;  %v4704_v42 = vmul.f32 0.3275911, %v4688_v18  ;;  %v4706_v40 = vmul.f32 0.3275911, %v4690_v35  ;;  %v4914_v27 = vmul.f32 %v4690_v35, %v4690_v35 }
0x19df   : > { %7175 = vrcp.f32 %v4718_v11  ;;  %v4689_v25 = vand.u32 2147483647, %v9591_v41  ;;  %v4924_v13 = vsub.f32 0.0, %v4908_v20  ;;  %v9595_v45 = vmul.f32 0.70710677, %v9587_v2 }
0x19e0   : > { %7177 = vrcp.f32 %v4717_v55  ;;  %v4720_v33 = vadd.f32 1.0, %v4704_v42  ;;  %v4926_v32 = vsub.f32 0.0, %v4910_v39  ;;  %v4722_v0 = vadd.f32 1.0, %v4706_v40 }
0x19e1   : > { %7179 = vrcp.f32 %v4719_v3  ;;  %v4705_v15 = vmul.f32 0.3275911, %v4689_v25  ;;  %v4691_v61 = vand.u32 2147483647, %v9595_v45  ;;  %v4940_v17 = vmul.f32 1.442695, %v4924_v13 }
0x19e2   : > { %7181 = vrcp.f32 %v4720_v33  ;;  %v9605_v30 = vmul.f32 0.5, %v9523_v26  ;;  %v4944_v59 = vmul.f32 1.442695, %v4926_v32  ;;  %v9608_v4 = vadd.f32 %v4590_v44, %v9514_v9 }
0x19e3   : > { %7183 = vrcp.f32 %v4722_v0  ;;  %v4721_v36 = vadd.f32 1.0, %v4705_v15  ;;  %v4707_v57 = vmul.f32 0.3275911, %v4691_v61  ;;  %v4928_v55 = vsub.f32 0.0, %v4912_v50 }
0x19e4   : > { %10178 = vst [vmem:[#allocation60_spill] sm:$0xff] %v9608_v4  ;;  %v9614_v18 = vmul.f32 0.5, %v9526_v28  ;;  %v9619_v26 = vmul.f32 %v9549_v31, %v9549_v31  ;;  %v4930_v42 = vsub.f32 0.0, %v4914_v27  ;;  %v9625_v40 = vmul.f32 0.70710677, %v9608_v4 }
0x19e5   : > { %7185 = vrcp.f32 %v4721_v36  ;;  %v4723_v3 = vadd.f32 1.0, %v4707_v57  ;;  %v4948_v0 = vmul.f32 1.442695, %v4928_v55  ;;  %v4913_v15 = vmul.f32 %v4689_v25, %v4689_v25 }
0x19e6   : > { %7187 = vpow2.f32 %v4940_v17  ;;  %10179 = vst [vmem:[#allocation61_spill] sm:$0xff] %v9625_v40  ;;  %v9631_v36 = vand.u32 2147483647, %v9625_v40  ;;  %v4925_v27 = vsub.f32 0.0, %v9619_v26  ;;  %v9639_v57 = vmul.f32 %v9552_v21, %v9552_v21 }
0x19e7   : > { %7189 = vrcp.f32 %v4723_v3  ;;  %vm5004_vm5 = vcmp.lt.f32.partialorder %v9535_v5, 0.0  ;;  %vm5006_vm6 = vcmp.lt.f32.partialorder %v9538_v46, 0.0  ;;  %vm5008_vm7 = vcmp.lt.f32.partialorder %v9577_v10, 0.0 }
0x19e8   : > { %v9597_v49 = vpop.eup %7173  ;;  %7191 = vpow2.f32 %v4944_v59  ;;  %v4708_v21 = vmul.f32 0.3275911, %v9631_v36  ;;  %vm5010_vm8 = vcmp.lt.f32.partialorder %v9583_v63, 0.0  ;;  %v9699_v10 = vadd.f32 %v9558_v6, %v9518_v43 }
0x19e9   : > { %v9600_v51 = vpop.eup %7175  ;;  %v4764_v58 = vmul.f32 1.0614054, %v9597_v49  ;;  %7193 = vpow2.f32 %v4948_v0  ;;  %vm5009_vm9 = vcmp.lt.f32.partialorder %v9591_v41, 0.0  ;;  %vm5005_vm10 = vcmp.lt.f32.partialorder %v9541_v47, 0.0 }
0x19ea   : > { %v4766_v54 = vmul.f32 1.0614054, %v9600_v51  ;;  %v9610_v11 = vpop.eup %7177  ;;  %vm5007_vm11 = vcmp.lt.f32.partialorder %v9544_v52, 0.0  ;;  %vm5011_vm12 = vcmp.lt.f32.partialorder %v9595_v45, 0.0 }
0x19eb   : > { %v4780_v34 = vadd.f32 -1.4531521, %v4764_v58  ;;  %v4765_v39 = vmul.f32 1.0614054, %v9610_v11  ;;  %v9621_v35 = vpop.eup %7179 }
0x19ec   : > { %v4782_v60 = vadd.f32 -1.4531521, %v4766_v54  ;;  %v4767_v28 = vmul.f32 1.0614054, %v9621_v35  ;;  %v9633_v17 = vpop.eup %7181 }
0x19ed   : > { %v4796_v20 = vmul.f32 %v9597_v49, %v4780_v34  ;;  %v4781_v33 = vadd.f32 -1.4531521, %v4765_v39  ;;  %v4952_v34 = vmul.f32 1.442695, %v4930_v42  ;;  %v9641_v25 = vpop.eup %7183  ;;  %v4768_v3 = vmul.f32 1.0614054, %v9633_v17 }
0x19ee   : > { %v4798_v44 = vmul.f32 %v9600_v51, %v4782_v60  ;;  %v4783_v58 = vadd.f32 -1.4531521, %v4767_v28  ;;  %v4770_v39 = vmul.f32 1.0614054, %v9641_v25 }
0x19ef   : > { %v4812_v13 = vadd.f32 1.4214138, %v4796_v20  ;;  %v4797_v50 = vmul.f32 %v9610_v11, %v4781_v33  ;;  %v4915_v33 = vmul.f32 %v4691_v61, %v4691_v61  ;;  %v9648_v42 = vpop.eup %7185  ;;  %7195 = vpow2.f32 %v4952_v34 }
0x19f0   : > { %v4814_v32 = vadd.f32 1.4214138, %v4798_v44  ;;  %v4799_v55 = vmul.f32 %v9621_v35, %v4783_v58  ;;  %v4929_v44 = vsub.f32 0.0, %v4913_v15  ;;  %v4724_v34 = vadd.f32 1.0, %v4708_v21 }
0x19f1   : > { %v4828_v31 = vmul.f32 %v9597_v49, %v4812_v13  ;;  %v4813_v60 = vadd.f32 1.4214138, %v4797_v50  ;;  %v4784_v13 = vadd.f32 -1.4531521, %v4768_v3  ;;  %v4769_v3 = vmul.f32 1.0614054, %v9648_v42 }
0x19f2   : > { %v4830_v54 = vmul.f32 %v9600_v51, %v4814_v32  ;;  %v4927_v32 = vsub.f32 0.0, %v9639_v57  ;;  %v4815_v58 = vadd.f32 1.4214138, %v4799_v55  ;;  %v4950_v8 = vmul.f32 1.442695, %v4929_v44 }
0x19f3   : > { %v4844_v59 = vadd.f32 -0.28449672, %v4828_v31  ;;  %v4786_v31 = vadd.f32 -1.4531521, %v4770_v39  ;;  %v4829_v0 = vmul.f32 %v9610_v11, %v4813_v60  ;;  %v4800_v15 = vmul.f32 %v9633_v17, %v4784_v13 }
0x19f4   : > { %v4846_v20 = vadd.f32 -0.28449672, %v4830_v54  ;;  %v7188_v54 = vpop.eup %7187  ;;  %v4931_v39 = vsub.f32 0.0, %v4915_v33  ;;  %v4785_v14 = vadd.f32 -1.4531521, %v4769_v3  ;;  %7197 = vpow2.f32 %v4950_v8 }
0x19f5   : > { %v4860_v26 = vmul.f32 %v9597_v49, %v4844_v59  ;;  %v4802_v61 = vmul.f32 %v9641_v25, %v4786_v31  ;;  %v9656_v12 = vpop.eup %7189  ;;  %v4816_v57 = vadd.f32 1.4214138, %v4800_v15  ;;  %v4845_v48 = vadd.f32 -0.28449672, %v4829_v0 }
0x19f6   : > { %v4862_v28 = vmul.f32 %v9600_v51, %v4846_v20  ;;  %v4771_v13 = vmul.f32 1.0614054, %v9656_v12  ;;  %v4831_v31 = vmul.f32 %v9621_v35, %v4815_v58  ;;  %v4942_v21 = vmul.f32 1.442695, %v4925_v27 }
0x19f7   : > { %v4876_v50 = vadd.f32 0.2548296, %v4860_v26  ;;  %v7192_v26 = vpop.eup %7191  ;;  %v4818_v55 = vadd.f32 1.4214138, %v4802_v61  ;;  %v4832_v44 = vmul.f32 %v9633_v17, %v4816_v57  ;;  %7199 = vrcp.f32 %v4724_v34 }
0x19f8   : > { %v4878_v59 = vadd.f32 0.2548296, %v4862_v28  ;;  %v4787_v33 = vadd.f32 -1.4531521, %v4771_v13  ;;  %v7194_v15 = vpop.eup %7193  ;;  %v4861_v3 = vmul.f32 %v9610_v11, %v4845_v48  ;;  %7201 = vpow2.f32 %v4942_v21 }
0x19f9   : > { %v4892_v20 = vmul.f32 %v9597_v49, %v4876_v50  ;;  %v4834_v4 = vmul.f32 %v9641_v25, %v4818_v55  ;;  %v4801_v49 = vmul.f32 %v9648_v42, %v4785_v14  ;;  %v4848_v50 = vadd.f32 -0.28449672, %v4832_v44  ;;  %v7196_v57 = vpop.eup %7195 }
0x19fa   : > { %v4894_v60 = vmul.f32 %v9600_v51, %v4878_v59  ;;  %v4954_v51 = vmul.f32 1.442695, %v4931_v39  ;;  %v4877_v55 = vadd.f32 0.2548296, %v4861_v3  ;;  %v9680_v21 = vadd.f32 %v9555_v62, %v9516_v19 }
0x19fb   : > { %v4972_v28 = vmul.f32 %v7188_v54, %v4892_v20  ;;  %v4850_v59 = vadd.f32 -0.28449672, %v4834_v4  ;;  %v4817_v61 = vadd.f32 1.4214138, %v4801_v49  ;;  %v4803_v54 = vmul.f32 %v9656_v12, %v4787_v33 }
0x19fc   : > { %v4974_v40 = vmul.f32 %v7192_v26, %v4894_v60  ;;  %v4864_v20 = vmul.f32 %v9633_v17, %v4848_v50  ;;  %v4847_v26 = vadd.f32 -0.28449672, %v4831_v31  ;;  %v4946_v4 = vmul.f32 1.442695, %v4927_v32 }
0x19fd   : > { %v4988_v0 = vsub.f32 1.0, %v4972_v28  ;;  %v4866_v14 = vmul.f32 %v9641_v25, %v4850_v59  ;;  %v4833_v27 = vmul.f32 %v9648_v42, %v4817_v61  ;;  %v4819_v8 = vadd.f32 1.4214138, %v4803_v54 }
0x19fe   : > { %v4990_v58 = vsub.f32 1.0, %v4974_v40  ;;  %v4880_v39 = vadd.f32 0.2548296, %v4864_v20  ;;  %7203 = vpow2.f32 %v4954_v51  ;;  %v4863_v28 = vmul.f32 %v9621_v35, %v4847_v26  ;;  %v7198_v61 = vpop.eup %7197 }
0x19ff   : > { %v4882_v34 = vadd.f32 0.2548296, %v4866_v14  ;;  %v4849_v40 = vadd.f32 -0.28449672, %v4833_v27  ;;  %v5020_v48 = vsub.f32 0.0, %v4988_v0  ;;  %v4835_v49 = vmul.f32 %v9656_v12, %v4819_v8 }
0x1a00   : > { %v5022_v60 = vsub.f32 0.0, %v4990_v58  ;;  %v4896_v13 = vmul.f32 %v9633_v17, %v4880_v39  ;;  %7205 = vpow2.f32 %v4946_v4  ;;  %v4656_v32 = vmul.f32 0.5, %v9567_v24 }
0x1a01   : > { %v4898_v31 = vmul.f32 %v9641_v25, %v4882_v34  ;;  %v4865_v44 = vmul.f32 %v9648_v42, %v4849_v40  ;;  %v4658_v50 = vmul.f32 0.5, %v9574_v56  ;;  %v4851_v59 = vadd.f32 -0.28449672, %v4835_v49  ;;  %v9688_v24 = vpop.eup %7199 }
0x1a02   : > { %v4976_v33 = vmul.f32 %v7194_v15, %v4896_v13  ;;  %v5036_v25 = vsel %vm5004_vm5, %v5020_v48, %v4988_v0  ;;  %v5038_v54 = vsel %vm5006_vm6, %v5022_v60, %v4990_v58  ;;  %v4893_v62 = vmul.f32 %v9610_v11, %v4877_v55  ;;  %v7202_v11 = vpop.eup %7201 }
0x1a03   : > { %v4978_v51 = vmul.f32 %v7196_v57, %v4898_v31  ;;  %v4881_v17 = vadd.f32 0.2548296, %v4865_v44  ;;  %v4879_v15 = vadd.f32 0.2548296, %v4863_v28  ;;  %v4867_v5 = vmul.f32 %v9656_v12, %v4851_v59 }
0x1a04   : > { %v4992_v3 = vsub.f32 1.0, %v4976_v33  ;;  %v9695_v0 = vmul.f32 0.70710677, %v9680_v21  ;;  %v5052_v46 = vadd.f32 1.0, %v5036_v25  ;;  %v5054_v58 = vadd.f32 1.0, %v5038_v54 }
0x1a05   : > { %v4994_v20 = vsub.f32 1.0, %v4978_v51  ;;  %v4897_v56 = vmul.f32 %v9648_v42, %v4881_v17  ;;  %v4883_v8 = vadd.f32 0.2548296, %v4867_v5  ;;  %v4973_v39 = vmul.f32 %v7202_v11, %v4893_v62 }
0x1a06   : > { %v5024_v57 = vsub.f32 0.0, %v4992_v3  ;;  %v9702_v42 = vand.u32 2147483647, %v9695_v0  ;;  %v4895_v34 = vmul.f32 %v9621_v35, %v4879_v15  ;;  %v4772_v6 = vmul.f32 1.0614054, %v9688_v24 }
0x1a07   : > { %v5026_v26 = vsub.f32 0.0, %v4994_v20  ;;  %v4977_v27 = vmul.f32 %v7198_v61, %v4897_v56  ;;  %v4899_v55 = vmul.f32 %v9656_v12, %v4883_v8  ;;  %v9711_v28 = vmul.f32 %v5052_v46, %v9605_v30 }
0x1a08   : > { %v5040_v14 = vsel %vm5008_vm7, %v5024_v57, %v4992_v3  ;;  %v7204_v4 = vpop.eup %7203  ;;  %v4710_v13 = vmul.f32 0.3275911, %v9702_v42  ;;  %v9714_v31 = vmul.f32 %v5054_v58, %v9614_v18  ;;  %v9719_v35 = vmul.f32 0.70710677, %v9699_v10 }
0x1a09   : > { %v5056_v40 = vadd.f32 1.0, %v5040_v14  ;;  %v5042_v48 = vsel %vm5010_vm8, %v5026_v26, %v4994_v20  ;;  %v4993_v33 = vsub.f32 1.0, %v4977_v27  ;;  %v4979_v12 = vmul.f32 %v7204_v4, %v4899_v55 }
0x1a0a   : > { %v5058_v60 = vadd.f32 1.0, %v5042_v48  ;;  %v7206_v63 = vpop.eup %7205  ;;  %v4726_v51 = vadd.f32 1.0, %v4710_v13  ;;  %v9726_v30 = vand.u32 2147483647, %v9719_v35  ;;  %v4989_v18 = vsub.f32 1.0, %v4973_v39 }
0x1a0b   : > { %v9716_v44 = vmul.f32 %v5056_v40, %v4656_v32  ;;  %v4975_v17 = vmul.f32 %v7206_v63, %v4895_v34  ;;  %v4788_v61 = vadd.f32 -1.4531521, %v4772_v6  ;;  %v4995_v54 = vsub.f32 1.0, %v4979_v12 }
0x1a0c   : > { %v9721_v49 = vmul.f32 %v5058_v60, %v4658_v50  ;;  %7207 = vrcp.f32 %v4726_v51  ;;  %v4709_v25 = vmul.f32 0.3275911, %v9726_v30  ;;  %v5025_v50 = vsub.f32 0.0, %v4993_v33 }
0x1a0d   : > { %v5084_v59 = vpack.c.bf16 %v9716_v44, %v9711_v28  ;;  %v4991_v3 = vsub.f32 1.0, %v4975_v17  ;;  %v9733_v15 = vadd.f32 %v9560_v38, %v9520_v37  ;;  %v5021_v20 = vsub.f32 0.0, %v4989_v18 }
0x1a0e   : > { %v5086_v32 = vpack.c.bf16 %v9721_v49, %v9714_v31  ;;  %v4725_v62 = vadd.f32 1.0, %v4709_v25  ;;  %v4804_v56 = vmul.f32 %v9688_v24, %v4788_v61  ;;  %v9738_v57 = vadd.f32 %v9562_v1, %v9514_v9 }
0x1a0f   : > { %v9742_v5 = vadd.f32 %v9564_v22, %v9516_v19  ;;  %v4653_v46 = vmul.f32 0.5, %v9529_v7  ;;  %v4655_v58 = vmul.f32 0.5, %v9532_v53  ;;  %v5041_v38 = vsel %vm5009_vm9, %v5025_v50, %v4993_v33 }
0x1a10   : > { %7209 = vrcp.f32 %v4725_v62  ;;  %v5027_v26 = vsub.f32 0.0, %v4995_v54  ;;  %v9748_v11 = vmul.f32 0.70710677, %v9733_v15  ;;  %v9751_v14 = vmul.f32 0.70710677, %v9738_v57 }
0x1a11   : > { %v5023_v9 = vsub.f32 0.0, %v4991_v3  ;;  %v4916_v19 = vmul.f32 %v9631_v36, %v9631_v36  ;;  %v9757_v7 = vmul.f32 0.70710677, %v9742_v5  ;;  %v5037_v53 = vsel %vm5005_vm10, %v5021_v20, %v4989_v18 }
0x1a12   : > { %v4820_v1 = vadd.f32 1.4214138, %v4804_v56  ;;  %v4695_v22 = vand.u32 2147483647, %v9748_v11  ;;  %v4696_v41 = vand.u32 2147483647, %v9751_v14  ;;  %v5043_v36 = vsel %vm5011_vm12, %v5027_v26, %v4995_v54 }
0x1a13   : > { %v5057_v27 = vadd.f32 1.0, %v5041_v38  ;;  %v9764_v47 = vand.u32 2147483647, %v9757_v7  ;;  %v4657_v8 = vmul.f32 0.5, %v9580_v23  ;;  %v5053_v40 = vadd.f32 1.0, %v5037_v53 }
0x1a14   : > { %v4711_v4 = vmul.f32 0.3275911, %v4695_v22  ;;  %v4712_v39 = vmul.f32 0.3275911, %v4696_v41  ;;  %v5039_v48 = vsel %vm5007_vm11, %v5023_v9, %v4991_v3  ;;  %v4932_v60 = vsub.f32 0.0, %v4916_v19 }
0x1a15   : > { %v4714_v55 = vmul.f32 0.3275911, %v9764_v47  ;;  %v4836_v52 = vmul.f32 %v9688_v24, %v4820_v1  ;;  %v9774_v13 = vadd.f32 %v9569_v16, %v9518_v43  ;;  %v5073_v23 = vmul.f32 %v5057_v27, %v4657_v8 }
0x1a16   : > { %v9767_v34 = vpop.eup %7207  ;;  %v4727_v45 = vadd.f32 1.0, %v4711_v4  ;;  %v5059_v63 = vadd.f32 1.0, %v5043_v36  ;;  %v4918_v33 = vmul.f32 %v9702_v42, %v9702_v42  ;;  %v4728_v12 = vadd.f32 1.0, %v4712_v39 }
0x1a17   : > { %v4774_v6 = vmul.f32 1.0614054, %v9767_v34  ;;  %v4659_v51 = vmul.f32 0.5, %v9587_v2  ;;  %v4730_v18 = vadd.f32 1.0, %v4714_v55  ;;  %v5069_v25 = vmul.f32 %v5053_v40, %v4653_v46 }
0x1a18   : > { %7211 = vrcp.f32 %v4727_v45  ;;  %v5055_v50 = vadd.f32 1.0, %v5039_v48  ;;  %v4956_v54 = vmul.f32 1.442695, %v4932_v60  ;;  %v4852_v3 = vadd.f32 -0.28449672, %v4836_v52 }
0x1a19   : > { %v4790_v17 = vadd.f32 -1.4531521, %v4774_v6  ;;  %7213 = vrcp.f32 %v4728_v12  ;;  %v9784_v62 = vmul.f32 0.70710677, %v9774_v13  ;;  %v5075_v42 = vmul.f32 %v5059_v63, %v4659_v51 }
0x1a1a   : > { %v9779_v61 = vpop.eup %7209  ;;  %v4934_v20 = vsub.f32 0.0, %v4918_v33  ;;  %v9788_v2 = vadd.f32 %v9571_v29, %v9520_v37  ;;  %v5085_v56 = vpack.c.bf16 %v5073_v23, %v5069_v25  ;;  %7215 = vrcp.f32 %v4730_v18 }
0x1a1b   : > { %v4806_v43 = vmul.f32 %v9767_v34, %v4790_v17  ;;  %v4773_v16 = vmul.f32 1.0614054, %v9779_v61  ;;  %v4697_v26 = vand.u32 2147483647, %v9784_v62  ;;  %v5071_v9 = vmul.f32 %v5055_v50, %v4655_v58 }
0x1a1c   : > { %7217 = vpow2.f32 %v4956_v54  ;;  %v4917_v19 = vmul.f32 %v9726_v30, %v9726_v30  ;;  %v9794_v53 = vmul.f32 0.70710677, %v9788_v2  ;;  %5387 = vmatprep.mubr.bf16.mxu1 %v5085_v56  ;;  %v4868_v1 = vmul.f32 %v9688_v24, %v4852_v3 }
0x1a1d   : > { %v4822_v38 = vadd.f32 1.4214138, %v4806_v43  ;;  %v4789_v46 = vadd.f32 -1.4531521, %v4773_v16  ;;  %v4713_v27 = vmul.f32 0.3275911, %v4697_v26  ;;  %5388 = vmatmul.mubr.bf16.vlgmr.msra.gmra.mrb[88].mxu1 %v5084_v59  ;;  %v4920_v8 = vmul.f32 %v4696_v41, %v4696_v41 }
0x1a1e   : > { %v4960_v58 = vmul.f32 1.442695, %v4934_v20  ;;  %v4699_v36 = vand.u32 2147483647, %v9794_v53  ;;  %v5087_v30 = vpack.c.bf16 %v5075_v42, %v5071_v9  ;;  %v4933_v48 = vsub.f32 0.0, %v4917_v19 }
0x1a1f   : > { %v4838_v37 = vmul.f32 %v9767_v34, %v4822_v38  ;;  %v4805_v29 = vmul.f32 %v9779_v61, %v4789_v46  ;;  %v4729_v40 = vadd.f32 1.0, %v4713_v27  ;;  %v4919_v60 = vmul.f32 %v4695_v22, %v4695_v22 }
0x1a20   : > { %v4715_v55 = vmul.f32 0.3275911, %v4699_v36  ;;  %5436 = vmatprep.mubr.bf16.mxu0 %v5087_v30  ;;  %v4884_v6 = vadd.f32 0.2548296, %v4868_v1  ;;  %v4922_v28 = vmul.f32 %v9764_v47, %v9764_v47  ;;  %v4936_v41 = vsub.f32 0.0, %v4920_v8 }
0x1a21   : > { %v4854_v4 = vadd.f32 -0.28449672, %v4838_v37  ;;  %v4821_v39 = vadd.f32 1.4214138, %v4805_v29  ;;  %7219 = vrcp.f32 %v4729_v40  ;;  %5437 = vmatmul.mubr.bf16.vlgmr.msra.gmra.mrb[88].mxu0 %v5086_v32  ;;  %v4958_v12 = vmul.f32 1.442695, %v4933_v48 }
0x1a22   : > { %v9803_v52 = vpop.eup %7211  ;;  %v4731_v23 = vadd.f32 1.0, %v4715_v55  ;;  %7221 = vpow2.f32 %v4960_v58  ;;  %v4935_v47 = vsub.f32 0.0, %v4919_v60  ;;  %v4900_v31 = vmul.f32 %v9688_v24, %v4884_v6 }
0x1a23   : > { %v4837_v45 = vmul.f32 %v9779_v61, %v4821_v39  ;;  %v9811_v44 = vpop.eup %7213  ;;  %v4870_v59 = vmul.f32 %v9767_v34, %v4854_v4  ;;  %v4775_v22 = vmul.f32 1.0614054, %v9803_v52  ;;  %v4938_v32 = vsub.f32 0.0, %v4922_v28 }
0x1a24   : > { %v4776_v33 = vmul.f32 1.0614054, %v9811_v44  ;;  %7223 = vrcp.f32 %v4731_v23  ;;  %v9816_v17 = vpop.eup %7215  ;;  %v4964_v54 = vmul.f32 1.442695, %v4936_v41  ;;  %v4921_v42 = vmul.f32 %v4697_v26, %v4697_v26 }
0x1a25   : > { %v4853_v63 = vadd.f32 -0.28449672, %v4837_v45  ;;  %v4791_v51 = vadd.f32 -1.4531521, %v4775_v22  ;;  %v4886_v25 = vadd.f32 0.2548296, %v4870_v59  ;;  %7225 = vpow2.f32 %v4958_v12 }
0x1a26   : > { %v4792_v49 = vadd.f32 -1.4531521, %v4776_v33  ;;  %v7218_v18 = vpop.eup %7217  ;;  %v4778_v3 = vmul.f32 1.0614054, %v9816_v17  ;;  %v4962_v56 = vmul.f32 1.442695, %v4935_v47  ;;  %v4923_v19 = vmul.f32 %v4699_v36, %v4699_v36 }
0x1a27   : > { %v4807_v50 = vmul.f32 %v9803_v52, %v4791_v51  ;;  %v4869_v43 = vmul.f32 %v9779_v61, %v4853_v63  ;;  %v4980_v46 = vmul.f32 %v7218_v18, %v4900_v31  ;;  %v4968_v9 = vmul.f32 1.442695, %v4938_v32 }
0x1a28   : > { %v4808_v16 = vmul.f32 %v9811_v44, %v4792_v49  ;;  %v4794_v38 = vadd.f32 -1.4531521, %v4778_v3  ;;  %v4902_v1 = vmul.f32 %v9767_v34, %v4886_v25  ;;  %7227 = vpow2.f32 %v4964_v54 }
0x1a29   : > { %v4823_v20 = vadd.f32 1.4214138, %v4807_v50  ;;  %v4885_v58 = vadd.f32 0.2548296, %v4869_v43  ;;  %v4937_v8 = vsub.f32 0.0, %v4921_v42  ;;  %7229 = vpow2.f32 %v4962_v56  ;;  %v10180_v56 = vld [vmem:[#allocation60_spill] sm:$0xff] }
0x1a2a   : > { %v4824_v24 = vadd.f32 1.4214138, %v4808_v16  ;;  %v4810_v29 = vmul.f32 %v9816_v17, %v4794_v38  ;;  %v4996_v36 = vsub.f32 1.0, %v4980_v46  ;;  %7231 = vpow2.f32 %v4968_v9  ;;  %v10181_v46 = vld [vmem:[#allocation61_spill] sm:$0xff] }
0x1a2b   : > { %v4839_v37 = vmul.f32 %v9803_v52, %v4823_v20  ;;  %v9826_v27 = vpop.eup %7219  ;;  %v4939_v34 = vsub.f32 0.0, %v4923_v19  ;;  %v4966_v22 = vmul.f32 1.442695, %v4937_v8  ;;  %v4901_v23 = vmul.f32 %v9779_v61, %v4885_v58 }
0x1a2c   : > { %v4840_v26 = vmul.f32 %v9811_v44, %v4824_v24  ;;  %v4826_v4 = vadd.f32 1.4214138, %v4810_v29  ;;  %v4777_v39 = vmul.f32 1.0614054, %v9826_v27  ;;  %v7222_v40 = vpop.eup %7221  ;;  %v5028_v51 = vsub.f32 0.0, %v4996_v36 }
0x1a2d   : > { %v4855_v30 = vadd.f32 -0.28449672, %v4839_v37  ;;  %v4982_v55 = vmul.f32 %v7222_v40, %v4902_v1  ;;  %v4970_v50 = vmul.f32 1.442695, %v4939_v34  ;;  %7233 = vpow2.f32 %v4966_v22 }
0x1a2e   : > { %v4856_v48 = vadd.f32 -0.28449672, %v4840_v26  ;;  %v9830_v60 = vpop.eup %7223  ;;  %v4842_v45 = vmul.f32 %v9816_v17, %v4826_v4  ;;  %v4793_v28 = vadd.f32 -1.4531521, %v4777_v39  ;;  %v4660_v38 = vmul.f32 0.5, %v10180_v56 }
0x1a2f   : > { %v4871_v6 = vmul.f32 %v9803_v52, %v4855_v30  ;;  %v4779_v41 = vmul.f32 1.0614054, %v9830_v60  ;;  %v7226_v49 = vpop.eup %7225  ;;  %v4998_v32 = vsub.f32 1.0, %v4982_v55  ;;  %vm5012_vm13 = vcmp.lt.f32.partialorder %v10181_v46, 0.0 }
0x1a30   : > { %v4872_v59 = vmul.f32 %v9811_v44, %v4856_v48  ;;  %v4858_v33 = vadd.f32 -0.28449672, %v4842_v45  ;;  %v4809_v12 = vmul.f32 %v9826_v27, %v4793_v28  ;;  %v4981_v16 = vmul.f32 %v7226_v49, %v4901_v23 }
0x1a31   : > { %v4887_v63 = vadd.f32 0.2548296, %v4871_v6  ;;  %v4795_v31 = vadd.f32 -1.4531521, %v4779_v41  ;;  %v5030_v1 = vsub.f32 0.0, %v4998_v32  ;;  %7235 = vpow2.f32 %v4970_v50 }
0x1a32   : > { %v4888_v47 = vadd.f32 0.2548296, %v4872_v59  ;;  %v4874_v18 = vmul.f32 %v9816_v17, %v4858_v33  ;;  %v4825_v25 = vadd.f32 1.4214138, %v4809_v12  ;;  %v7228_v43 = vpop.eup %7227  ;;  %v5044_v29 = vsel %vm5012_vm13, %v5028_v51, %v4996_v36 }
0x1a33   : > { %v4903_v54 = vmul.f32 %v9803_v52, %v4887_v63  ;;  %v4811_v61 = vmul.f32 %v9830_v60, %v4795_v31  ;;  %v7230_v19 = vpop.eup %7229  ;;  %v4662_v30 = vmul.f32 0.5, %v9680_v21  ;;  %v4997_v4 = vsub.f32 1.0, %v4981_v16 }
0x1a34   : > { %v4904_v3 = vmul.f32 %v9811_v44, %v4888_v47  ;;  %v4890_v42 = vadd.f32 0.2548296, %v4874_v18  ;;  %v4841_v20 = vmul.f32 %v9826_v27, %v4825_v25  ;;  %v7232_v44 = vpop.eup %7231  ;;  %vm5014_vm14 = vcmp.lt.f32.partialorder %v9695_v0, 0.0 }
0x1a35   : > { %v4827_v9 = vadd.f32 1.4214138, %v4811_v61  ;;  %v4983_v58 = vmul.f32 %v7230_v19, %v4903_v54  ;;  %vm5016_vm15 = vcmp.lt.f32.partialorder %v9751_v14, 0.0  ;;  %v5060_v34 = vadd.f32 1.0, %v5044_v29 }
0x1a36   : > { %v4984_v24 = vmul.f32 %v7228_v43, %v4904_v3  ;;  %v4906_v52 = vmul.f32 %v9816_v17, %v4890_v42  ;;  %v4857_v37 = vadd.f32 -0.28449672, %v4841_v20  ;;  %v5046_v55 = vsel %vm5014_vm14, %v5030_v1, %v4998_v32 }
0x1a37   : > { %v4843_v8 = vmul.f32 %v9830_v60, %v4827_v9  ;;  %v4999_v45 = vsub.f32 1.0, %v4983_v58  ;;  %v4664_v28 = vmul.f32 0.5, %v9738_v57  ;;  %v5029_v22 = vsub.f32 0.0, %v4997_v4  ;;  %v7234_v0 = vpop.eup %7233 }
0x1a38   : > { %v5000_v26 = vsub.f32 1.0, %v4984_v24  ;;  %v4986_v39 = vmul.f32 %v7232_v44, %v4906_v52  ;;  %v4873_v40 = vmul.f32 %v9826_v27, %v4857_v37  ;;  %v5062_v33 = vadd.f32 1.0, %v5046_v55 }
0x1a39   : > { %v4859_v17 = vadd.f32 -0.28449672, %v4843_v8  ;;  %vm5013_vm0 = vcmp.lt.f32.partialorder %v9719_v35, 0.0  ;;  %vm5018_vm1 = vcmp.lt.f32.partialorder %v9757_v7, 0.0  ;;  %v5076_v12 = vmul.f32 %v5060_v34, %v4660_v38 }
0x1a3a   : > { %v5032_v48 = vsub.f32 0.0, %v5000_v26  ;;  %v5002_v6 = vsub.f32 1.0, %v4986_v39  ;;  %v4889_v36 = vadd.f32 0.2548296, %v4873_v40  ;;  %v5031_v57 = vsub.f32 0.0, %v4999_v45 }
0x1a3b   : > { %v4875_v21 = vmul.f32 %v9830_v60, %v4859_v17  ;;  %v4666_v49 = vmul.f32 0.5, %v9742_v5  ;;  %v7236_v25 = vpop.eup %7235  ;;  %v5045_v50 = vsel %vm5013_vm0, %v5029_v22, %v4997_v4  ;;  %v5078_v3 = vmul.f32 %v5062_v33, %v4662_v30 }
0x1a3c   : > { %v5048_v59 = vsel %vm5016_vm15, %v5032_v48, %v5000_v26  ;;  %v5034_v23 = vsub.f32 0.0, %v5002_v6  ;;  %v4905_v63 = vmul.f32 %v9826_v27, %v4889_v36  ;;  %vm5015_vm2 = vcmp.lt.f32.partialorder %v9748_v11, 0.0  ;;  %v10183_v36 = vld [vmem:[#allocation56_spill] sm:$0xff] }
0x1a3d   : > { %v5064_v41 = vadd.f32 1.0, %v5048_v59  ;;  %v4891_v14 = vadd.f32 0.2548296, %v4875_v21  ;;  %vm5017_vm3 = vcmp.lt.f32.partialorder %v9784_v62, 0.0  ;;  %v5061_v43 = vadd.f32 1.0, %v5045_v50  ;;  %v10184_v59 = vld [vmem:[#allocation57_spill] sm:$0xff] }
0x1a3e   : > { %v5050_v47 = vsel %vm5018_vm1, %v5034_v23, %v5002_v6  ;;  %v4985_v31 = vmul.f32 %v7234_v0, %v4905_v63  ;;  %v5047_v16 = vsel %vm5015_vm2, %v5031_v57, %v4999_v45  ;;  %v4661_v56 = vmul.f32 0.5, %v9699_v10 }
0x1a3f   : > { %v5080_v51 = vmul.f32 %v5064_v41, %v4664_v28  ;;  %v5066_v32 = vadd.f32 1.0, %v5050_v47  ;;  %v4907_v18 = vmul.f32 %v9830_v60, %v4891_v14  ;;  %v4665_v60 = vmul.f32 0.5, %v9774_v13 }
0x1a40   : > { %v5001_v27 = vsub.f32 1.0, %v4985_v31  ;;  %v5063_v24 = vadd.f32 1.0, %v5047_v16  ;;  %vm5019_vm4 = vcmp.lt.f32.partialorder %v9794_v53, 0.0  ;;  %v5077_v9 = vmul.f32 %v5061_v43, %v4661_v56  ;;  %v6115_v53 = vld [vmem:[%s1210_s17] ss:$0 sm:$0xff] }
0x1a41   : > { %v5088_v54 = vpack.c.bf16 %v5080_v51, %v5076_v12  ;;  %v5082_v61 = vmul.f32 %v5066_v32, %v4666_v49  ;;  %v4987_v35 = vmul.f32 %v7236_v25, %v4907_v18  ;;  %v4663_v62 = vmul.f32 0.5, %v9733_v15  ;;  %v10185_v25 = vld [vmem:[#allocation58_spill] sm:$0xff] }
0x1a42   : > { %v5033_v7 = vsub.f32 0.0, %v5001_v27  ;;  %v4667_v1 = vmul.f32 0.5, %v9788_v2 }
0x1a43   : > { %v5003_v42 = vsub.f32 1.0, %v4987_v35  ;;  %v5090_v20 = vpack.c.bf16 %v5082_v61, %v5078_v3  ;;  %v5079_v44 = vmul.f32 %v5063_v24, %v4663_v62 }
0x1a44   : > { %v5049_v5 = vsel %vm5017_vm3, %v5033_v7, %v5001_v27 }
0x1a45   : > { %v5065_v38 = vadd.f32 1.0, %v5049_v5  ;;  %v5035_v46 = vsub.f32 0.0, %v5003_v42 }
0x1a47   : > { %v5081_v11 = vmul.f32 %v5065_v38, %v4665_v60  ;;  %v5051_v19 = vsel %vm5019_vm4, %v5035_v46, %v5003_v42 }
0x1a48   : > { %v5067_v52 = vadd.f32 1.0, %v5051_v19 }
0x1a49   : > { %v5089_v37 = vpack.c.bf16 %v5081_v11, %v5077_v9 }
0x1a4a   : > { %v5083_v29 = vmul.f32 %v5067_v52, %v4667_v1 }
0x1a4b   : > { %5395 = vmatprep.mubr.bf16.mxu1 %v5089_v37 }
0x1a4c   : > { %v5091_v10 = vpack.c.bf16 %v5083_v29, %v5079_v44  ;;  %5396 = vmatmul.mubr.bf16.gmra.mrb[92].mxu1 %v5088_v54  ;;  %v10186_v54 = vld [vmem:[#allocation59_spill] sm:$0xff] }
0x1a4e   : > { %5444 = vmatprep.mubr.bf16.mxu0 %v5091_v10 }
0x1a4f   : > { %5445 = vmatmul.mubr.bf16.gmra.mrb[92].mxu0 %v5090_v20 }
0x1af0   : > { %v6289_v13 = vpop.f32.mrb[88].mxu1 }
0x1af1   : > { %v6290_v58 = vpop.f32.mrb[89].mxu1 }
0x1af2   : > { %v6291_v15 = vadd.f32 %v6290_v58, %v6289_v13  ;;  %v6292_v26 = vpop.f32.mrb[90].mxu1 }
0x1af3   : > { %v6293_v2 = vpop.f32.mrb[91].mxu1 }
0x1af4   : > { %v6317_v8 = vpop.f32.mrb[88].mxu0  ;;  %v5390_v30 = vadd.f32 %v6291_v15, %v6115_v53  ;;  %v6294_v4 = vadd.f32 %v6293_v2, %v6292_v26 }
0x1af5   : > { %v6318_v39 = vpop.f32.mrb[89].mxu0 }
0x1af6   : > { %v6319_v40 = vadd.f32 %v6318_v39, %v6317_v8  ;;  %v6320_v48 = vpop.f32.mrb[90].mxu0  ;;  %v5393_v17 = vadd.f32 %v6294_v4, %v6115_v53  ;;  %v6149_v8 = vld [vmem:[#allocation19] ss:$0 sm:$0xff] (!%p6148_p2)  ;;  %v6150_v4 = vld [vmem:[#allocation20] ss:$0 sm:$0xff] (!%p6148_p2) }
0x1af7   : > { %v6321_v34 = vpop.f32.mrb[91].mxu0 }
0x1af8   : > { %v5439_v55 = vadd.f32 %v6319_v40, %v5390_v30  ;;  %v6322_v6 = vadd.f32 %v6321_v34, %v6320_v48 }
0x1afa   : > { %v5453_v45 = vadd.f32 %v5439_v55, %v10183_v36  ;;  %v5442_v28 = vadd.f32 %v6322_v6, %v5393_v17 }
0x1afc   : > { %5457 = vst [vmem:[%s8612_s30] sm:$0xff] %v5453_v45  ;;  %v5454_v21 = vadd.f32 %v5442_v28, %v10184_v59  ;;  %5467 = vadd.xlane.f32.xlu0 (!%p6148_p2), %v5453_v45 }
0x1afe   : > { %5458 = vst [vmem:[%s8612_s30 + $0x8] sm:$0xff] %v5454_v21 }
0x1b00   : > { %5469 = vadd.xlane.f32.xlu0 (!%p6148_p2), %v5454_v21 }
0x1b1f   : > { %v6295_v22 = vpop.f32.mrb[92].mxu1 }
0x1b20   : > { %v6296_v41 = vpop.f32.mrb[93].mxu1 }
0x1b21   : > { %v6297_v23 = vadd.f32 %v6296_v41, %v6295_v22  ;;  %v6298_v63 = vpop.f32.mrb[94].mxu1 }
0x1b22   : > { %v6323_v0 = vpop.f32.mrb[92].mxu0  ;;  %v6299_v33 = vpop.f32.mrb[95].mxu1 }
0x1b23   : > { %v5398_v14 = vadd.f32 %v6297_v23, %v6115_v53  ;;  %v6324_v12 = vpop.f32.mrb[93].mxu0  ;;  %v6300_v51 = vadd.f32 %v6299_v33, %v6298_v63 }
0x1b24   : > { %v6325_v47 = vadd.f32 %v6324_v12, %v6323_v0  ;;  %v6326_v31 = vpop.f32.mrb[94].mxu0 }
0x1b25   : > { %v5401_v57 = vadd.f32 %v6300_v51, %v6115_v53  ;;  %v6327_v49 = vpop.f32.mrb[95].mxu0 }
0x1b26   : > { %v5447_v32 = vadd.f32 %v6325_v47, %v5398_v14  ;;  %v6328_v18 = vadd.f32 %v6327_v49, %v6326_v31  ;;  %5464 = sbr.rel (%p6148_p2) target bundleno = 7270 (0x1c66), region = 164 }
0x1b28   : > { %v5455_v50 = vadd.f32 %v5447_v32, %v10185_v25  ;;  %v5450_v27 = vadd.f32 %v6328_v18, %v5401_v57 }
0x1b2a   : > { %5459 = vst [vmem:[%s8612_s30 + $0x10] sm:$0xff] %v5455_v50  ;;  %v5456_v3 = vadd.f32 %v5450_v27, %v10186_v54  ;;  %5471 = vadd.xlane.f32.xlu1 (!%p6148_p2), %v5455_v50 }
0x1b2c   : > { %5460 = vst [vmem:[%s8612_s30 + $0x18] sm:$0xff] %v5456_v3 }
0x1b2e   : > { %5473 = vadd.xlane.f32.xlu1 %v5456_v3 }
0x1b89   : > { %v5468_v61 = vpop.xlane.xlu0 %5467 }
0x1b8a   : > { %v5475_v7 = vmul.f32 0.0078125, %v5468_v61 }
0x1b8c   : > { %v5479_v16 = vsub.f32 %v5453_v45, %v5475_v7 }
0x1b8d   : > { %v5470_v20 = vpop.xlane.xlu0 %5469 }
0x1b8e   : > { %v5476_v56 = vmul.f32 0.0078125, %v5470_v20  ;;  %v5483_v60 = vmul.f32 %v5479_v16, %v5479_v16 }
0x1b90   : > { %v5480_v46 = vsub.f32 %v5454_v21, %v5476_v56  ;;  %5487 = vadd.xlane.f32.xlu0 %v5483_v60 }
0x1b92   : > { %v5484_v11 = vmul.f32 %v5480_v46, %v5480_v46 }
0x1b94   : > { %5489 = vadd.xlane.f32.xlu1 %v5484_v11 }
0x1bb7   : > { %v5472_v35 = vpop.xlane.xlu1 %5471 }
0x1bb8   : > { %v5477_v43 = vmul.f32 0.0078125, %v5472_v35 }
0x1bba   : > { %v5481_v42 = vsub.f32 %v5455_v50, %v5477_v43 }
0x1bbb   : > { %v5474_v5 = vpop.xlane.xlu1 %5473 }
0x1bbc   : > { %v5478_v38 = vmul.f32 0.0078125, %v5474_v5  ;;  %v5485_v9 = vmul.f32 %v5481_v42, %v5481_v42 }
0x1bbe   : > { %v5482_v24 = vsub.f32 %v5456_v3, %v5478_v38  ;;  %5491 = vadd.xlane.f32.xlu0 %v5485_v9 }
0x1bc0   : > { %v5486_v19 = vmul.f32 %v5482_v24, %v5482_v24 }
0x1bc2   : > { %5493 = vadd.xlane.f32.xlu1 %v5486_v19 }
0x1c1d   : > { %v5488_v62 = vpop.xlane.xlu0 %5487 }
0x1c1e   : > { %v5495_v1 = vmul.f32 0.0078125, %v5488_v62 }
0x1c20   : > { %v5499_v52 = vadd.f32 1e-05, %v5495_v1 }
0x1c21   : > { %v5490_v37 = vpop.xlane.xlu1 %5489 }
0x1c22   : > { %7249 = vrsqrt.f32 %v5499_v52  ;;  %v5496_v29 = vmul.f32 0.0078125, %v5490_v37 }
0x1c24   : > { %v5500_v13 = vadd.f32 1e-05, %v5496_v29 }
0x1c26   : > { %7251 = vrsqrt.f32 %v5500_v13 }
0x1c2c   : > { %v7250_v2 = vpop.eup %7249 }
0x1c2d   : > { %v5507_v30 = vmul.f32 %v7250_v2, %v5479_v16 }
0x1c2f   : > { %v5517_v39 = vmul.f32 %v6149_v8, %v5507_v30 }
0x1c30   : > { %v7252_v40 = vpop.eup %7251 }
0x1c31   : > { %v5527_v17 = vadd.f32 %v6150_v4, %v5517_v39  ;;  %v5508_v34 = vmul.f32 %v7252_v40, %v5480_v46 }
0x1c33   : > { %5531 = vst [vmem:[%s8612_s30] sm:$0xff] %v5527_v17  ;;  %v5518_v6 = vmul.f32 %v6149_v8, %v5508_v34 }
0x1c35   : > { %v5528_v28 = vadd.f32 %v6150_v4, %v5518_v6 }
0x1c37   : > { %5532 = vst [vmem:[%s8612_s30 + $0x8] sm:$0xff] %v5528_v28 }
0x1c4b   : > { %v5492_v44 = vpop.xlane.xlu0 %5491 }
0x1c4c   : > { %v5497_v10 = vmul.f32 0.0078125, %v5492_v44 }
0x1c4e   : > { %v5501_v53 = vadd.f32 1e-05, %v5497_v10 }
0x1c4f   : > { %v5494_v58 = vpop.xlane.xlu1 %5493 }
0x1c50   : > { %v5498_v15 = vmul.f32 0.0078125, %v5494_v58  ;;  %7253 = vrsqrt.f32 %v5501_v53 }
0x1c52   : > { %v5502_v26 = vadd.f32 1e-05, %v5498_v15 }
0x1c54   : > { %7255 = vrsqrt.f32 %v5502_v26 }
0x1c5a   : > { %v7254_v48 = vpop.eup %7253 }
0x1c5b   : > { %v5509_v55 = vmul.f32 %v7254_v48, %v5481_v42 }
0x1c5d   : > { %v5519_v45 = vmul.f32 %v6149_v8, %v5509_v55 }
0x1c5e   : > { %v7256_v36 = vpop.eup %7255 }
0x1c5f   : > { %v5510_v59 = vmul.f32 %v7256_v36, %v5482_v24  ;;  %v5529_v21 = vadd.f32 %v6150_v4, %v5519_v45 }
0x1c61   : > { %v5520_v22 = vmul.f32 %v6149_v8, %v5510_v59  ;;  %5533 = vst [vmem:[%s8612_s30 + $0x10] sm:$0xff] %v5529_v21 }
0x1c63   : > { %v5530_v41 = vadd.f32 %v6150_v4, %v5520_v22 }
0x1c65   : > { %5534 = vst [vmem:[%s8612_s30 + $0x18] sm:$0xff] %v5530_v41 }
0x1c66 PF: > { %s10188_s17 = sld [smem:[#allocation39_spill]]  ;;  %s10189_s25 = sld [smem:[#allocation52_spill]] }
0x1c67   : > { %s10190_s19 = sld [smem:[#allocation49_spill]]  ;;  %s10191_s26 = sld [smem:[#allocation84_spill]] }
0x1c68   : > { %s5550_s9 = sshll.u32 %s8612_s30, 4  ;;  %s7793_s4 = smov [#allocation22]   ;;  %s9890_s9 = int_to_ptr.vmem [resolvable:$true] %s5550_s9 }
0x1c69   : > { %s7611_s29 = scalar_lea.vmem %s9890_s9, 512  ;;  %s7615_s0 = sshll.u32 %s7793_s4, 4  ;;  %s7616_s0 = int_to_ptr.vmem [resolvable:$false] %s7615_s0 }
0x1c6a   : > { %p7612_p9 = scmp.ne.s32.totalorder %s9890_s9, %s7611_s29  ;;  %s7617_s24 = scalar_lea.vmem %s7616_s0, 1024 }
0x1c6b   : > { %p7618_p10 = scmp.lt.s32.totalorder %s9890_s9, %s7616_s0  ;;  %p7619_p7 = scmp.lt.s32.totalorder %s7617_s24, %s7611_s29 }
0x1c6c   : > { %s6168_s20 = sshll.u32 %s10188_s17, 9  ;;  %s5536_s5 = scalar_lea.sflag [#allocation4], %s10189_s25 }
0x1c6d   : > { %s9887_s13 = scalar_lea.hbm %s10191_s26, %s6168_s20  ;;  %p10192_p8 = scmp.ne.s32.totalorder %s10190_s19, 0 }
0x1c6e   : > { %p7620_p4 = por %p7619_p7, %p7618_p10 }
0x1c6f   : > { %p7613_p5 = pnand %p7612_p9, %p10192_p8 }
0x1c71   : > { %p7614_p12 = pneg %p7613_p5 }
0x1c73   : > { %p7621_p0 = pnand %p7620_p4, %p7614_p12 }
0x1c75   : > { %7624 = shalt.err (!%p7621_p0)
}
0x1c76   : > { %s7625_s30 = scalar_lea.hbm %s9887_s13, 512  ;;  %s7629_s2 = scalar_lea.hbm %s10191_s26, 1024 }
0x1c77   : > { %p7626_p11 = scmp.ne.s32.totalorder %s9887_s13, %s7625_s30  ;;  %p7630_p1 = scmp.lt.u32.totalorder %s9887_s13, %s10191_s26 }
0x1c78   : > { %p7631_p3 = scmp.lt.u32.totalorder %s7629_s2, %s7625_s30  ;;  %p7633_p9 = scmp.lt.u32.totalorder %s7625_s30, %s9887_s13 }
0x1c79   : > { %p7627_p13 = pnand %p7626_p11, %p10192_p8 }
0x1c7a   : > { %p7632_p2 = por %p7631_p3, %p7630_p1 }
0x1c7b   : > { %p7628_p6 = pneg %p7627_p13 }
0x1c7c   : > { %p7634_p5 = por %p7633_p9, %p7632_p2 }
0x1c7e   : > { %p7635_p12 = pnand %p7634_p5, %p7628_p6 }
0x1c80   : > { %7638 = shalt.err (!%p7635_p12)
}
0x1c81   : > { %s7794_s7 = smov 128   ;;  %s7795_s12 = smov 8  }
0x1c82   : > { %6634 = dma.vmem_to_hbm [thread:$0]  (%p10192_p8), %s9890_s9, 512, %s9887_s13, %s5536_s5, %s7794_s7, %s7794_s7, %s7795_s12  }
0x1c83 PF: > { %s10193_s1 = sld [smem:[#allocation42_spill]]  ;;  %s10194_s16 = sld [smem:[#allocation35_spill]] }
0x1c84   : > { %s10195_s10 = sld [smem:[#allocation45_spill]] }
0x1c89   : > { %p6685_p10 = scmp.ge.s32.totalorder %s10193_s1, 2  ;;  %s5565_s22 = sand.u32 1, %s10194_s16  }
0x1c8a   : > { %p10196_p7 = scmp.ne.s32.totalorder %s10195_s10, 0  ;;  %s5566_s8 = scalar_lea.sflag [#allocation4], %s5565_s22 }
0x1c8c   : > { %p6675_p4 = pnand %p6685_p10, %p10196_p7 }
0x1c8e   : > { %7720 = dma.done.wait (!%p6675_p4), %s5566_s8, 512  }
0x1c8f   : > { %7722 = vsyncadd (!%p6675_p4), %s5566_s8, 4294966784  ;;  %s54_s6 = sadd.s32 1, %s10193_s1   ;;  %s10197_s3 = sld [smem:[#allocation33_spill]] }
0x1c90   : > { %p51_p0 = scmp.ge.s32.totalorder %s54_s6, 6   ;;  %s10198_s28 = sld [smem:[#allocation34_spill]] }
0x1c91   : > { %s10199_s29 = sld [smem:[#allocation48_spill]]  ;;  %s10200_s30 = sld [smem:[#allocation36_spill]] }
0x1c92   : > { %s10201_s4 = sld [smem:[#allocation37_spill]]  ;;  %s10202_s0 = sld [smem:[#allocation51_spill]] }
0x1c93   : > { %s10203_s23 = sld [smem:[#allocation40_spill]]  ;;  %s10204_s1 = sld [smem:[#allocation41_spill]] }
0x1c94   : > { %s10205_s5 = sld [smem:[#allocation47_spill]]  ;;  %s10206_s24 = sld [smem:[#allocation50_spill]] }
0x1c95   :  { %53 = sbr.rel (!%p51_p0) target bundleno = 44 (0x2c), region = 301 }
0x1c9c   :  { %5571 = vsyncpa [#allocation3], 1 }
0x1c9d   :  { %5573 = vsyncpa [#allocation3 + $0x1], 1 }
0x1c9e   :  { %5574 = vsyncpa [#allocation6], 1 }
0x1c9f   :  { %5576 = vsyncpa [#allocation6 + $0x1], 1 }
0x1ca0   :  { %5577 = vsyncpa [#allocation9], 1 }
0x1ca1   :  { %5579 = vsyncpa [#allocation9 + $0x1], 1 }
0x1ca2   :  { %5580 = vsyncpa [#allocation12], 1 }
0x1ca3   :  { %5582 = vsyncpa [#allocation12 + $0x1], 1 }
0x1ca4   :  { %5583 = vsyncpa [#allocation15], 1 }
0x1ca5   :  { %5585 = vsyncpa [#allocation15 + $0x1], 1 }
0x1ca6   :  { %5586 = vsyncpa [#allocation18], 1 }
0x1ca7   :  { %5588 = vsyncpa [#allocation18 + $0x1], 1 }
0x1ca8   :  { %5589 = vsyncpa [#allocation21], 1 }
0x1ca9   :  { %5590 = vsyncpa [#allocation4], 1 }
0x1caa   :  { %5592 = vsyncpa [#allocation4 + $0x1], 1 }

</bundles_post_ra>
